<compile_context>
chip_gen: v7x
topology: tpu7x:2x2x1
jax: 0.10.0
libtpu: 0.0.40
codegen_flags: <defaults>
</compile_context>

<pallas_src>
import jax
import jax.numpy as jnp
from jax import lax
from jax.experimental import pallas as pl
from jax.experimental.pallas import tpu as pltpu


# Per-image spatial sizes at the input of each 3x3 conv (H == W throughout).
_H1, _H2, _H3, _H4 = 16, 8, 4, 2


def _conv_sizes(H, W):
    """Row-space sizes for a 3x3 'same' conv on a flattened padded buffer."""
    Wp = W + 2                      # padded width
    Rp = (H - 1) * Wp + W           # rows of the conv accumulator
    base = Wp + 1                   # acc row 0 == padded position (1, 1)
    return Wp, Rp, base


def _pool_rows(H, W):
    """Rows of the pre-compaction pooled buffer m2 (see _pool2x2_into)."""
    return (H - 2) * (W + 2) + W - 1


def _conv3x3_relu(pad_ref, w_ref, b_ref, H, W):
    """3x3 'same' conv + bias + ReLU over a flattened zero-padded activation.

    pad_ref: ((H+2)*(W+2), Cin) ref; zero padding ring, activation stored at
             rows (y+1)*(W+2) + (x+1).
    Returns an (Rp, Cout) f32 value whose row y*(W+2) + x (x in [0, W)) holds
    output pixel (y, x); the remaining rows are don't-care garbage.
    """
    Wp, Rp, base = _conv_sizes(H, W)
    Cout = w_ref.shape[-1]
    acc = jnp.zeros((Rp, Cout), jnp.float32)
    for dy in range(3):
        for dx in range(3):
            off = (dy - 1) * Wp + (dx - 1)
            xs = pad_ref[pl.ds(base + off, Rp), :]          # (Rp, Cin) contiguous
            acc = acc + lax.dot_general(
                xs, w_ref[dy, dx],                          # (Cin, Cout)
                dimension_numbers=(((1,), (0,)), ((), ())),
                preferred_element_type=jnp.float32)
    return jnp.maximum(acc + b_ref[...], 0.0)


def _pool2x2_into(acc, pool_ref, next_ref, H, W):
    """2x2/stride-2 max-pool of a conv result in flattened-padded row space.

    Writes the pooled (H/2, W/2) pixels into the interior of `next_ref`, the
    next layer's ((H/2+2)*(W/2+2), C) zero-padded flattened buffer.
    """
    Wp = W + 2
    Ho, Wo = H // 2, W // 2
    Wpn = Wo + 2
    Rp = acc.shape[0]
    # m1[r] = max(acc[r], acc[r+1]);  m2[r] = max of the 2x2 window rooted at r.
    m1 = jnp.maximum(acc[:Rp - 1], acc[1:])
    M2 = _pool_rows(H, W)
    m2 = jnp.maximum(m1[:M2], m1[Wp:Wp + M2])
    pool_ref[...] = m2
    for ho in range(Ho):
        # pooled pixels of output row ho sit at m2 rows 2*ho*Wp + 2*wo
        row = pool_ref[pl.ds(2 * ho * Wp, Wo, 2), :]        # (Wo, C)
        next_ref[pl.ds((ho + 1) * Wpn + 1, Wo), :] = row


def _detector_kernel(x_ref,
                     w1_ref, b1_ref, w2_ref, b2_ref, w3_ref, b3_ref,
                     w4_ref, b4_ref, w5_ref, b5_ref,
                     o_ref,
                     a1_ref, a2_ref, a3_ref, p1_ref, p2_ref, p3_ref):
    # Zero the padded activation buffers every grid step (the padding ring must
    # be zero; interiors are fully rewritten below).  Done per step so each
    # core's scratch is valid under the parallel batch axis.
    a1_ref[...] = jnp.zeros_like(a1_ref)
    a2_ref[...] = jnp.zeros_like(a2_ref)
    a3_ref[...] = jnp.zeros_like(a3_ref)

    # feature_extractor
    act = _conv3x3_relu(x_ref, w1_ref, b1_ref, _H1, _H1)    # 16x16x3  -> 16x16x32
    _pool2x2_into(act, p1_ref, a1_ref, _H1, _H1)            #          -> 8x8x32
    act = _conv3x3_relu(a1_ref, w2_ref, b2_ref, _H2, _H2)   # 8x8x32   -> 8x8x64
    _pool2x2_into(act, p2_ref, a2_ref, _H2, _H2)            #          -> 4x4x64
    act = _conv3x3_relu(a2_ref, w3_ref, b3_ref, _H3, _H3)   # 4x4x64   -> 4x4x128
    _pool2x2_into(act, p3_ref, a3_ref, _H3, _H3)            #          -> 2x2x128

    # box_regressor
    act = _conv3x3_relu(a3_ref, w4_ref, b4_ref, _H4, _H4)   # 2x2x128  -> 2x2x128
    # 1x1 conv 128 -> 4 (no ReLU) applied to all 6 accumulator rows; the valid
    # 2x2 pixels live at rows {0, 1, 4, 5} (row = y*(W+2) + x with W = 2).
    box = lax.dot_general(act, w5_ref[...],
                          dimension_numbers=(((1,), (0,)), ((), ())),
                          preferred_element_type=jnp.float32) + b5_ref[...]
    o_ref[0:2, :] = box[0:2, :]
    o_ref[2:4, :] = box[4:6, :]


@jax.jit
def forward_pallas(x_nchw, params):
    """Fused forward pass. Input NCHW (PyTorch convention); output (B, H*W, 4)."""
    (w1, b1), (w2, b2), (w3, b3), (w4, b4), (w5, b5) = params
    B = x_nchw.shape[0]

    # NCHW -> NHWC, ring-pad once for the first 'same' conv, flatten to the
    # kernel's (rows, channels) layout.  All inter-layer padding happens
    # inside the kernel's VMEM scratch.
    x = jnp.transpose(x_nchw, (0, 2, 3, 1))
    xp = jnp.pad(x, ((0, 0), (1, 1), (1, 1), (0, 0)))
    rows_in = (_H1 + 2) * (_H1 + 2)
    xf = xp.reshape(B, rows_in, x.shape[-1])

    w5_2d = w5.reshape(w5.shape[2], w5.shape[3])             # (128, 4)
    b1_, b2_, b3_, b4_, b5_ = (b.reshape(1, -1) for b in (b1, b2, b3, b4, b5))

    def full(*shape):
        return pl.BlockSpec(shape, lambda i, _n=len(shape): (0,) * _n)

    return pl.pallas_call(
        _detector_kernel,
        out_shape=jax.ShapeDtypeStruct((B, 4, 4), jnp.float32),
        grid=(B,),
        in_specs=[
            pl.BlockSpec((None, rows_in, 3), lambda i: (i, 0, 0)),
            full(3, 3, 3, 32), full(1, 32),
            full(3, 3, 32, 64), full(1, 64),
            full(3, 3, 64, 128), full(1, 128),
            full(3, 3, 128, 128), full(1, 128),
            full(128, 4), full(1, 4),
        ],
        out_specs=pl.BlockSpec((None, 4, 4), lambda i: (i, 0, 0)),
        scratch_shapes=[
            # padded activation buffers for layers 2-4 (flattened (Hp*Wp, C))
            pltpu.VMEM(((_H2 + 2) * (_H2 + 2), 32), jnp.float32),
            pltpu.VMEM(((_H3 + 2) * (_H3 + 2), 64), jnp.float32),
            pltpu.VMEM(((_H4 + 2) * (_H4 + 2), 128), jnp.float32),
            # small pool-compaction buffers
            pltpu.VMEM((_pool_rows(_H1, _H1), 32), jnp.float32),
            pltpu.VMEM((_pool_rows(_H2, _H2), 64), jnp.float32),
            pltpu.VMEM((_pool_rows(_H3, _H3), 128), jnp.float32),
        ],
        compiler_params=pltpu.CompilerParams(
            dimension_semantics=("parallel",)),
    )(xf, w1, b1_, w2, b2_, w3, b3_, w4, b4_, w5_2d, b5_)


def init_params(key):
    """Deterministic synthetic parameters matching the PyTorch module's shapes."""
    layer_dims = [
        (3, 3, 3, 32),     # feature_extractor conv1
        (3, 3, 32, 64),    # feature_extractor conv2
        (3, 3, 64, 128),   # feature_extractor conv3
        (3, 3, 128, 128),  # box_regressor conv (3x3)
        (1, 1, 128, 4),    # box_regressor conv (1x1)
    ]
    keys = jax.random.split(key, 2 * len(layer_dims))
    params = []
    for idx, (kh, kw, cin, cout) in enumerate(layer_dims):
        std = (2.0 / (cin * kh * kw)) ** 0.5
        w = std * jax.random.normal(keys[2 * idx], (kh, kw, cin, cout), jnp.float32)
        b = 0.01 * jax.random.normal(keys[2 * idx + 1], (cout,), jnp.float32)
        params.append((w, b))
    return params


def forward_reference(x_nchw, params):
    """Plain-JAX reference for correctness checking."""
    (w1, b1), (w2, b2), (w3, b3), (w4, b4), (w5, b5) = params
    x = jnp.transpose(x_nchw, (0, 2, 3, 1))

    def conv(x, w, b, pad):
        y = lax.conv_general_dilated(
            x, w, window_strides=(1, 1), padding=[(pad, pad), (pad, pad)],
            dimension_numbers=("NHWC", "HWIO", "NHWC"))
        return y + b.reshape(1, 1, 1, -1)

    def maxpool(x):
        return lax.reduce_window(x, -jnp.inf, lax.max,
                                 (1, 2, 2, 1), (1, 2, 2, 1), "VALID")

    x = maxpool(jax.nn.relu(conv(x, w1, b1, 1)))
    x = maxpool(jax.nn.relu(conv(x, w2, b2, 1)))
    x = maxpool(jax.nn.relu(conv(x, w3, b3, 1)))
    x = jax.nn.relu(conv(x, w4, b4, 1))
    x = conv(x, w5, b5, 0)
    B, H, W, C = x.shape
    return x.reshape(B, H * W, C)


if __name__ == "__main__":
    root = jax.random.PRNGKey(0)
    k_params, k_x = jax.random.split(root)

    params = init_params(k_params)
    # PyTorch-style NCHW input: batch=2, channels=3, spatial 16x16.
    x = jax.random.normal(k_x, (2, 3, 16, 16), jnp.float32)

    out = forward_pallas(x, params)
    out = jax.block_until_ready(out)

    ref = forward_reference(x, params)
    assert out.shape == (2, 4, 4), out.shape
    assert jnp.allclose(out, ref, rtol=2e-4, atol=2e-4), (
        float(jnp.max(jnp.abs(out - ref))))

    print("KERNEL_OK")
</pallas_src>

<mosaic_0001>
module attributes {stable_mosaic.version = 11 : i64} {
  func.func @_detector_kernel(%arg0: i32, %arg1: memref<1x324x3xf32, #tpu.memory_space<vmem>>, %arg2: memref<3x3x3x32xf32, #tpu.memory_space<vmem>>, %arg3: memref<1x32xf32, #tpu.memory_space<vmem>>, %arg4: memref<3x3x32x64xf32, #tpu.memory_space<vmem>>, %arg5: memref<1x64xf32, #tpu.memory_space<vmem>>, %arg6: memref<3x3x64x128xf32, #tpu.memory_space<vmem>>, %arg7: memref<1x128xf32, #tpu.memory_space<vmem>>, %arg8: memref<3x3x128x128xf32, #tpu.memory_space<vmem>>, %arg9: memref<1x128xf32, #tpu.memory_space<vmem>>, %arg10: memref<128x4xf32, #tpu.memory_space<vmem>>, %arg11: memref<1x4xf32, #tpu.memory_space<vmem>>, %arg12: memref<1x4x4xf32, #tpu.memory_space<vmem>>, %arg13: memref<100x32xf32, #tpu.memory_space<vmem>>, %arg14: memref<36x64xf32, #tpu.memory_space<vmem>>, %arg15: memref<16x128xf32, #tpu.memory_space<vmem>>, %arg16: memref<267x32xf32, #tpu.memory_space<vmem>>, %arg17: memref<67x64xf32, #tpu.memory_space<vmem>>, %arg18: memref<15x128xf32, #tpu.memory_space<vmem>>) attributes {dimension_semantics = [#tpu.dimension_semantics<parallel>], iteration_bounds = array<i64: 2>, scalar_prefetch = 0 : i64, scratch_operands = 6 : i64, tpu.core_type = #tpu.core_type<tc>, window_params = [{transform_indices = @transform_0, window_bounds = array<i64: 1, 324, 3>}, {pipeline_mode = #tpu.pipeline_mode<synchronous>, transform_indices = @transform_1, window_bounds = array<i64: 3, 3, 3, 32>}, {pipeline_mode = #tpu.pipeline_mode<synchronous>, transform_indices = @transform_2, window_bounds = array<i64: 1, 32>}, {pipeline_mode = #tpu.pipeline_mode<synchronous>, transform_indices = @transform_3, window_bounds = array<i64: 3, 3, 32, 64>}, {pipeline_mode = #tpu.pipeline_mode<synchronous>, transform_indices = @transform_4, window_bounds = array<i64: 1, 64>}, {pipeline_mode = #tpu.pipeline_mode<synchronous>, transform_indices = @transform_5, window_bounds = array<i64: 3, 3, 64, 128>}, {pipeline_mode = #tpu.pipeline_mode<synchronous>, transform_indices = @transform_6, window_bounds = array<i64: 1, 128>}, {pipeline_mode = #tpu.pipeline_mode<synchronous>, transform_indices = @transform_7, window_bounds = array<i64: 3, 3, 128, 128>}, {pipeline_mode = #tpu.pipeline_mode<synchronous>, transform_indices = @transform_8, window_bounds = array<i64: 1, 128>}, {pipeline_mode = #tpu.pipeline_mode<synchronous>, transform_indices = @transform_9, window_bounds = array<i64: 128, 4>}, {pipeline_mode = #tpu.pipeline_mode<synchronous>, transform_indices = @transform_10, window_bounds = array<i64: 1, 4>}, {transform_indices = @transform_11, window_bounds = array<i64: 1, 4, 4>}]} {
    %cst = arith.constant 0.000000e+00 : f32
    %0 = vector.broadcast %cst : f32 to vector<100x32xf32>
    %c0 = arith.constant 0 : index
    %c0_0 = arith.constant 0 : index
    %1 = vector.load %arg13[%c0, %c0_0] : memref<100x32xf32, #tpu.memory_space<vmem>>, vector<100x32xf32>
    tpu.vector_store %arg13[%c0, %c0_0], %0 {strides = array<i32>} : memref<100x32xf32, #tpu.memory_space<vmem>>, vector<100x32xf32>,
    %cst_1 = arith.constant 0.000000e+00 : f32
    %2 = vector.broadcast %cst_1 : f32 to vector<36x64xf32>
    %c0_2 = arith.constant 0 : index
    %c0_3 = arith.constant 0 : index
    %3 = vector.load %arg14[%c0_2, %c0_3] : memref<36x64xf32, #tpu.memory_space<vmem>>, vector<36x64xf32>
    tpu.vector_store %arg14[%c0_2, %c0_3], %2 {strides = array<i32>} : memref<36x64xf32, #tpu.memory_space<vmem>>, vector<36x64xf32>,
    %cst_4 = arith.constant 0.000000e+00 : f32
    %4 = vector.broadcast %cst_4 : f32 to vector<16x128xf32>
    %c0_5 = arith.constant 0 : index
    %c0_6 = arith.constant 0 : index
    %5 = vector.load %arg15[%c0_5, %c0_6] : memref<16x128xf32, #tpu.memory_space<vmem>>, vector<16x128xf32>
    tpu.vector_store %arg15[%c0_5, %c0_6], %4 {strides = array<i32>} : memref<16x128xf32, #tpu.memory_space<vmem>>, vector<16x128xf32>,
    %cst_7 = arith.constant 0.000000e+00 : f32
    %6 = vector.broadcast %cst_7 : f32 to vector<286x32xf32>
    %c0_8 = arith.constant 0 : index
    %c0_9 = arith.constant 0 : index
    %c0_10 = arith.constant 0 : index
    %7 = vector.load %arg1[%c0_8, %c0_9, %c0_10] : memref<1x324x3xf32, #tpu.memory_space<vmem>>, vector<1x286x3xf32>
    %8 = vector.shape_cast %7 : vector<1x286x3xf32> to vector<286x3xf32>
    %c0_11 = arith.constant 0 : index
    %c0_12 = arith.constant 0 : index
    %c0_13 = arith.constant 0 : index
    %c0_14 = arith.constant 0 : index
    %9 = vector.load %arg2[%c0_11, %c0_12, %c0_13, %c0_14] : memref<3x3x3x32xf32, #tpu.memory_space<vmem>>, vector<1x1x3x32xf32>
    %10 = vector.shape_cast %9 : vector<1x1x3x32xf32> to vector<3x32xf32>
    %cst_15 = arith.constant dense<0.000000e+00> : vector<286x32xf32>
    %11 = tpu.matmul %8, %10, %cst_15 {dimension_numbers = #tpu.dot_dimension_numbers<[1], [0], [0], [1], [0, 0, 1, 1], [], []>} : vector<286x3xf32>, vector<3x32xf32>, vector<286x32xf32> -> vector<286x32xf32>
    %12 = arith.addf %6, %11 : vector<286x32xf32>
    %c0_16 = arith.constant 0 : index
    %c1 = arith.constant 1 : index
    %c0_17 = arith.constant 0 : index
    %13 = vector.load %arg1[%c0_16, %c1, %c0_17] : memref<1x324x3xf32, #tpu.memory_space<vmem>>, vector<1x286x3xf32>
    %14 = vector.shape_cast %13 : vector<1x286x3xf32> to vector<286x3xf32>
    %c0_18 = arith.constant 0 : index
    %c1_19 = arith.constant 1 : index
    %c0_20 = arith.constant 0 : index
    %c0_21 = arith.constant 0 : index
    %15 = vector.load %arg2[%c0_18, %c1_19, %c0_20, %c0_21] : memref<3x3x3x32xf32, #tpu.memory_space<vmem>>, vector<1x1x3x32xf32>
    %16 = vector.shape_cast %15 : vector<1x1x3x32xf32> to vector<3x32xf32>
    %cst_22 = arith.constant dense<0.000000e+00> : vector<286x32xf32>
    %17 = tpu.matmul %14, %16, %cst_22 {dimension_numbers = #tpu.dot_dimension_numbers<[1], [0], [0], [1], [0, 0, 1, 1], [], []>} : vector<286x3xf32>, vector<3x32xf32>, vector<286x32xf32> -> vector<286x32xf32>
    %18 = arith.addf %12, %17 : vector<286x32xf32>
    %c0_23 = arith.constant 0 : index
    %c2 = arith.constant 2 : index
    %c0_24 = arith.constant 0 : index
    %19 = vector.load %arg1[%c0_23, %c2, %c0_24] : memref<1x324x3xf32, #tpu.memory_space<vmem>>, vector<1x286x3xf32>
    %20 = vector.shape_cast %19 : vector<1x286x3xf32> to vector<286x3xf32>
    %c0_25 = arith.constant 0 : index
    %c2_26 = arith.constant 2 : index
    %c0_27 = arith.constant 0 : index
    %c0_28 = arith.constant 0 : index
    %21 = vector.load %arg2[%c0_25, %c2_26, %c0_27, %c0_28] : memref<3x3x3x32xf32, #tpu.memory_space<vmem>>, vector<1x1x3x32xf32>
    %22 = vector.shape_cast %21 : vector<1x1x3x32xf32> to vector<3x32xf32>
    %cst_29 = arith.constant dense<0.000000e+00> : vector<286x32xf32>
    %23 = tpu.matmul %20, %22, %cst_29 {dimension_numbers = #tpu.dot_dimension_numbers<[1], [0], [0], [1], [0, 0, 1, 1], [], []>} : vector<286x3xf32>, vector<3x32xf32>, vector<286x32xf32> -> vector<286x32xf32>
    %24 = arith.addf %18, %23 : vector<286x32xf32>
    %c0_30 = arith.constant 0 : index
    %c18 = arith.constant 18 : index
    %c0_31 = arith.constant 0 : index
    %25 = vector.load %arg1[%c0_30, %c18, %c0_31] : memref<1x324x3xf32, #tpu.memory_space<vmem>>, vector<1x286x3xf32>
    %26 = vector.shape_cast %25 : vector<1x286x3xf32> to vector<286x3xf32>
    %c1_32 = arith.constant 1 : index
    %c0_33 = arith.constant 0 : index
    %c0_34 = arith.constant 0 : index
    %c0_35 = arith.constant 0 : index
    %27 = vector.load %arg2[%c1_32, %c0_33, %c0_34, %c0_35] : memref<3x3x3x32xf32, #tpu.memory_space<vmem>>, vector<1x1x3x32xf32>
    %28 = vector.shape_cast %27 : vector<1x1x3x32xf32> to vector<3x32xf32>
    %cst_36 = arith.constant dense<0.000000e+00> : vector<286x32xf32>
    %29 = tpu.matmul %26, %28, %cst_36 {dimension_numbers = #tpu.dot_dimension_numbers<[1], [0], [0], [1], [0, 0, 1, 1], [], []>} : vector<286x3xf32>, vector<3x32xf32>, vector<286x32xf32> -> vector<286x32xf32>
    %30 = arith.addf %24, %29 : vector<286x32xf32>
    %c0_37 = arith.constant 0 : index
    %c19 = arith.constant 19 : index
    %c0_38 = arith.constant 0 : index
    %31 = vector.load %arg1[%c0_37, %c19, %c0_38] : memref<1x324x3xf32, #tpu.memory_space<vmem>>, vector<1x286x3xf32>
    %32 = vector.shape_cast %31 : vector<1x286x3xf32> to vector<286x3xf32>
    %c1_39 = arith.constant 1 : index
    %c1_40 = arith.constant 1 : index
    %c0_41 = arith.constant 0 : index
    %c0_42 = arith.constant 0 : index
    %33 = vector.load %arg2[%c1_39, %c1_40, %c0_41, %c0_42] : memref<3x3x3x32xf32, #tpu.memory_space<vmem>>, vector<1x1x3x32xf32>
    %34 = vector.shape_cast %33 : vector<1x1x3x32xf32> to vector<3x32xf32>
    %cst_43 = arith.constant dense<0.000000e+00> : vector<286x32xf32>
    %35 = tpu.matmul %32, %34, %cst_43 {dimension_numbers = #tpu.dot_dimension_numbers<[1], [0], [0], [1], [0, 0, 1, 1], [], []>} : vector<286x3xf32>, vector<3x32xf32>, vector<286x32xf32> -> vector<286x32xf32>
    %36 = arith.addf %30, %35 : vector<286x32xf32>
    %c0_44 = arith.constant 0 : index
    %c20 = arith.constant 20 : index
    %c0_45 = arith.constant 0 : index
    %37 = vector.load %arg1[%c0_44, %c20, %c0_45] : memref<1x324x3xf32, #tpu.memory_space<vmem>>, vector<1x286x3xf32>
    %38 = vector.shape_cast %37 : vector<1x286x3xf32> to vector<286x3xf32>
    %c1_46 = arith.constant 1 : index
    %c2_47 = arith.constant 2 : index
    %c0_48 = arith.constant 0 : index
    %c0_49 = arith.constant 0 : index
    %39 = vector.load %arg2[%c1_46, %c2_47, %c0_48, %c0_49] : memref<3x3x3x32xf32, #tpu.memory_space<vmem>>, vector<1x1x3x32xf32>
    %40 = vector.shape_cast %39 : vector<1x1x3x32xf32> to vector<3x32xf32>
    %cst_50 = arith.constant dense<0.000000e+00> : vector<286x32xf32>
    %41 = tpu.matmul %38, %40, %cst_50 {dimension_numbers = #tpu.dot_dimension_numbers<[1], [0], [0], [1], [0, 0, 1, 1], [], []>} : vector<286x3xf32>, vector<3x32xf32>, vector<286x32xf32> -> vector<286x32xf32>
    %42 = arith.addf %36, %41 : vector<286x32xf32>
    %c0_51 = arith.constant 0 : index
    %c36 = arith.constant 36 : index
    %c0_52 = arith.constant 0 : index
    %43 = vector.load %arg1[%c0_51, %c36, %c0_52] : memref<1x324x3xf32, #tpu.memory_space<vmem>>, vector<1x286x3xf32>
    %44 = vector.shape_cast %43 : vector<1x286x3xf32> to vector<286x3xf32>
    %c2_53 = arith.constant 2 : index
    %c0_54 = arith.constant 0 : index
    %c0_55 = arith.constant 0 : index
    %c0_56 = arith.constant 0 : index
    %45 = vector.load %arg2[%c2_53, %c0_54, %c0_55, %c0_56] : memref<3x3x3x32xf32, #tpu.memory_space<vmem>>, vector<1x1x3x32xf32>
    %46 = vector.shape_cast %45 : vector<1x1x3x32xf32> to vector<3x32xf32>
    %cst_57 = arith.constant dense<0.000000e+00> : vector<286x32xf32>
    %47 = tpu.matmul %44, %46, %cst_57 {dimension_numbers = #tpu.dot_dimension_numbers<[1], [0], [0], [1], [0, 0, 1, 1], [], []>} : vector<286x3xf32>, vector<3x32xf32>, vector<286x32xf32> -> vector<286x32xf32>
    %48 = arith.addf %42, %47 : vector<286x32xf32>
    %c0_58 = arith.constant 0 : index
    %c37 = arith.constant 37 : index
    %c0_59 = arith.constant 0 : index
    %49 = vector.load %arg1[%c0_58, %c37, %c0_59] : memref<1x324x3xf32, #tpu.memory_space<vmem>>, vector<1x286x3xf32>
    %50 = vector.shape_cast %49 : vector<1x286x3xf32> to vector<286x3xf32>
    %c2_60 = arith.constant 2 : index
    %c1_61 = arith.constant 1 : index
    %c0_62 = arith.constant 0 : index
    %c0_63 = arith.constant 0 : index
    %51 = vector.load %arg2[%c2_60, %c1_61, %c0_62, %c0_63] : memref<3x3x3x32xf32, #tpu.memory_space<vmem>>, vector<1x1x3x32xf32>
    %52 = vector.shape_cast %51 : vector<1x1x3x32xf32> to vector<3x32xf32>
    %cst_64 = arith.constant dense<0.000000e+00> : vector<286x32xf32>
    %53 = tpu.matmul %50, %52, %cst_64 {dimension_numbers = #tpu.dot_dimension_numbers<[1], [0], [0], [1], [0, 0, 1, 1], [], []>} : vector<286x3xf32>, vector<3x32xf32>, vector<286x32xf32> -> vector<286x32xf32>
    %54 = arith.addf %48, %53 : vector<286x32xf32>
    %c0_65 = arith.constant 0 : index
    %c38 = arith.constant 38 : index
    %c0_66 = arith.constant 0 : index
    %55 = vector.load %arg1[%c0_65, %c38, %c0_66] : memref<1x324x3xf32, #tpu.memory_space<vmem>>, vector<1x286x3xf32>
    %56 = vector.shape_cast %55 : vector<1x286x3xf32> to vector<286x3xf32>
    %c2_67 = arith.constant 2 : index
    %c2_68 = arith.constant 2 : index
    %c0_69 = arith.constant 0 : index
    %c0_70 = arith.constant 0 : index
    %57 = vector.load %arg2[%c2_67, %c2_68, %c0_69, %c0_70] : memref<3x3x3x32xf32, #tpu.memory_space<vmem>>, vector<1x1x3x32xf32>
    %58 = vector.shape_cast %57 : vector<1x1x3x32xf32> to vector<3x32xf32>
    %cst_71 = arith.constant dense<0.000000e+00> : vector<286x32xf32>
    %59 = tpu.matmul %56, %58, %cst_71 {dimension_numbers = #tpu.dot_dimension_numbers<[1], [0], [0], [1], [0, 0, 1, 1], [], []>} : vector<286x3xf32>, vector<3x32xf32>, vector<286x32xf32> -> vector<286x32xf32>
    %60 = arith.addf %54, %59 : vector<286x32xf32>
    %c0_72 = arith.constant 0 : index
    %c0_73 = arith.constant 0 : index
    %61 = vector.load %arg3[%c0_72, %c0_73] : memref<1x32xf32, #tpu.memory_space<vmem>>, vector<1x32xf32>
    %62 = vector.broadcast %61 : vector<1x32xf32> to vector<286x32xf32>
    %63 = arith.addf %60, %62 : vector<286x32xf32>
    %cst_74 = arith.constant 0.000000e+00 : f32
    %64 = vector.broadcast %cst_74 : f32 to vector<286x32xf32>
    %65 = arith.maximumf %63, %64 : vector<286x32xf32>
    %66 = vector.extract_strided_slice %65 {offsets = [0, 0], sizes = [285, 32], strides = [1, 1]} : vector<286x32xf32> to vector<285x32xf32>
    %67 = vector.extract_strided_slice %65 {offsets = [1, 0], sizes = [285, 32], strides = [1, 1]} : vector<286x32xf32> to vector<285x32xf32>
    %68 = arith.maximumf %66, %67 : vector<285x32xf32>
    %69 = vector.extract_strided_slice %68 {offsets = [0, 0], sizes = [267, 32], strides = [1, 1]} : vector<285x32xf32> to vector<267x32xf32>
    %70 = vector.extract_strided_slice %68 {offsets = [18, 0], sizes = [267, 32], strides = [1, 1]} : vector<285x32xf32> to vector<267x32xf32>
    %71 = arith.maximumf %69, %70 : vector<267x32xf32>
    %c0_75 = arith.constant 0 : index
    %c0_76 = arith.constant 0 : index
    %72 = vector.load %arg16[%c0_75, %c0_76] : memref<267x32xf32, #tpu.memory_space<vmem>>, vector<267x32xf32>
    tpu.vector_store %arg16[%c0_75, %c0_76], %71 {strides = array<i32>} : memref<267x32xf32, #tpu.memory_space<vmem>>, vector<267x32xf32>,
    %c0_77 = arith.constant 0 : index
    %c0_78 = arith.constant 0 : index
    %73 = tpu.strided_load %arg16[%c0_77, %c0_78] {strides = array<i32: 2, 1>} : memref<267x32xf32, #tpu.memory_space<vmem>>, vector<8x32xf32>
    %c11 = arith.constant 11 : index
    %c0_79 = arith.constant 0 : index
    %74 = vector.load %arg13[%c11, %c0_79] : memref<100x32xf32, #tpu.memory_space<vmem>>, vector<8x32xf32>
    tpu.vector_store %arg13[%c11, %c0_79], %73 {strides = array<i32>} : memref<100x32xf32, #tpu.memory_space<vmem>>, vector<8x32xf32>,
    %c36_80 = arith.constant 36 : index
    %c0_81 = arith.constant 0 : index
    %75 = tpu.strided_load %arg16[%c36_80, %c0_81] {strides = array<i32: 2, 1>} : memref<267x32xf32, #tpu.memory_space<vmem>>, vector<8x32xf32>
    %c21 = arith.constant 21 : index
    %c0_82 = arith.constant 0 : index
    %76 = vector.load %arg13[%c21, %c0_82] : memref<100x32xf32, #tpu.memory_space<vmem>>, vector<8x32xf32>
    tpu.vector_store %arg13[%c21, %c0_82], %75 {strides = array<i32>} : memref<100x32xf32, #tpu.memory_space<vmem>>, vector<8x32xf32>,
    %c72 = arith.constant 72 : index
    %c0_83 = arith.constant 0 : index
    %77 = tpu.strided_load %arg16[%c72, %c0_83] {strides = array<i32: 2, 1>} : memref<267x32xf32, #tpu.memory_space<vmem>>, vector<8x32xf32>
    %c31 = arith.constant 31 : index
    %c0_84 = arith.constant 0 : index
    %78 = vector.load %arg13[%c31, %c0_84] : memref<100x32xf32, #tpu.memory_space<vmem>>, vector<8x32xf32>
    tpu.vector_store %arg13[%c31, %c0_84], %77 {strides = array<i32>} : memref<100x32xf32, #tpu.memory_space<vmem>>, vector<8x32xf32>,
    %c108 = arith.constant 108 : index
    %c0_85 = arith.constant 0 : index
    %79 = tpu.strided_load %arg16[%c108, %c0_85] {strides = array<i32: 2, 1>} : memref<267x32xf32, #tpu.memory_space<vmem>>, vector<8x32xf32>
    %c41 = arith.constant 41 : index
    %c0_86 = arith.constant 0 : index
    %80 = vector.load %arg13[%c41, %c0_86] : memref<100x32xf32, #tpu.memory_space<vmem>>, vector<8x32xf32>
    tpu.vector_store %arg13[%c41, %c0_86], %79 {strides = array<i32>} : memref<100x32xf32, #tpu.memory_space<vmem>>, vector<8x32xf32>,
    %c144 = arith.constant 144 : index
    %c0_87 = arith.constant 0 : index
    %81 = tpu.strided_load %arg16[%c144, %c0_87] {strides = array<i32: 2, 1>} : memref<267x32xf32, #tpu.memory_space<vmem>>, vector<8x32xf32>
    %c51 = arith.constant 51 : index
    %c0_88 = arith.constant 0 : index
    %82 = vector.load %arg13[%c51, %c0_88] : memref<100x32xf32, #tpu.memory_space<vmem>>, vector<8x32xf32>
    tpu.vector_store %arg13[%c51, %c0_88], %81 {strides = array<i32>} : memref<100x32xf32, #tpu.memory_space<vmem>>, vector<8x32xf32>,
    %c180 = arith.constant 180 : index
    %c0_89 = arith.constant 0 : index
    %83 = tpu.strided_load %arg16[%c180, %c0_89] {strides = array<i32: 2, 1>} : memref<267x32xf32, #tpu.memory_space<vmem>>, vector<8x32xf32>
    %c61 = arith.constant 61 : index
    %c0_90 = arith.constant 0 : index
    %84 = vector.load %arg13[%c61, %c0_90] : memref<100x32xf32, #tpu.memory_space<vmem>>, vector<8x32xf32>
    tpu.vector_store %arg13[%c61, %c0_90], %83 {strides = array<i32>} : memref<100x32xf32, #tpu.memory_space<vmem>>, vector<8x32xf32>,
    %c216 = arith.constant 216 : index
    %c0_91 = arith.constant 0 : index
    %85 = tpu.strided_load %arg16[%c216, %c0_91] {strides = array<i32: 2, 1>} : memref<267x32xf32, #tpu.memory_space<vmem>>, vector<8x32xf32>
    %c71 = arith.constant 71 : index
    %c0_92 = arith.constant 0 : index
    %86 = vector.load %arg13[%c71, %c0_92] : memref<100x32xf32, #tpu.memory_space<vmem>>, vector<8x32xf32>
    tpu.vector_store %arg13[%c71, %c0_92], %85 {strides = array<i32>} : memref<100x32xf32, #tpu.memory_space<vmem>>, vector<8x32xf32>,
    %c252 = arith.constant 252 : index
    %c0_93 = arith.constant 0 : index
    %87 = tpu.strided_load %arg16[%c252, %c0_93] {strides = array<i32: 2, 1>} : memref<267x32xf32, #tpu.memory_space<vmem>>, vector<8x32xf32>
    %c81 = arith.constant 81 : index
    %c0_94 = arith.constant 0 : index
    %88 = vector.load %arg13[%c81, %c0_94] : memref<100x32xf32, #tpu.memory_space<vmem>>, vector<8x32xf32>
    tpu.vector_store %arg13[%c81, %c0_94], %87 {strides = array<i32>} : memref<100x32xf32, #tpu.memory_space<vmem>>, vector<8x32xf32>,
    %cst_95 = arith.constant 0.000000e+00 : f32
    %89 = vector.broadcast %cst_95 : f32 to vector<78x64xf32>
    %c0_96 = arith.constant 0 : index
    %c0_97 = arith.constant 0 : index
    %90 = vector.load %arg13[%c0_96, %c0_97] : memref<100x32xf32, #tpu.memory_space<vmem>>, vector<78x32xf32>
    %c0_98 = arith.constant 0 : index
    %c0_99 = arith.constant 0 : index
    %c0_100 = arith.constant 0 : index
    %c0_101 = arith.constant 0 : index
    %91 = vector.load %arg4[%c0_98, %c0_99, %c0_100, %c0_101] : memref<3x3x32x64xf32, #tpu.memory_space<vmem>>, vector<1x1x32x64xf32>
    %92 = vector.shape_cast %91 : vector<1x1x32x64xf32> to vector<32x64xf32>
    %cst_102 = arith.constant dense<0.000000e+00> : vector<78x64xf32>
    %93 = tpu.matmul %90, %92, %cst_102 {dimension_numbers = #tpu.dot_dimension_numbers<[1], [0], [0], [1], [0, 0, 1, 1], [], []>} : vector<78x32xf32>, vector<32x64xf32>, vector<78x64xf32> -> vector<78x64xf32>
    %94 = arith.addf %89, %93 : vector<78x64xf32>
    %c1_103 = arith.constant 1 : index
    %c0_104 = arith.constant 0 : index
    %95 = vector.load %arg13[%c1_103, %c0_104] : memref<100x32xf32, #tpu.memory_space<vmem>>, vector<78x32xf32>
    %c0_105 = arith.constant 0 : index
    %c1_106 = arith.constant 1 : index
    %c0_107 = arith.constant 0 : index
    %c0_108 = arith.constant 0 : index
    %96 = vector.load %arg4[%c0_105, %c1_106, %c0_107, %c0_108] : memref<3x3x32x64xf32, #tpu.memory_space<vmem>>, vector<1x1x32x64xf32>
    %97 = vector.shape_cast %96 : vector<1x1x32x64xf32> to vector<32x64xf32>
    %cst_109 = arith.constant dense<0.000000e+00> : vector<78x64xf32>
    %98 = tpu.matmul %95, %97, %cst_109 {dimension_numbers = #tpu.dot_dimension_numbers<[1], [0], [0], [1], [0, 0, 1, 1], [], []>} : vector<78x32xf32>, vector<32x64xf32>, vector<78x64xf32> -> vector<78x64xf32>
    %99 = arith.addf %94, %98 : vector<78x64xf32>
    %c2_110 = arith.constant 2 : index
    %c0_111 = arith.constant 0 : index
    %100 = vector.load %arg13[%c2_110, %c0_111] : memref<100x32xf32, #tpu.memory_space<vmem>>, vector<78x32xf32>
    %c0_112 = arith.constant 0 : index
    %c2_113 = arith.constant 2 : index
    %c0_114 = arith.constant 0 : index
    %c0_115 = arith.constant 0 : index
    %101 = vector.load %arg4[%c0_112, %c2_113, %c0_114, %c0_115] : memref<3x3x32x64xf32, #tpu.memory_space<vmem>>, vector<1x1x32x64xf32>
    %102 = vector.shape_cast %101 : vector<1x1x32x64xf32> to vector<32x64xf32>
    %cst_116 = arith.constant dense<0.000000e+00> : vector<78x64xf32>
    %103 = tpu.matmul %100, %102, %cst_116 {dimension_numbers = #tpu.dot_dimension_numbers<[1], [0], [0], [1], [0, 0, 1, 1], [], []>} : vector<78x32xf32>, vector<32x64xf32>, vector<78x64xf32> -> vector<78x64xf32>
    %104 = arith.addf %99, %103 : vector<78x64xf32>
    %c10 = arith.constant 10 : index
    %c0_117 = arith.constant 0 : index
    %105 = vector.load %arg13[%c10, %c0_117] : memref<100x32xf32, #tpu.memory_space<vmem>>, vector<78x32xf32>
    %c1_118 = arith.constant 1 : index
    %c0_119 = arith.constant 0 : index
    %c0_120 = arith.constant 0 : index
    %c0_121 = arith.constant 0 : index
    %106 = vector.load %arg4[%c1_118, %c0_119, %c0_120, %c0_121] : memref<3x3x32x64xf32, #tpu.memory_space<vmem>>, vector<1x1x32x64xf32>
    %107 = vector.shape_cast %106 : vector<1x1x32x64xf32> to vector<32x64xf32>
    %cst_122 = arith.constant dense<0.000000e+00> : vector<78x64xf32>
    %108 = tpu.matmul %105, %107, %cst_122 {dimension_numbers = #tpu.dot_dimension_numbers<[1], [0], [0], [1], [0, 0, 1, 1], [], []>} : vector<78x32xf32>, vector<32x64xf32>, vector<78x64xf32> -> vector<78x64xf32>
    %109 = arith.addf %104, %108 : vector<78x64xf32>
    %c11_123 = arith.constant 11 : index
    %c0_124 = arith.constant 0 : index
    %110 = vector.load %arg13[%c11_123, %c0_124] : memref<100x32xf32, #tpu.memory_space<vmem>>, vector<78x32xf32>
    %c1_125 = arith.constant 1 : index
    %c1_126 = arith.constant 1 : index
    %c0_127 = arith.constant 0 : index
    %c0_128 = arith.constant 0 : index
    %111 = vector.load %arg4[%c1_125, %c1_126, %c0_127, %c0_128] : memref<3x3x32x64xf32, #tpu.memory_space<vmem>>, vector<1x1x32x64xf32>
    %112 = vector.shape_cast %111 : vector<1x1x32x64xf32> to vector<32x64xf32>
    %cst_129 = arith.constant dense<0.000000e+00> : vector<78x64xf32>
    %113 = tpu.matmul %110, %112, %cst_129 {dimension_numbers = #tpu.dot_dimension_numbers<[1], [0], [0], [1], [0, 0, 1, 1], [], []>} : vector<78x32xf32>, vector<32x64xf32>, vector<78x64xf32> -> vector<78x64xf32>
    %114 = arith.addf %109, %113 : vector<78x64xf32>
    %c12 = arith.constant 12 : index
    %c0_130 = arith.constant 0 : index
    %115 = vector.load %arg13[%c12, %c0_130] : memref<100x32xf32, #tpu.memory_space<vmem>>, vector<78x32xf32>
    %c1_131 = arith.constant 1 : index
    %c2_132 = arith.constant 2 : index
    %c0_133 = arith.constant 0 : index
    %c0_134 = arith.constant 0 : index
    %116 = vector.load %arg4[%c1_131, %c2_132, %c0_133, %c0_134] : memref<3x3x32x64xf32, #tpu.memory_space<vmem>>, vector<1x1x32x64xf32>
    %117 = vector.shape_cast %116 : vector<1x1x32x64xf32> to vector<32x64xf32>
    %cst_135 = arith.constant dense<0.000000e+00> : vector<78x64xf32>
    %118 = tpu.matmul %115, %117, %cst_135 {dimension_numbers = #tpu.dot_dimension_numbers<[1], [0], [0], [1], [0, 0, 1, 1], [], []>} : vector<78x32xf32>, vector<32x64xf32>, vector<78x64xf32> -> vector<78x64xf32>
    %119 = arith.addf %114, %118 : vector<78x64xf32>
    %c20_136 = arith.constant 20 : index
    %c0_137 = arith.constant 0 : index
    %120 = vector.load %arg13[%c20_136, %c0_137] : memref<100x32xf32, #tpu.memory_space<vmem>>, vector<78x32xf32>
    %c2_138 = arith.constant 2 : index
    %c0_139 = arith.constant 0 : index
    %c0_140 = arith.constant 0 : index
    %c0_141 = arith.constant 0 : index
    %121 = vector.load %arg4[%c2_138, %c0_139, %c0_140, %c0_141] : memref<3x3x32x64xf32, #tpu.memory_space<vmem>>, vector<1x1x32x64xf32>
    %122 = vector.shape_cast %121 : vector<1x1x32x64xf32> to vector<32x64xf32>
    %cst_142 = arith.constant dense<0.000000e+00> : vector<78x64xf32>
    %123 = tpu.matmul %120, %122, %cst_142 {dimension_numbers = #tpu.dot_dimension_numbers<[1], [0], [0], [1], [0, 0, 1, 1], [], []>} : vector<78x32xf32>, vector<32x64xf32>, vector<78x64xf32> -> vector<78x64xf32>
    %124 = arith.addf %119, %123 : vector<78x64xf32>
    %c21_143 = arith.constant 21 : index
    %c0_144 = arith.constant 0 : index
    %125 = vector.load %arg13[%c21_143, %c0_144] : memref<100x32xf32, #tpu.memory_space<vmem>>, vector<78x32xf32>
    %c2_145 = arith.constant 2 : index
    %c1_146 = arith.constant 1 : index
    %c0_147 = arith.constant 0 : index
    %c0_148 = arith.constant 0 : index
    %126 = vector.load %arg4[%c2_145, %c1_146, %c0_147, %c0_148] : memref<3x3x32x64xf32, #tpu.memory_space<vmem>>, vector<1x1x32x64xf32>
    %127 = vector.shape_cast %126 : vector<1x1x32x64xf32> to vector<32x64xf32>
    %cst_149 = arith.constant dense<0.000000e+00> : vector<78x64xf32>
    %128 = tpu.matmul %125, %127, %cst_149 {dimension_numbers = #tpu.dot_dimension_numbers<[1], [0], [0], [1], [0, 0, 1, 1], [], []>} : vector<78x32xf32>, vector<32x64xf32>, vector<78x64xf32> -> vector<78x64xf32>
    %129 = arith.addf %124, %128 : vector<78x64xf32>
    %c22 = arith.constant 22 : index
    %c0_150 = arith.constant 0 : index
    %130 = vector.load %arg13[%c22, %c0_150] : memref<100x32xf32, #tpu.memory_space<vmem>>, vector<78x32xf32>
    %c2_151 = arith.constant 2 : index
    %c2_152 = arith.constant 2 : index
    %c0_153 = arith.constant 0 : index
    %c0_154 = arith.constant 0 : index
    %131 = vector.load %arg4[%c2_151, %c2_152, %c0_153, %c0_154] : memref<3x3x32x64xf32, #tpu.memory_space<vmem>>, vector<1x1x32x64xf32>
    %132 = vector.shape_cast %131 : vector<1x1x32x64xf32> to vector<32x64xf32>
    %cst_155 = arith.constant dense<0.000000e+00> : vector<78x64xf32>
    %133 = tpu.matmul %130, %132, %cst_155 {dimension_numbers = #tpu.dot_dimension_numbers<[1], [0], [0], [1], [0, 0, 1, 1], [], []>} : vector<78x32xf32>, vector<32x64xf32>, vector<78x64xf32> -> vector<78x64xf32>
    %134 = arith.addf %129, %133 : vector<78x64xf32>
    %c0_156 = arith.constant 0 : index
    %c0_157 = arith.constant 0 : index
    %135 = vector.load %arg5[%c0_156, %c0_157] : memref<1x64xf32, #tpu.memory_space<vmem>>, vector<1x64xf32>
    %136 = vector.broadcast %135 : vector<1x64xf32> to vector<78x64xf32>
    %137 = arith.addf %134, %136 : vector<78x64xf32>
    %cst_158 = arith.constant 0.000000e+00 : f32
    %138 = vector.broadcast %cst_158 : f32 to vector<78x64xf32>
    %139 = arith.maximumf %137, %138 : vector<78x64xf32>
    %140 = vector.extract_strided_slice %139 {offsets = [0, 0], sizes = [77, 64], strides = [1, 1]} : vector<78x64xf32> to vector<77x64xf32>
    %141 = vector.extract_strided_slice %139 {offsets = [1, 0], sizes = [77, 64], strides = [1, 1]} : vector<78x64xf32> to vector<77x64xf32>
    %142 = arith.maximumf %140, %141 : vector<77x64xf32>
    %143 = vector.extract_strided_slice %142 {offsets = [0, 0], sizes = [67, 64], strides = [1, 1]} : vector<77x64xf32> to vector<67x64xf32>
    %144 = vector.extract_strided_slice %142 {offsets = [10, 0], sizes = [67, 64], strides = [1, 1]} : vector<77x64xf32> to vector<67x64xf32>
    %145 = arith.maximumf %143, %144 : vector<67x64xf32>
    %c0_159 = arith.constant 0 : index
    %c0_160 = arith.constant 0 : index
    %146 = vector.load %arg17[%c0_159, %c0_160] : memref<67x64xf32, #tpu.memory_space<vmem>>, vector<67x64xf32>
    tpu.vector_store %arg17[%c0_159, %c0_160], %145 {strides = array<i32>} : memref<67x64xf32, #tpu.memory_space<vmem>>, vector<67x64xf32>,
    %c0_161 = arith.constant 0 : index
    %c0_162 = arith.constant 0 : index
    %147 = tpu.strided_load %arg17[%c0_161, %c0_162] {strides = array<i32: 2, 1>} : memref<67x64xf32, #tpu.memory_space<vmem>>, vector<4x64xf32>
    %c7 = arith.constant 7 : index
    %c0_163 = arith.constant 0 : index
    %148 = vector.load %arg14[%c7, %c0_163] : memref<36x64xf32, #tpu.memory_space<vmem>>, vector<4x64xf32>
    tpu.vector_store %arg14[%c7, %c0_163], %147 {strides = array<i32>} : memref<36x64xf32, #tpu.memory_space<vmem>>, vector<4x64xf32>,
    %c20_164 = arith.constant 20 : index
    %c0_165 = arith.constant 0 : index
    %149 = tpu.strided_load %arg17[%c20_164, %c0_165] {strides = array<i32: 2, 1>} : memref<67x64xf32, #tpu.memory_space<vmem>>, vector<4x64xf32>
    %c13 = arith.constant 13 : index
    %c0_166 = arith.constant 0 : index
    %150 = vector.load %arg14[%c13, %c0_166] : memref<36x64xf32, #tpu.memory_space<vmem>>, vector<4x64xf32>
    tpu.vector_store %arg14[%c13, %c0_166], %149 {strides = array<i32>} : memref<36x64xf32, #tpu.memory_space<vmem>>, vector<4x64xf32>,
    %c40 = arith.constant 40 : index
    %c0_167 = arith.constant 0 : index
    %151 = tpu.strided_load %arg17[%c40, %c0_167] {strides = array<i32: 2, 1>} : memref<67x64xf32, #tpu.memory_space<vmem>>, vector<4x64xf32>
    %c19_168 = arith.constant 19 : index
    %c0_169 = arith.constant 0 : index
    %152 = vector.load %arg14[%c19_168, %c0_169] : memref<36x64xf32, #tpu.memory_space<vmem>>, vector<4x64xf32>
    tpu.vector_store %arg14[%c19_168, %c0_169], %151 {strides = array<i32>} : memref<36x64xf32, #tpu.memory_space<vmem>>, vector<4x64xf32>,
    %c60 = arith.constant 60 : index
    %c0_170 = arith.constant 0 : index
    %153 = tpu.strided_load %arg17[%c60, %c0_170] {strides = array<i32: 2, 1>} : memref<67x64xf32, #tpu.memory_space<vmem>>, vector<4x64xf32>
    %c25 = arith.constant 25 : index
    %c0_171 = arith.constant 0 : index
    %154 = vector.load %arg14[%c25, %c0_171] : memref<36x64xf32, #tpu.memory_space<vmem>>, vector<4x64xf32>
    tpu.vector_store %arg14[%c25, %c0_171], %153 {strides = array<i32>} : memref<36x64xf32, #tpu.memory_space<vmem>>, vector<4x64xf32>,
    %cst_172 = arith.constant 0.000000e+00 : f32
    %155 = vector.broadcast %cst_172 : f32 to vector<22x128xf32>
    %c0_173 = arith.constant 0 : index
    %c0_174 = arith.constant 0 : index
    %156 = vector.load %arg14[%c0_173, %c0_174] : memref<36x64xf32, #tpu.memory_space<vmem>>, vector<22x64xf32>
    %c0_175 = arith.constant 0 : index
    %c0_176 = arith.constant 0 : index
    %c0_177 = arith.constant 0 : index
    %c0_178 = arith.constant 0 : index
    %157 = vector.load %arg6[%c0_175, %c0_176, %c0_177, %c0_178] : memref<3x3x64x128xf32, #tpu.memory_space<vmem>>, vector<1x1x64x128xf32>
    %158 = vector.shape_cast %157 : vector<1x1x64x128xf32> to vector<64x128xf32>
    %cst_179 = arith.constant dense<0.000000e+00> : vector<22x128xf32>
    %159 = tpu.matmul %156, %158, %cst_179 {dimension_numbers = #tpu.dot_dimension_numbers<[1], [0], [0], [1], [0, 0, 1, 1], [], []>} : vector<22x64xf32>, vector<64x128xf32>, vector<22x128xf32> -> vector<22x128xf32>
    %160 = arith.addf %155, %159 : vector<22x128xf32>
    %c1_180 = arith.constant 1 : index
    %c0_181 = arith.constant 0 : index
    %161 = vector.load %arg14[%c1_180, %c0_181] : memref<36x64xf32, #tpu.memory_space<vmem>>, vector<22x64xf32>
    %c0_182 = arith.constant 0 : index
    %c1_183 = arith.constant 1 : index
    %c0_184 = arith.constant 0 : index
    %c0_185 = arith.constant 0 : index
    %162 = vector.load %arg6[%c0_182, %c1_183, %c0_184, %c0_185] : memref<3x3x64x128xf32, #tpu.memory_space<vmem>>, vector<1x1x64x128xf32>
    %163 = vector.shape_cast %162 : vector<1x1x64x128xf32> to vector<64x128xf32>
    %cst_186 = arith.constant dense<0.000000e+00> : vector<22x128xf32>
    %164 = tpu.matmul %161, %163, %cst_186 {dimension_numbers = #tpu.dot_dimension_numbers<[1], [0], [0], [1], [0, 0, 1, 1], [], []>} : vector<22x64xf32>, vector<64x128xf32>, vector<22x128xf32> -> vector<22x128xf32>
    %165 = arith.addf %160, %164 : vector<22x128xf32>
    %c2_187 = arith.constant 2 : index
    %c0_188 = arith.constant 0 : index
    %166 = vector.load %arg14[%c2_187, %c0_188] : memref<36x64xf32, #tpu.memory_space<vmem>>, vector<22x64xf32>
    %c0_189 = arith.constant 0 : index
    %c2_190 = arith.constant 2 : index
    %c0_191 = arith.constant 0 : index
    %c0_192 = arith.constant 0 : index
    %167 = vector.load %arg6[%c0_189, %c2_190, %c0_191, %c0_192] : memref<3x3x64x128xf32, #tpu.memory_space<vmem>>, vector<1x1x64x128xf32>
    %168 = vector.shape_cast %167 : vector<1x1x64x128xf32> to vector<64x128xf32>
    %cst_193 = arith.constant dense<0.000000e+00> : vector<22x128xf32>
    %169 = tpu.matmul %166, %168, %cst_193 {dimension_numbers = #tpu.dot_dimension_numbers<[1], [0], [0], [1], [0, 0, 1, 1], [], []>} : vector<22x64xf32>, vector<64x128xf32>, vector<22x128xf32> -> vector<22x128xf32>
    %170 = arith.addf %165, %169 : vector<22x128xf32>
    %c6 = arith.constant 6 : index
    %c0_194 = arith.constant 0 : index
    %171 = vector.load %arg14[%c6, %c0_194] : memref<36x64xf32, #tpu.memory_space<vmem>>, vector<22x64xf32>
    %c1_195 = arith.constant 1 : index
    %c0_196 = arith.constant 0 : index
    %c0_197 = arith.constant 0 : index
    %c0_198 = arith.constant 0 : index
    %172 = vector.load %arg6[%c1_195, %c0_196, %c0_197, %c0_198] : memref<3x3x64x128xf32, #tpu.memory_space<vmem>>, vector<1x1x64x128xf32>
    %173 = vector.shape_cast %172 : vector<1x1x64x128xf32> to vector<64x128xf32>
    %cst_199 = arith.constant dense<0.000000e+00> : vector<22x128xf32>
    %174 = tpu.matmul %171, %173, %cst_199 {dimension_numbers = #tpu.dot_dimension_numbers<[1], [0], [0], [1], [0, 0, 1, 1], [], []>} : vector<22x64xf32>, vector<64x128xf32>, vector<22x128xf32> -> vector<22x128xf32>
    %175 = arith.addf %170, %174 : vector<22x128xf32>
    %c7_200 = arith.constant 7 : index
    %c0_201 = arith.constant 0 : index
    %176 = vector.load %arg14[%c7_200, %c0_201] : memref<36x64xf32, #tpu.memory_space<vmem>>, vector<22x64xf32>
    %c1_202 = arith.constant 1 : index
    %c1_203 = arith.constant 1 : index
    %c0_204 = arith.constant 0 : index
    %c0_205 = arith.constant 0 : index
    %177 = vector.load %arg6[%c1_202, %c1_203, %c0_204, %c0_205] : memref<3x3x64x128xf32, #tpu.memory_space<vmem>>, vector<1x1x64x128xf32>
    %178 = vector.shape_cast %177 : vector<1x1x64x128xf32> to vector<64x128xf32>
    %cst_206 = arith.constant dense<0.000000e+00> : vector<22x128xf32>
    %179 = tpu.matmul %176, %178, %cst_206 {dimension_numbers = #tpu.dot_dimension_numbers<[1], [0], [0], [1], [0, 0, 1, 1], [], []>} : vector<22x64xf32>, vector<64x128xf32>, vector<22x128xf32> -> vector<22x128xf32>
    %180 = arith.addf %175, %179 : vector<22x128xf32>
    %c8 = arith.constant 8 : index
    %c0_207 = arith.constant 0 : index
    %181 = vector.load %arg14[%c8, %c0_207] : memref<36x64xf32, #tpu.memory_space<vmem>>, vector<22x64xf32>
    %c1_208 = arith.constant 1 : index
    %c2_209 = arith.constant 2 : index
    %c0_210 = arith.constant 0 : index
    %c0_211 = arith.constant 0 : index
    %182 = vector.load %arg6[%c1_208, %c2_209, %c0_210, %c0_211] : memref<3x3x64x128xf32, #tpu.memory_space<vmem>>, vector<1x1x64x128xf32>
    %183 = vector.shape_cast %182 : vector<1x1x64x128xf32> to vector<64x128xf32>
    %cst_212 = arith.constant dense<0.000000e+00> : vector<22x128xf32>
    %184 = tpu.matmul %181, %183, %cst_212 {dimension_numbers = #tpu.dot_dimension_numbers<[1], [0], [0], [1], [0, 0, 1, 1], [], []>} : vector<22x64xf32>, vector<64x128xf32>, vector<22x128xf32> -> vector<22x128xf32>
    %185 = arith.addf %180, %184 : vector<22x128xf32>
    %c12_213 = arith.constant 12 : index
    %c0_214 = arith.constant 0 : index
    %186 = vector.load %arg14[%c12_213, %c0_214] : memref<36x64xf32, #tpu.memory_space<vmem>>, vector<22x64xf32>
    %c2_215 = arith.constant 2 : index
    %c0_216 = arith.constant 0 : index
    %c0_217 = arith.constant 0 : index
    %c0_218 = arith.constant 0 : index
    %187 = vector.load %arg6[%c2_215, %c0_216, %c0_217, %c0_218] : memref<3x3x64x128xf32, #tpu.memory_space<vmem>>, vector<1x1x64x128xf32>
    %188 = vector.shape_cast %187 : vector<1x1x64x128xf32> to vector<64x128xf32>
    %cst_219 = arith.constant dense<0.000000e+00> : vector<22x128xf32>
    %189 = tpu.matmul %186, %188, %cst_219 {dimension_numbers = #tpu.dot_dimension_numbers<[1], [0], [0], [1], [0, 0, 1, 1], [], []>} : vector<22x64xf32>, vector<64x128xf32>, vector<22x128xf32> -> vector<22x128xf32>
    %190 = arith.addf %185, %189 : vector<22x128xf32>
    %c13_220 = arith.constant 13 : index
    %c0_221 = arith.constant 0 : index
    %191 = vector.load %arg14[%c13_220, %c0_221] : memref<36x64xf32, #tpu.memory_space<vmem>>, vector<22x64xf32>
    %c2_222 = arith.constant 2 : index
    %c1_223 = arith.constant 1 : index
    %c0_224 = arith.constant 0 : index
    %c0_225 = arith.constant 0 : index
    %192 = vector.load %arg6[%c2_222, %c1_223, %c0_224, %c0_225] : memref<3x3x64x128xf32, #tpu.memory_space<vmem>>, vector<1x1x64x128xf32>
    %193 = vector.shape_cast %192 : vector<1x1x64x128xf32> to vector<64x128xf32>
    %cst_226 = arith.constant dense<0.000000e+00> : vector<22x128xf32>
    %194 = tpu.matmul %191, %193, %cst_226 {dimension_numbers = #tpu.dot_dimension_numbers<[1], [0], [0], [1], [0, 0, 1, 1], [], []>} : vector<22x64xf32>, vector<64x128xf32>, vector<22x128xf32> -> vector<22x128xf32>
    %195 = arith.addf %190, %194 : vector<22x128xf32>
    %c14 = arith.constant 14 : index
    %c0_227 = arith.constant 0 : index
    %196 = vector.load %arg14[%c14, %c0_227] : memref<36x64xf32, #tpu.memory_space<vmem>>, vector<22x64xf32>
    %c2_228 = arith.constant 2 : index
    %c2_229 = arith.constant 2 : index
    %c0_230 = arith.constant 0 : index
    %c0_231 = arith.constant 0 : index
    %197 = vector.load %arg6[%c2_228, %c2_229, %c0_230, %c0_231] : memref<3x3x64x128xf32, #tpu.memory_space<vmem>>, vector<1x1x64x128xf32>
    %198 = vector.shape_cast %197 : vector<1x1x64x128xf32> to vector<64x128xf32>
    %cst_232 = arith.constant dense<0.000000e+00> : vector<22x128xf32>
    %199 = tpu.matmul %196, %198, %cst_232 {dimension_numbers = #tpu.dot_dimension_numbers<[1], [0], [0], [1], [0, 0, 1, 1], [], []>} : vector<22x64xf32>, vector<64x128xf32>, vector<22x128xf32> -> vector<22x128xf32>
    %200 = arith.addf %195, %199 : vector<22x128xf32>
    %c0_233 = arith.constant 0 : index
    %c0_234 = arith.constant 0 : index
    %201 = vector.load %arg7[%c0_233, %c0_234] : memref<1x128xf32, #tpu.memory_space<vmem>>, vector<1x128xf32>
    %202 = vector.broadcast %201 : vector<1x128xf32> to vector<22x128xf32>
    %203 = arith.addf %200, %202 : vector<22x128xf32>
    %cst_235 = arith.constant 0.000000e+00 : f32
    %204 = vector.broadcast %cst_235 : f32 to vector<22x128xf32>
    %205 = arith.maximumf %203, %204 : vector<22x128xf32>
    %206 = vector.extract_strided_slice %205 {offsets = [0, 0], sizes = [21, 128], strides = [1, 1]} : vector<22x128xf32> to vector<21x128xf32>
    %207 = vector.extract_strided_slice %205 {offsets = [1, 0], sizes = [21, 128], strides = [1, 1]} : vector<22x128xf32> to vector<21x128xf32>
    %208 = arith.maximumf %206, %207 : vector<21x128xf32>
    %209 = vector.extract_strided_slice %208 {offsets = [0, 0], sizes = [15, 128], strides = [1, 1]} : vector<21x128xf32> to vector<15x128xf32>
    %210 = vector.extract_strided_slice %208 {offsets = [6, 0], sizes = [15, 128], strides = [1, 1]} : vector<21x128xf32> to vector<15x128xf32>
    %211 = arith.maximumf %209, %210 : vector<15x128xf32>
    %c0_236 = arith.constant 0 : index
    %c0_237 = arith.constant 0 : index
    %212 = vector.load %arg18[%c0_236, %c0_237] : memref<15x128xf32, #tpu.memory_space<vmem>>, vector<15x128xf32>
    tpu.vector_store %arg18[%c0_236, %c0_237], %211 {strides = array<i32>} : memref<15x128xf32, #tpu.memory_space<vmem>>, vector<15x128xf32>,
    %c0_238 = arith.constant 0 : index
    %c0_239 = arith.constant 0 : index
    %213 = tpu.strided_load %arg18[%c0_238, %c0_239] {strides = array<i32: 2, 1>} : memref<15x128xf32, #tpu.memory_space<vmem>>, vector<2x128xf32>
    %c5 = arith.constant 5 : index
    %c0_240 = arith.constant 0 : index
    %214 = vector.load %arg15[%c5, %c0_240] : memref<16x128xf32, #tpu.memory_space<vmem>>, vector<2x128xf32>
    tpu.vector_store %arg15[%c5, %c0_240], %213 {strides = array<i32>} : memref<16x128xf32, #tpu.memory_space<vmem>>, vector<2x128xf32>,
    %c12_241 = arith.constant 12 : index
    %c0_242 = arith.constant 0 : index
    %215 = tpu.strided_load %arg18[%c12_241, %c0_242] {strides = array<i32: 2, 1>} : memref<15x128xf32, #tpu.memory_space<vmem>>, vector<2x128xf32>
    %c9 = arith.constant 9 : index
    %c0_243 = arith.constant 0 : index
    %216 = vector.load %arg15[%c9, %c0_243] : memref<16x128xf32, #tpu.memory_space<vmem>>, vector<2x128xf32>
    tpu.vector_store %arg15[%c9, %c0_243], %215 {strides = array<i32>} : memref<16x128xf32, #tpu.memory_space<vmem>>, vector<2x128xf32>,
    %cst_244 = arith.constant 0.000000e+00 : f32
    %217 = vector.broadcast %cst_244 : f32 to vector<6x128xf32>
    %c0_245 = arith.constant 0 : index
    %c0_246 = arith.constant 0 : index
    %218 = vector.load %arg15[%c0_245, %c0_246] : memref<16x128xf32, #tpu.memory_space<vmem>>, vector<6x128xf32>
    %c0_247 = arith.constant 0 : index
    %c0_248 = arith.constant 0 : index
    %c0_249 = arith.constant 0 : index
    %c0_250 = arith.constant 0 : index
    %219 = vector.load %arg8[%c0_247, %c0_248, %c0_249, %c0_250] : memref<3x3x128x128xf32, #tpu.memory_space<vmem>>, vector<1x1x128x128xf32>
    %220 = vector.shape_cast %219 : vector<1x1x128x128xf32> to vector<128x128xf32>
    %cst_251 = arith.constant dense<0.000000e+00> : vector<6x128xf32>
    %221 = tpu.matmul %218, %220, %cst_251 {dimension_numbers = #tpu.dot_dimension_numbers<[1], [0], [0], [1], [0, 0, 1, 1], [], []>} : vector<6x128xf32>, vector<128x128xf32>, vector<6x128xf32> -> vector<6x128xf32>
    %222 = arith.addf %217, %221 : vector<6x128xf32>
    %c1_252 = arith.constant 1 : index
    %c0_253 = arith.constant 0 : index
    %223 = vector.load %arg15[%c1_252, %c0_253] : memref<16x128xf32, #tpu.memory_space<vmem>>, vector<6x128xf32>
    %c0_254 = arith.constant 0 : index
    %c1_255 = arith.constant 1 : index
    %c0_256 = arith.constant 0 : index
    %c0_257 = arith.constant 0 : index
    %224 = vector.load %arg8[%c0_254, %c1_255, %c0_256, %c0_257] : memref<3x3x128x128xf32, #tpu.memory_space<vmem>>, vector<1x1x128x128xf32>
    %225 = vector.shape_cast %224 : vector<1x1x128x128xf32> to vector<128x128xf32>
    %cst_258 = arith.constant dense<0.000000e+00> : vector<6x128xf32>
    %226 = tpu.matmul %223, %225, %cst_258 {dimension_numbers = #tpu.dot_dimension_numbers<[1], [0], [0], [1], [0, 0, 1, 1], [], []>} : vector<6x128xf32>, vector<128x128xf32>, vector<6x128xf32> -> vector<6x128xf32>
    %227 = arith.addf %222, %226 : vector<6x128xf32>
    %c2_259 = arith.constant 2 : index
    %c0_260 = arith.constant 0 : index
    %228 = vector.load %arg15[%c2_259, %c0_260] : memref<16x128xf32, #tpu.memory_space<vmem>>, vector<6x128xf32>
    %c0_261 = arith.constant 0 : index
    %c2_262 = arith.constant 2 : index
    %c0_263 = arith.constant 0 : index
    %c0_264 = arith.constant 0 : index
    %229 = vector.load %arg8[%c0_261, %c2_262, %c0_263, %c0_264] : memref<3x3x128x128xf32, #tpu.memory_space<vmem>>, vector<1x1x128x128xf32>
    %230 = vector.shape_cast %229 : vector<1x1x128x128xf32> to vector<128x128xf32>
    %cst_265 = arith.constant dense<0.000000e+00> : vector<6x128xf32>
    %231 = tpu.matmul %228, %230, %cst_265 {dimension_numbers = #tpu.dot_dimension_numbers<[1], [0], [0], [1], [0, 0, 1, 1], [], []>} : vector<6x128xf32>, vector<128x128xf32>, vector<6x128xf32> -> vector<6x128xf32>
    %232 = arith.addf %227, %231 : vector<6x128xf32>
    %c4 = arith.constant 4 : index
    %c0_266 = arith.constant 0 : index
    %233 = vector.load %arg15[%c4, %c0_266] : memref<16x128xf32, #tpu.memory_space<vmem>>, vector<6x128xf32>
    %c1_267 = arith.constant 1 : index
    %c0_268 = arith.constant 0 : index
    %c0_269 = arith.constant 0 : index
    %c0_270 = arith.constant 0 : index
    %234 = vector.load %arg8[%c1_267, %c0_268, %c0_269, %c0_270] : memref<3x3x128x128xf32, #tpu.memory_space<vmem>>, vector<1x1x128x128xf32>
    %235 = vector.shape_cast %234 : vector<1x1x128x128xf32> to vector<128x128xf32>
    %cst_271 = arith.constant dense<0.000000e+00> : vector<6x128xf32>
    %236 = tpu.matmul %233, %235, %cst_271 {dimension_numbers = #tpu.dot_dimension_numbers<[1], [0], [0], [1], [0, 0, 1, 1], [], []>} : vector<6x128xf32>, vector<128x128xf32>, vector<6x128xf32> -> vector<6x128xf32>
    %237 = arith.addf %232, %236 : vector<6x128xf32>
    %c5_272 = arith.constant 5 : index
    %c0_273 = arith.constant 0 : index
    %238 = vector.load %arg15[%c5_272, %c0_273] : memref<16x128xf32, #tpu.memory_space<vmem>>, vector<6x128xf32>
    %c1_274 = arith.constant 1 : index
    %c1_275 = arith.constant 1 : index
    %c0_276 = arith.constant 0 : index
    %c0_277 = arith.constant 0 : index
    %239 = vector.load %arg8[%c1_274, %c1_275, %c0_276, %c0_277] : memref<3x3x128x128xf32, #tpu.memory_space<vmem>>, vector<1x1x128x128xf32>
    %240 = vector.shape_cast %239 : vector<1x1x128x128xf32> to vector<128x128xf32>
    %cst_278 = arith.constant dense<0.000000e+00> : vector<6x128xf32>
    %241 = tpu.matmul %238, %240, %cst_278 {dimension_numbers = #tpu.dot_dimension_numbers<[1], [0], [0], [1], [0, 0, 1, 1], [], []>} : vector<6x128xf32>, vector<128x128xf32>, vector<6x128xf32> -> vector<6x128xf32>
    %242 = arith.addf %237, %241 : vector<6x128xf32>
    %c6_279 = arith.constant 6 : index
    %c0_280 = arith.constant 0 : index
    %243 = vector.load %arg15[%c6_279, %c0_280] : memref<16x128xf32, #tpu.memory_space<vmem>>, vector<6x128xf32>
    %c1_281 = arith.constant 1 : index
    %c2_282 = arith.constant 2 : index
    %c0_283 = arith.constant 0 : index
    %c0_284 = arith.constant 0 : index
    %244 = vector.load %arg8[%c1_281, %c2_282, %c0_283, %c0_284] : memref<3x3x128x128xf32, #tpu.memory_space<vmem>>, vector<1x1x128x128xf32>
    %245 = vector.shape_cast %244 : vector<1x1x128x128xf32> to vector<128x128xf32>
    %cst_285 = arith.constant dense<0.000000e+00> : vector<6x128xf32>
    %246 = tpu.matmul %243, %245, %cst_285 {dimension_numbers = #tpu.dot_dimension_numbers<[1], [0], [0], [1], [0, 0, 1, 1], [], []>} : vector<6x128xf32>, vector<128x128xf32>, vector<6x128xf32> -> vector<6x128xf32>
    %247 = arith.addf %242, %246 : vector<6x128xf32>
    %c8_286 = arith.constant 8 : index
    %c0_287 = arith.constant 0 : index
    %248 = vector.load %arg15[%c8_286, %c0_287] : memref<16x128xf32, #tpu.memory_space<vmem>>, vector<6x128xf32>
    %c2_288 = arith.constant 2 : index
    %c0_289 = arith.constant 0 : index
    %c0_290 = arith.constant 0 : index
    %c0_291 = arith.constant 0 : index
    %249 = vector.load %arg8[%c2_288, %c0_289, %c0_290, %c0_291] : memref<3x3x128x128xf32, #tpu.memory_space<vmem>>, vector<1x1x128x128xf32>
    %250 = vector.shape_cast %249 : vector<1x1x128x128xf32> to vector<128x128xf32>
    %cst_292 = arith.constant dense<0.000000e+00> : vector<6x128xf32>
    %251 = tpu.matmul %248, %250, %cst_292 {dimension_numbers = #tpu.dot_dimension_numbers<[1], [0], [0], [1], [0, 0, 1, 1], [], []>} : vector<6x128xf32>, vector<128x128xf32>, vector<6x128xf32> -> vector<6x128xf32>
    %252 = arith.addf %247, %251 : vector<6x128xf32>
    %c9_293 = arith.constant 9 : index
    %c0_294 = arith.constant 0 : index
    %253 = vector.load %arg15[%c9_293, %c0_294] : memref<16x128xf32, #tpu.memory_space<vmem>>, vector<6x128xf32>
    %c2_295 = arith.constant 2 : index
    %c1_296 = arith.constant 1 : index
    %c0_297 = arith.constant 0 : index
    %c0_298 = arith.constant 0 : index
    %254 = vector.load %arg8[%c2_295, %c1_296, %c0_297, %c0_298] : memref<3x3x128x128xf32, #tpu.memory_space<vmem>>, vector<1x1x128x128xf32>
    %255 = vector.shape_cast %254 : vector<1x1x128x128xf32> to vector<128x128xf32>
    %cst_299 = arith.constant dense<0.000000e+00> : vector<6x128xf32>
    %256 = tpu.matmul %253, %255, %cst_299 {dimension_numbers = #tpu.dot_dimension_numbers<[1], [0], [0], [1], [0, 0, 1, 1], [], []>} : vector<6x128xf32>, vector<128x128xf32>, vector<6x128xf32> -> vector<6x128xf32>
    %257 = arith.addf %252, %256 : vector<6x128xf32>
    %c10_300 = arith.constant 10 : index
    %c0_301 = arith.constant 0 : index
    %258 = vector.load %arg15[%c10_300, %c0_301] : memref<16x128xf32, #tpu.memory_space<vmem>>, vector<6x128xf32>
    %c2_302 = arith.constant 2 : index
    %c2_303 = arith.constant 2 : index
    %c0_304 = arith.constant 0 : index
    %c0_305 = arith.constant 0 : index
    %259 = vector.load %arg8[%c2_302, %c2_303, %c0_304, %c0_305] : memref<3x3x128x128xf32, #tpu.memory_space<vmem>>, vector<1x1x128x128xf32>
    %260 = vector.shape_cast %259 : vector<1x1x128x128xf32> to vector<128x128xf32>
    %cst_306 = arith.constant dense<0.000000e+00> : vector<6x128xf32>
    %261 = tpu.matmul %258, %260, %cst_306 {dimension_numbers = #tpu.dot_dimension_numbers<[1], [0], [0], [1], [0, 0, 1, 1], [], []>} : vector<6x128xf32>, vector<128x128xf32>, vector<6x128xf32> -> vector<6x128xf32>
    %262 = arith.addf %257, %261 : vector<6x128xf32>
    %c0_307 = arith.constant 0 : index
    %c0_308 = arith.constant 0 : index
    %263 = vector.load %arg9[%c0_307, %c0_308] : memref<1x128xf32, #tpu.memory_space<vmem>>, vector<1x128xf32>
    %264 = vector.broadcast %263 : vector<1x128xf32> to vector<6x128xf32>
    %265 = arith.addf %262, %264 : vector<6x128xf32>
    %cst_309 = arith.constant 0.000000e+00 : f32
    %266 = vector.broadcast %cst_309 : f32 to vector<6x128xf32>
    %267 = arith.maximumf %265, %266 : vector<6x128xf32>
    %c0_310 = arith.constant 0 : index
    %c0_311 = arith.constant 0 : index
    %268 = vector.load %arg10[%c0_310, %c0_311] : memref<128x4xf32, #tpu.memory_space<vmem>>, vector<128x4xf32>
    %cst_312 = arith.constant dense<0.000000e+00> : vector<6x4xf32>
    %269 = tpu.matmul %267, %268, %cst_312 {dimension_numbers = #tpu.dot_dimension_numbers<[1], [0], [0], [1], [0, 0, 1, 1], [], []>} : vector<6x128xf32>, vector<128x4xf32>, vector<6x4xf32> -> vector<6x4xf32>
    %c0_313 = arith.constant 0 : index
    %c0_314 = arith.constant 0 : index
    %270 = vector.load %arg11[%c0_313, %c0_314] : memref<1x4xf32, #tpu.memory_space<vmem>>, vector<1x4xf32>
    %271 = vector.broadcast %270 : vector<1x4xf32> to vector<6x4xf32>
    %272 = arith.addf %269, %271 : vector<6x4xf32>
    %273 = vector.extract_strided_slice %272 {offsets = [0, 0], sizes = [2, 4], strides = [1, 1]} : vector<6x4xf32> to vector<2x4xf32>
    %c0_315 = arith.constant 0 : index
    %c0_316 = arith.constant 0 : index
    %c0_317 = arith.constant 0 : index
    %274 = vector.load %arg12[%c0_315, %c0_316, %c0_317] : memref<1x4x4xf32, #tpu.memory_space<vmem>>, vector<1x2x4xf32>
    %275 = vector.shape_cast %274 : vector<1x2x4xf32> to vector<2x4xf32>
    %276 = vector.shape_cast %273 : vector<2x4xf32> to vector<1x2x4xf32>
    tpu.vector_store %arg12[%c0_315, %c0_316, %c0_317], %276 {strides = array<i32>} : memref<1x4x4xf32, #tpu.memory_space<vmem>>, vector<1x2x4xf32>,
    %277 = vector.extract_strided_slice %272 {offsets = [4, 0], sizes = [2, 4], strides = [1, 1]} : vector<6x4xf32> to vector<2x4xf32>
    %c0_318 = arith.constant 0 : index
    %c2_319 = arith.constant 2 : index
    %c0_320 = arith.constant 0 : index
    %278 = vector.load %arg12[%c0_318, %c2_319, %c0_320] : memref<1x4x4xf32, #tpu.memory_space<vmem>>, vector<1x2x4xf32>
    %279 = vector.shape_cast %278 : vector<1x2x4xf32> to vector<2x4xf32>
    %280 = vector.shape_cast %277 : vector<2x4xf32> to vector<1x2x4xf32>
    tpu.vector_store %arg12[%c0_318, %c2_319, %c0_320], %280 {strides = array<i32>} : memref<1x4x4xf32, #tpu.memory_space<vmem>>, vector<1x2x4xf32>,
    return
  }
  func.func @transform_0(%arg0: i32) -> (i32, i32, i32) {
    %c0_i32 = arith.constant 0 : i32
    %c0_i32_0 = arith.constant 0 : i32
    %c0_i32_1 = arith.constant 0 : i32
    return %arg0, %c0_i32, %c0_i32_0 : i32, i32, i32
  }
  func.func @transform_1(%arg0: i32) -> (i32, i32, i32, i32) {
    %c0_i32 = arith.constant 0 : i32
    %c0_i32_0 = arith.constant 0 : i32
    %c0_i32_1 = arith.constant 0 : i32
    %c0_i32_2 = arith.constant 0 : i32
    %c0_i32_3 = arith.constant 0 : i32
    return %c0_i32, %c0_i32_0, %c0_i32_1, %c0_i32_2 : i32, i32, i32, i32
  }
  func.func @transform_2(%arg0: i32) -> (i32, i32) {
    %c0_i32 = arith.constant 0 : i32
    %c0_i32_0 = arith.constant 0 : i32
    %c0_i32_1 = arith.constant 0 : i32
    return %c0_i32, %c0_i32_0 : i32, i32
  }
  func.func @transform_3(%arg0: i32) -> (i32, i32, i32, i32) {
    %c0_i32 = arith.constant 0 : i32
    %c0_i32_0 = arith.constant 0 : i32
    %c0_i32_1 = arith.constant 0 : i32
    %c0_i32_2 = arith.constant 0 : i32
    %c0_i32_3 = arith.constant 0 : i32
    return %c0_i32, %c0_i32_0, %c0_i32_1, %c0_i32_2 : i32, i32, i32, i32
  }
  func.func @transform_4(%arg0: i32) -> (i32, i32) {
    %c0_i32 = arith.constant 0 : i32
    %c0_i32_0 = arith.constant 0 : i32
    %c0_i32_1 = arith.constant 0 : i32
    return %c0_i32, %c0_i32_0 : i32, i32
  }
  func.func @transform_5(%arg0: i32) -> (i32, i32, i32, i32) {
    %c0_i32 = arith.constant 0 : i32
    %c0_i32_0 = arith.constant 0 : i32
    %c0_i32_1 = arith.constant 0 : i32
    %c0_i32_2 = arith.constant 0 : i32
    %c0_i32_3 = arith.constant 0 : i32
    return %c0_i32, %c0_i32_0, %c0_i32_1, %c0_i32_2 : i32, i32, i32, i32
  }
  func.func @transform_6(%arg0: i32) -> (i32, i32) {
    %c0_i32 = arith.constant 0 : i32
    %c0_i32_0 = arith.constant 0 : i32
    %c0_i32_1 = arith.constant 0 : i32
    return %c0_i32, %c0_i32_0 : i32, i32
  }
  func.func @transform_7(%arg0: i32) -> (i32, i32, i32, i32) {
    %c0_i32 = arith.constant 0 : i32
    %c0_i32_0 = arith.constant 0 : i32
    %c0_i32_1 = arith.constant 0 : i32
    %c0_i32_2 = arith.constant 0 : i32
    %c0_i32_3 = arith.constant 0 : i32
    return %c0_i32, %c0_i32_0, %c0_i32_1, %c0_i32_2 : i32, i32, i32, i32
  }
  func.func @transform_8(%arg0: i32) -> (i32, i32) {
    %c0_i32 = arith.constant 0 : i32
    %c0_i32_0 = arith.constant 0 : i32
    %c0_i32_1 = arith.constant 0 : i32
    return %c0_i32, %c0_i32_0 : i32, i32
  }
  func.func @transform_9(%arg0: i32) -> (i32, i32) {
    %c0_i32 = arith.constant 0 : i32
    %c0_i32_0 = arith.constant 0 : i32
    %c0_i32_1 = arith.constant 0 : i32
    return %c0_i32, %c0_i32_0 : i32, i32
  }
  func.func @transform_10(%arg0: i32) -> (i32, i32) {
    %c0_i32 = arith.constant 0 : i32
    %c0_i32_0 = arith.constant 0 : i32
    %c0_i32_1 = arith.constant 0 : i32
    return %c0_i32, %c0_i32_0 : i32, i32
  }
  func.func @transform_11(%arg0: i32) -> (i32, i32, i32) {
    %c0_i32 = arith.constant 0 : i32
    %c0_i32_0 = arith.constant 0 : i32
    %c0_i32_1 = arith.constant 0 : i32
    return %arg0, %c0_i32, %c0_i32_0 : i32, i32, i32
  }
}

</mosaic_0001>

<bundles_post_ra>
// kernel: forward_pallas.1
= control target key start
LH: loop header
LB: loop body
LE: loop exit
PB: predicated region body
PF: predicated region fallthrough
CT: control target
= control target key end

     0   :  { %16 = vsyncpa [#allocation9], 0  ;;  %s13966_s0 = inlined_call_operand.vmem [shape: f32[2,324,3], index: 0, kind: input, shape index: {}]   ;;  %s13967_s1 = inlined_call_operand.vmem [shape: f32[3,3,3,32], index: 1, kind: input, shape index: {}]   ;;  %s13968_s2 = inlined_call_operand.vmem [shape: f32[1,32], index: 2, kind: input, shape index: {}]   ;;  %s13969_s3 = inlined_call_operand.hbm [shape: f32[3,3,32,64], index: 3, kind: input, shape index: {}]   ;;  %s13970_s4 = inlined_call_operand.vmem [shape: f32[1,64], index: 4, kind: input, shape index: {}]   ;;  %s13971_s5 = inlined_call_operand.hbm [shape: f32[3,3,64,128], index: 5, kind: input, shape index: {}]   ;;  %s13972_s6 = inlined_call_operand.vmem [shape: f32[1,128], index: 6, kind: input, shape index: {}]   ;;  %s13973_s7 = inlined_call_operand.vmem [shape: f32[3,3,128,128], index: 7, kind: input, shape index: {}]   ;;  %s13974_s8 = inlined_call_operand.vmem [shape: f32[1,128], index: 8, kind: input, shape index: {}]   ;;  %s13975_s9 = inlined_call_operand.vmem [shape: f32[128,4], index: 9, kind: input, shape index: {}]   ;;  %s13976_s10 = inlined_call_operand.vmem [shape: f32[1,4], index: 10, kind: input, shape index: {}]   ;;  %s13977_s11 = inlined_call_operand.hbm [shape: f32[2,4,4], index: 11, kind: output, shape index: {}]  }
   0x1   :  { %17 = vsyncpa [#allocation12], 0 }
   0x2   :  { %18 = vsyncpa [#allocation10], 0 }
   0x3   :  { %20 = vsyncpa [#allocation10 + $0x1], 0  ;;  %s12022_s17 = smov 0   ;;  %s12024_s18 = smov 0  }
   0x4   :  { %s12026_s19 = smov 0   ;;  %s12028_s20 = smov 0  }
   0x5 LB: > { %13986 = sst [smem:[#allocation17_spill]] %s11940_s17  ;;  %s12043_s21 = sadd.s32 4294967295, %s11952_s20   ;;  %s11952_s20 = sphi %s12028_s20, %s14004_s20   ;;  %s11948_s19 = sphi %s12026_s19, %s14006_s19   ;;  %s11944_s18 = sphi %s12024_s18, %s14008_s18   ;;  %s11940_s17 = sphi %s12022_s17, %s14007_s17  }
   0x6   : > { %13987 = sst [smem:[#allocation18_spill]] %s11948_s19  ;;  %s8350_s22 = sadd.s32 4294967294, %s11952_s20  }
   0x7   : > { %s12047_s23 = sadd.s32 1, %s11952_s20   ;;  %s269_s24 = sadd.s32 1, %s11948_s19 }
   0x8   : > { %13988 = sst [smem:[#allocation19_spill]] %s12047_s23  ;;  %s266_s25 = ssub.s32 %s11952_s20, %s12047_s23 }
   0x9   : > { %p279_p0 = scmp.ne.s32.totalorder %s11948_s19, %s11944_s18  ;;  %p267_p1 = scmp.eq.s32.totalorder %s266_s25, 0 }
   0xa   : > { %p280_p2 = scmp.eq.s32.totalorder %s12043_s21, 1  ;;  %p285_p3 = scmp.ne.s32.totalorder %s11944_s18, %s11940_s17 }
   0xb   : > { %p286_p4 = scmp.eq.s32.totalorder %s8350_s22, 1  ;;  %p8351_p7 = scmp.ge.s32.totalorder %s11952_s20, 1 }
   0xc   : > { %s12058_s26 = scalar_select %p267_p1, %s11948_s19, %s269_s24  }
   0xd   : > { %p12060_p5 = por %p280_p2, %p279_p0  ;;  %p12064_p6 = por %p286_p4, %p285_p3 }
   0xe   : > { %13989 = sst [smem:[#allocation20_spill]] %s12058_s26  ;;  %p293_p8 = scmp.lt.s32.totalorder %s11952_s20, 3 }
   0xf   : > { %s13990_s27 = scalar_select %p12060_p5, 1, 0 }
  0x10   : > { %s13991_s28 = scalar_select %p12064_p6, 1, 0 }
  0x11   : > { %p13979_p9 = scmp.eq.s32.totalorder %s12043_s21, 0  ;;  %p12071_p10 = pnand %p8351_p7, %p293_p8 }
  0x12   : > { %13992 = sst [smem:[#allocation21_spill]] %s13991_s28  ;;  %s11954_s30 = smov [#allocation8]  }
  0x13   : > { %s13993_s29 = scalar_select %p12071_p10, 1, 0 }
  0x14   : > { %s311_s12 = sshll.u32 %s11954_s30, 4  ;;  %p11770_p11 = pneg %p12071_p10  ;;  %s312_s12 = int_to_ptr.vmem [resolvable:$true] %s311_s12 }
  0x15   : > { %s11955_s14 = smov [#allocation11]   ;;  %s11826_s24 = scalar_lea.hbm %s13969_s3, 4608 }
  0x16   : > { %p12079_p12 = pnand %p13979_p9, %p11770_p11  ;;  %s327_s15 = sshll.u32 %s11955_s14, 4  ;;  %s12083_s15 = int_to_ptr.vmem [resolvable:$true] %s327_s15 }
  0x17   : > { %p11827_p13 = scmp.ne.s32.totalorder %s13969_s3, %s11826_s24  ;;  %p11833_p3 = scmp.lt.u32.totalorder %s11826_s24, %s13969_s3 }
  0x18   : > { %p11828_p0 = pneg %p12079_p12 }
  0x1a   : > { %p11829_p1 = pnand %p11828_p0, %p11827_p13 }
  0x1c   : > { %p11830_p2 = pneg %p11829_p1 }
  0x1e   : > { %p11835_p4 = pnand %p11833_p3, %p11830_p2 }
  0x20   : > { %11838 = shalt.err (!%p11835_p4)
}
  0x21   : > { %s11839_s14 = scalar_lea.vmem %s312_s12, 4608  ;;  %p11847_p9 = scmp.lt.s32.totalorder %s312_s12, %s312_s12 }
  0x22   : > { %p11840_p7 = scmp.ne.s32.totalorder %s312_s12, %s11839_s14  ;;  %p11848_p6 = scmp.lt.s32.totalorder %s11839_s14, %s11839_s14 }
  0x24   : > { %p11842_p8 = pnand %p11840_p7, %p11828_p0  ;;  %p11849_p5 = por %p11848_p6, %p11847_p9 }
  0x26   : > { %p11843_p11 = pneg %p11842_p8 }
  0x28   : > { %p11850_p10 = pnand %p11849_p5, %p11843_p11 }
  0x2a   : > { %11853 = shalt.err (!%p11850_p10)
}
  0x2b   : > { %s11956_s16 = smov 128   ;;  %s11957_s22 = smov 8  }
  0x2c   : > { %11773 = dma.hbm_to_vmem [thread:$0]  (!%p12079_p12), %s13969_s3, 4608, %s312_s12, [#allocation9], %s11956_s16, %s11956_s16, %s11957_s22  }
  0x2d   : > { %s11854_s30 = scalar_lea.hbm %s13971_s5, 9216 }
  0x2e   : > { %p11855_p13 = scmp.ne.s32.totalorder %s13971_s5, %s11854_s30  ;;  %p11861_p9 = scmp.lt.u32.totalorder %s11854_s30, %s13971_s5 }
  0x30   : > { %p11857_p5 = pnand %p11855_p13, %p11828_p0 }
  0x32   : > { %p11858_p6 = pneg %p11857_p5 }
  0x34   : > { %p11863_p10 = pnand %p11861_p9, %p11858_p6 }
  0x36   : > { %11866 = shalt.err (!%p11863_p10)
}
  0x37   : > { %s11867_s12 = scalar_lea.vmem %s12083_s15, 9216  ;;  %p11875_p4 = scmp.lt.s32.totalorder %s12083_s15, %s12083_s15 }
  0x38   : > { %p11868_p1 = scmp.ne.s32.totalorder %s12083_s15, %s11867_s12  ;;  %p11876_p7 = scmp.lt.s32.totalorder %s11867_s12, %s11867_s12 }
  0x3a   : > { %p11870_p2 = pnand %p11868_p1, %p11828_p0  ;;  %p11877_p8 = por %p11876_p7, %p11875_p4 }
  0x3c   : > { %p11871_p3 = pneg %p11870_p2 }
  0x3e   : > { %p11878_p11 = pnand %p11877_p8, %p11871_p3 }
  0x40   : > { %11881 = shalt.err (!%p11878_p11)
}
  0x41   : > { %11776 = dma.hbm_to_vmem [thread:$0]  (!%p12079_p12), %s13971_s5, 9216, %s12083_s15, [#allocation12], %s11956_s16, %s11956_s16, %s11957_s22  }
  0x42   : > { %p13995_p13 = scmp.ne.s32.totalorder %s13993_s29, 0 }
  0x43   : > { %p13996_p5 = scmp.eq.s32.totalorder (!%p13995_p13), %s12043_s21, 0 }
  0x44   : > { %366 = sbr.rel (%p13995_p13) target bundleno = 2443 (0x98b), region = 64 }
  0x4b   : > { %11927 = dma.done.wait (%p13996_p5), [#allocation9], 4608   ;;  %p13997_p0 = pmov %p13996_p5 }
  0x4d   : > { %11929 = vsyncadd (%p13997_p0), [#allocation9], 4294962688  ;;  %p13998_p6 = pmov %p13997_p0 }
  0x4e   : > { %p13999_p9 = pmov %p13997_p0 }
  0x4f   : > { %11931 = dma.done.wait (%p13998_p6), [#allocation12], 9216  }
  0x50   : > { %11933 = vsyncadd (%p13999_p9), [#allocation12], 4294958080  ;;  %p410_p10 = scmp.lt.s32.totalorder %s12043_s21, 1  ;;  %vm623_vm0 = vcmask 1042432   ;;  %vm514_vm1 = vcmask 23552   ;;  %vm415_vm2 = vcmask 261120  }
  0x51   : > { %v8360_v0 = vld [vmem:[%s13967_s1 + $0x4] sm:$0x7]  ;;  %v475_v3 = vld [vmem:[%s13967_s1] sm:$0x7]  ;;  %v8435_v10 = vld [vmem:[%s13967_s1 + $0x8] sm:$0x7] }
  0x52   : > { %s411_s28 = scalar_select %p410_p10, %s12043_s21, 1  ;;  %9683 = vmatprep.subr.msk.mxu0 %vm623_vm0, %v8360_v0  ;;  %11389 = vmatprep.subr.msk.mxu1 %vm623_vm0, %v8360_v0  ;;  %v12236_v38 = vld [vmem:[%s13967_s1 + $0xc] sm:$0x7]  ;;  %vm4353_vm3 = vcmask 1046528   ;;  %vm4531_vm4 = vcmask 1045504   ;;  %vm4700_vm5 = vcmask 256000  }
  0x53   : > { %9684 = vmatpush3.msk.msra.mxu0 %vm623_vm0, %v8360_v0  ;;  %11390 = vmatpush3.msk.msra.mxu1 %vm623_vm0, %v8360_v0  ;;  %vm428_vm6 = vcmask 257024   ;;  %vm430_vm7 = vcmask 523264   ;;  %vm435_vm8 = vcmask 519168   ;;  %vm11960_vm9 = vmmov 0   ;;  %s407_s26 = sand.u32 1, %s11944_s18   ;;  %s8952_s30 = sshll.u32 %s12043_s21, 6 }
  0x54   : > { %s11759_s13 = smul.u32 328, %s411_s28  ;;  %9739 = vmatprep.subr.msk.mxu0 %vm623_vm0, %v475_v3  ;;  %vm6362_vm10 = vcmask 518144   ;;  %vm7334_vm11 = vcmask 1041408   ;;  %s8358_s24 = sshll.u32 %s407_s26, 2  ;;  %vm8251_vm12 = vcmask 25600   ;;  %vm8253_vm13 = vcmask 29700  }
  0x55   : > { %s409_s14 = scalar_lea.vmem [#allocation13], %s8358_s24  ;;  %s13924_s28 = scalar_lea.hbm %s13977_s11, %s8952_s30 }
  0x56   : > { %s12147_s16 = scalar_lea.vmem %s13966_s0, %s11759_s13  ;;  %s8269_s12 = sshll.u32 %s409_s14, 4  ;;  %s13926_s12 = int_to_ptr.vmem [resolvable:$true] %s8269_s12 }
  0x57   : > { %v476_v1 = vld [vmem:[%s12147_s16 + $0x1] sm:$0xff]  ;;  %v477_v2 = vld [vmem:[%s12147_s16 + $0x9] sm:$0xff]  ;;  %v478_v4 = vld [vmem:[%s12147_s16 + $0x11] sm:$0xff]  ;;  %s8256_s21 = scalar_lea.sflag [#allocation10], %s407_s26  ;;  %s11882_s13 = scalar_lea.vmem %s13926_s12, 64 }
  0x58   : > { %9685 = vmatprep.mubr.msk.f32.mxu0 %vm514_vm1, %v476_v1  ;;  %v479_v5 = vld [vmem:[%s12147_s16 + $0x19] sm:$0xff]  ;;  %v480_v6 = vld [vmem:[%s12147_s16 + $0x21] sm:$0xff]  ;;  %v481_v7 = vld [vmem:[%s12147_s16 + $0x29] sm:$0xff]  ;;  %p11883_p12 = scmp.ne.s32.totalorder %s13926_s12, %s11882_s13  ;;  %p14000_p1 = scmp.ne.s32.totalorder %s13990_s27, 0 }
  0x59   : > { %9686 = vmatmul.mubr.msk.f32.vlgmr.msra.gmra.mrb[0].mxu0 %vm514_vm1, %v477_v2  ;;  %v482_v8 = vld [vmem:[%s12147_s16 + $0x31] sm:$0xff]  ;;  %v483_v9 = vld [vmem:[%s12147_s16 + $0x39] sm:$0xff]  ;;  %v484_v11 = vld [vmem:[%s12147_s16 + $0x41] sm:$0xff]  ;;  %s11961_s29 = smov [#allocation13]  }
  0x5a   : > { %9740 = vmatpush3.msk.msra.mxu0 %vm623_vm0, %v475_v3  ;;  %9688 = vmatprep.mubr.msk.f32.mxu0 %vm514_vm1, %v478_v4  ;;  %v485_v12 = vld [vmem:[%s12147_s16 + $0x49] sm:$0xff]  ;;  %v486_v13 = vld [vmem:[%s12147_s16 + $0x51] sm:$0xff]  ;;  %v487_v14 = vld [vmem:[%s12147_s16 + $0x59] sm:$0xff]  ;;  %p11884_p2 = pnand %p11883_p12, %p14000_p1  ;;  %s11886_s15 = sshll.u32 %s11961_s29, 4  ;;  %s11887_s15 = int_to_ptr.vmem [resolvable:$false] %s11886_s15 }
  0x5b   : > { %9795 = vmatprep.subr.msk.mxu0 %vm623_vm0, %v8435_v10  ;;  %v488_v15 = vld [vmem:[%s12147_s16 + $0x61] sm:$0xff]  ;;  %v489_v16 = vld [vmem:[%s12147_s16 + $0x69] sm:$0xff]  ;;  %v490_v17 = vld [vmem:[%s12147_s16 + $0x71] sm:$0xff]  ;;  %s11888_s22 = scalar_lea.vmem %s11887_s15, 128  ;;  %p11889_p4 = scmp.lt.s32.totalorder %s13926_s12, %s11887_s15 }
  0x5c   : > { %v491_v18 = vld [vmem:[%s12147_s16 + $0x79] sm:$0xff]  ;;  %v492_v19 = vld [vmem:[%s12147_s16 + $0x81] sm:$0xff]  ;;  %v493_v20 = vld [vmem:[%s12147_s16 + $0x89] sm:$0xff]  ;;  %p11885_p3 = pneg %p11884_p2  ;;  %p11890_p7 = scmp.lt.s32.totalorder %s11888_s22, %s11882_s13 }
  0x5d   : > { %9689 = vmatmul.mubr.msk.f32.gmra.mrb[2].mxu0 %vm514_vm1, %v479_v5  ;;  %v494_v21 = vld [vmem:[%s12147_s16 + $0x91] sm:$0xff]  ;;  %v495_v22 = vld [vmem:[%s12147_s16 + $0x99] sm:$0xff]  ;;  %v496_v23 = vld [vmem:[%s12147_s16 + $0xa1] sm:$0xff] }
  0x5e   : > { %9691 = vmatprep.mubr.msk.f32.mxu0 %vm514_vm1, %v480_v6  ;;  %v497_v24 = vld [vmem:[%s12147_s16 + $0xa9] sm:$0xff]  ;;  %v498_v25 = vld [vmem:[%s12147_s16 + $0xb1] sm:$0xff]  ;;  %v499_v26 = vld [vmem:[%s12147_s16 + $0xb9] sm:$0xff]  ;;  %p11891_p8 = por %p11890_p7, %p11889_p4 }
  0x5f   : > { %v500_v27 = vld [vmem:[%s12147_s16 + $0xc1] sm:$0xff]  ;;  %v501_v28 = vld [vmem:[%s12147_s16 + $0xc9] sm:$0xff]  ;;  %v502_v29 = vld [vmem:[%s12147_s16 + $0xd1] sm:$0xff] }
  0x60   : > { %v503_v30 = vld [vmem:[%s12147_s16 + $0xd9] sm:$0xff]  ;;  %v504_v31 = vld [vmem:[%s12147_s16 + $0xe1] sm:$0xff]  ;;  %v505_v32 = vld [vmem:[%s12147_s16 + $0xe9] sm:$0xff]  ;;  %p11892_p11 = pnand %p11891_p8, %p11885_p3 }
  0x61   : > { %9692 = vmatmul.mubr.msk.f32.gmra.mrb[4].mxu0 %vm514_vm1, %v481_v7  ;;  %v506_v33 = vld [vmem:[%s12147_s16 + $0xf1] sm:$0xff]  ;;  %v507_v34 = vld [vmem:[%s12147_s16 + $0xf9] sm:$0xff]  ;;  %v440_v36 = vld [vmem:[%s12147_s16 + $0x8] sm:$0xff] }
  0x62   : > { %9694 = vmatprep.mubr.msk.f32.mxu0 %vm514_vm1, %v482_v8  ;;  %v439_v35 = vld [vmem:[%s12147_s16] sm:$0xff]  ;;  %v441_v37 = vld [vmem:[%s12147_s16 + $0x10] sm:$0xff]  ;;  %v442_v39 = vld [vmem:[%s12147_s16 + $0x18] sm:$0xff] }
  0x63   : > { %v443_v40 = vld [vmem:[%s12147_s16 + $0x20] sm:$0xff]  ;;  %v444_v41 = vld [vmem:[%s12147_s16 + $0x28] sm:$0xff]  ;;  %v445_v42 = vld [vmem:[%s12147_s16 + $0x30] sm:$0xff] }
  0x64   : > { %v446_v43 = vld [vmem:[%s12147_s16 + $0x38] sm:$0xff]  ;;  %v447_v44 = vld [vmem:[%s12147_s16 + $0x40] sm:$0xff]  ;;  %v448_v45 = vld [vmem:[%s12147_s16 + $0x48] sm:$0xff] }
  0x65   : > { %9695 = vmatmul.mubr.msk.f32.gmra.mrb[6].mxu0 %vm514_vm1, %v483_v9  ;;  %v449_v46 = vld [vmem:[%s12147_s16 + $0x50] sm:$0xff]  ;;  %v450_v47 = vld [vmem:[%s12147_s16 + $0x58] sm:$0xff]  ;;  %v451_v48 = vld [vmem:[%s12147_s16 + $0x60] sm:$0xff] }
  0x66   : > { %9697 = vmatprep.mubr.msk.f32.mxu0 %vm514_vm1, %v484_v11  ;;  %v452_v49 = vld [vmem:[%s12147_s16 + $0x68] sm:$0xff]  ;;  %v453_v50 = vld [vmem:[%s12147_s16 + $0x70] sm:$0xff]  ;;  %v454_v51 = vld [vmem:[%s12147_s16 + $0x78] sm:$0xff] }
  0x67   : > { %v455_v52 = vld [vmem:[%s12147_s16 + $0x80] sm:$0xff]  ;;  %v456_v53 = vld [vmem:[%s12147_s16 + $0x88] sm:$0xff]  ;;  %v457_v54 = vld [vmem:[%s12147_s16 + $0x90] sm:$0xff] }
  0x68   : > { %v458_v55 = vld [vmem:[%s12147_s16 + $0x98] sm:$0xff]  ;;  %v459_v56 = vld [vmem:[%s12147_s16 + $0xa0] sm:$0xff]  ;;  %v460_v57 = vld [vmem:[%s12147_s16 + $0xa8] sm:$0xff] }
  0x69   : > { %9698 = vmatmul.mubr.msk.f32.gmra.mrb[8].mxu0 %vm514_vm1, %v485_v12  ;;  %v461_v58 = vld [vmem:[%s12147_s16 + $0xb0] sm:$0xff]  ;;  %v462_v59 = vld [vmem:[%s12147_s16 + $0xb8] sm:$0xff]  ;;  %v463_v60 = vld [vmem:[%s12147_s16 + $0xc0] sm:$0xff] }
  0x6a   : > { %9700 = vmatprep.mubr.msk.f32.mxu0 %vm514_vm1, %v486_v13  ;;  %v464_v61 = vld [vmem:[%s12147_s16 + $0xc8] sm:$0xff]  ;;  %v465_v62 = vld [vmem:[%s12147_s16 + $0xd0] sm:$0xff]  ;;  %v466_v63 = vld [vmem:[%s12147_s16 + $0xd8] sm:$0xff] }
  0x6b   : > { %v467_v0 = vld [vmem:[%s12147_s16 + $0xe0] sm:$0xff]  ;;  %v468_v1 = vld [vmem:[%s12147_s16 + $0xe8] sm:$0xff]  ;;  %v469_v2 = vld [vmem:[%s12147_s16 + $0xf0] sm:$0xff] }
  0x6c   : > { %v470_v3 = vld [vmem:[%s12147_s16 + $0xf8] sm:$0xff]  ;;  %v471_v4 = vld [vmem:[%s12147_s16 + $0x100] sm:$0xff]  ;;  %v472_v5 = vld [vmem:[%s12147_s16 + $0x108] sm:$0xff] }
  0x6d   : > { %9701 = vmatmul.mubr.msk.f32.gmra.mrb[10].mxu0 %vm514_vm1, %v487_v14  ;;  %v473_v6 = vld [vmem:[%s12147_s16 + $0x110] sm:$0xff]  ;;  %v474_v7 = vld [vmem:[%s12147_s16 + $0x118] sm:$0x3f]  ;;  %v1228_v8 = vld [vmem:[%s12147_s16 + $0x2] sm:$0xff] }
  0x6e   : > { %9703 = vmatprep.mubr.msk.f32.mxu0 %vm514_vm1, %v488_v15  ;;  %v1229_v9 = vld [vmem:[%s12147_s16 + $0xa] sm:$0xff]  ;;  %v12326_v12 = vld [vmem:[%s12147_s16 + $0x1a] sm:$0xff]  ;;  %v12329_v13 = vld [vmem:[%s12147_s16 + $0x22] sm:$0xff] }
  0x6f   : > { %v12318_v11 = vld [vmem:[%s13967_s1 + $0x10] sm:$0x7] }
  0x70   : > { %v12338_v14 = vld [vmem:[%s12147_s16 + $0x2a] sm:$0xff]  ;;  %v12341_v15 = vld [vmem:[%s12147_s16 + $0x32] sm:$0xff] }
  0x71   : > { %9704 = vmatmul.mubr.msk.f32.gmra.mrb[12].mxu0 %vm514_vm1, %v489_v16  ;;  %v12348_v16 = vld [vmem:[%s12147_s16 + $0x3a] sm:$0xff] }
  0x72   : > { %9706 = vmatprep.mubr.msk.f32.mxu0 %vm514_vm1, %v490_v17  ;;  %v12351_v17 = vld [vmem:[%s12147_s16 + $0x42] sm:$0xff] }
  0x75   : > { %9707 = vmatmul.mubr.msk.f32.gmra.mrb[14].mxu0 %vm514_vm1, %v491_v18  ;;  %v12358_v18 = vld [vmem:[%s12147_s16 + $0x4a] sm:$0xff] }
  0x76   : > { %9709 = vmatprep.mubr.msk.f32.mxu0 %vm514_vm1, %v492_v19  ;;  %v12361_v19 = vld [vmem:[%s12147_s16 + $0x52] sm:$0xff] }
  0x79   : > { %9710 = vmatmul.mubr.msk.f32.gmra.mrb[16].mxu0 %vm514_vm1, %v493_v20  ;;  %v1239_v20 = vld [vmem:[%s12147_s16 + $0x5a] sm:$0xff] }
  0x7a   : > { %9712 = vmatprep.mubr.msk.f32.mxu0 %vm514_vm1, %v494_v21  ;;  %v1240_v21 = vld [vmem:[%s12147_s16 + $0x62] sm:$0xff] }
  0x7d   : > { %9713 = vmatmul.mubr.msk.f32.gmra.mrb[18].mxu0 %vm514_vm1, %v495_v22  ;;  %v1241_v22 = vld [vmem:[%s12147_s16 + $0x6a] sm:$0xff] }
  0x7e   : > { %9715 = vmatprep.mubr.msk.f32.mxu0 %vm514_vm1, %v496_v23  ;;  %v1242_v23 = vld [vmem:[%s12147_s16 + $0x72] sm:$0xff] }
  0x81   : > { %9716 = vmatmul.mubr.msk.f32.gmra.mrb[20].mxu0 %vm514_vm1, %v497_v24  ;;  %v1243_v24 = vld [vmem:[%s12147_s16 + $0x7a] sm:$0xff] }
  0x82   : > { %9718 = vmatprep.mubr.msk.f32.mxu0 %vm514_vm1, %v498_v25  ;;  %v1244_v25 = vld [vmem:[%s12147_s16 + $0x82] sm:$0xff] }
  0x85   : > { %9719 = vmatmul.mubr.msk.f32.gmra.mrb[22].mxu0 %vm514_vm1, %v499_v26  ;;  %v1245_v26 = vld [vmem:[%s12147_s16 + $0x8a] sm:$0xff] }
  0x86   : > { %9721 = vmatprep.mubr.msk.f32.mxu0 %vm514_vm1, %v500_v27  ;;  %v1246_v27 = vld [vmem:[%s12147_s16 + $0x92] sm:$0xff] }
  0x89   : > { %9722 = vmatmul.mubr.msk.f32.gmra.mrb[24].mxu0 %vm514_vm1, %v501_v28  ;;  %v1247_v28 = vld [vmem:[%s12147_s16 + $0x9a] sm:$0xff] }
  0x8a   : > { %9724 = vmatprep.mubr.msk.f32.mxu0 %vm514_vm1, %v502_v29  ;;  %v1248_v29 = vld [vmem:[%s12147_s16 + $0xa2] sm:$0xff] }
  0x8d   : > { %9725 = vmatmul.mubr.msk.f32.gmra.mrb[26].mxu0 %vm514_vm1, %v503_v30  ;;  %v1249_v30 = vld [vmem:[%s12147_s16 + $0xaa] sm:$0xff] }
  0x8e   : > { %9727 = vmatprep.mubr.msk.f32.mxu0 %vm514_vm1, %v504_v31  ;;  %v1250_v31 = vld [vmem:[%s12147_s16 + $0xb2] sm:$0xff] }
  0x91   : > { %9728 = vmatmul.mubr.msk.f32.gmra.mrb[28].mxu0 %vm514_vm1, %v505_v32  ;;  %v1251_v32 = vld [vmem:[%s12147_s16 + $0xba] sm:$0xff] }
  0x92   : > { %9730 = vmatprep.mubr.msk.f32.mxu0 %vm514_vm1, %v506_v33  ;;  %v1252_v33 = vld [vmem:[%s12147_s16 + $0xc2] sm:$0xff] }
  0x95   : > { %9731 = vmatmul.mubr.msk.f32.gmra.mrb[30].mxu0 %vm514_vm1, %v507_v34  ;;  %v1253_v34 = vld [vmem:[%s12147_s16 + $0xca] sm:$0xff] }
  0x96   : > { %9741 = vmatprep.mubr.msk.f32.mxu0 %vm514_vm1, %v439_v35  ;;  %v1254_v35 = vld [vmem:[%s12147_s16 + $0xd2] sm:$0xff] }
  0x99   : > { %9742 = vmatmul.mubr.msk.f32.vlgmr.msra.gmra.mrb[0].mxu0 %vm514_vm1, %v440_v36  ;;  %v1255_v36 = vld [vmem:[%s12147_s16 + $0xda] sm:$0xff] }
  0x9a   : > { %9796 = vmatpush3.msk.msra.mxu0 %vm623_vm0, %v8435_v10  ;;  %9744 = vmatprep.mubr.msk.f32.mxu0 %vm514_vm1, %v441_v37  ;;  %v12313_v10 = vld [vmem:[%s12147_s16 + $0x12] sm:$0xff]  ;;  %v1256_v37 = vld [vmem:[%s12147_s16 + $0xe2] sm:$0xff] }
  0x9b   : > { %9851 = vmatprep.subr.msk.mxu0 %vm623_vm0, %v12236_v38 }
  0x9d   : > { %9745 = vmatmul.mubr.msk.f32.gmra.mrb[2].mxu0 %vm514_vm1, %v442_v39  ;;  %v1258_v39 = vld [vmem:[%s12147_s16 + $0xf2] sm:$0xff] }
  0x9e   : > { %9747 = vmatprep.mubr.msk.f32.mxu0 %vm514_vm1, %v443_v40  ;;  %v1259_v40 = vld [vmem:[%s12147_s16 + $0xfa] sm:$0xff] }
  0xa1   : > { %9748 = vmatmul.mubr.msk.f32.gmra.mrb[4].mxu0 %vm514_vm1, %v444_v41  ;;  %v1260_v41 = vld [vmem:[%s12147_s16 + $0x102] sm:$0xff] }
  0xa2   : > { %9750 = vmatprep.mubr.msk.f32.mxu0 %vm514_vm1, %v445_v42  ;;  %v1261_v42 = vld [vmem:[%s12147_s16 + $0x10a] sm:$0xff] }
  0xa5   : > { %9751 = vmatmul.mubr.msk.f32.gmra.mrb[6].mxu0 %vm514_vm1, %v446_v43  ;;  %v1262_v43 = vld [vmem:[%s12147_s16 + $0x112] sm:$0xff] }
  0xa6   : > { %9753 = vmatprep.mubr.msk.f32.mxu0 %vm514_vm1, %v447_v44  ;;  %v1263_v44 = vld [vmem:[%s12147_s16 + $0x11a] sm:$0x3f] }
  0xa9   : > { %9754 = vmatmul.mubr.msk.f32.gmra.mrb[8].mxu0 %vm514_vm1, %v448_v45  ;;  %v8549_v45 = vld [vmem:[%s13967_s1 + $0x14] sm:$0x7] }
  0xaa   : > { %9756 = vmatprep.mubr.msk.f32.mxu0 %vm514_vm1, %v449_v46  ;;  %v1691_v46 = vld [vmem:[%s12147_s16 + $0x11a] sm:$0xff] }
  0xad   : > { %9757 = vmatmul.mubr.msk.f32.gmra.mrb[10].mxu0 %vm514_vm1, %v450_v47  ;;  %v1692_v47 = vld [vmem:[%s12147_s16 + $0x122] sm:$0xff] }
  0xae   : > { %9759 = vmatprep.mubr.msk.f32.mxu0 %vm514_vm1, %v451_v48  ;;  %v1693_v48 = vld [vmem:[%s12147_s16 + $0x12a] sm:$0x3f] }
  0xb1   : > { %9760 = vmatmul.mubr.msk.f32.gmra.mrb[12].mxu0 %vm514_vm1, %v452_v49  ;;  %v2088_v49 = vld [vmem:[%s12147_s16 + $0x13] sm:$0xff] }
  0xb2   : > { %9762 = vmatprep.mubr.msk.f32.mxu0 %vm514_vm1, %v453_v50  ;;  %v2089_v50 = vld [vmem:[%s12147_s16 + $0x1b] sm:$0xff] }
  0xb5   : > { %9763 = vmatmul.mubr.msk.f32.gmra.mrb[14].mxu0 %vm514_vm1, %v454_v51  ;;  %v2090_v51 = vld [vmem:[%s12147_s16 + $0x23] sm:$0xff] }
  0xb6   : > { %9765 = vmatprep.mubr.msk.f32.mxu0 %vm514_vm1, %v455_v52  ;;  %v12478_v52 = vld [vmem:[%s13967_s1 + $0x18] sm:$0x7] }
  0xb9   : > { %9766 = vmatmul.mubr.msk.f32.gmra.mrb[16].mxu0 %vm514_vm1, %v456_v53  ;;  %v2091_v53 = vld [vmem:[%s12147_s16 + $0x2b] sm:$0xff] }
  0xba   : > { %9768 = vmatprep.mubr.msk.f32.mxu0 %vm514_vm1, %v457_v54  ;;  %v2092_v54 = vld [vmem:[%s12147_s16 + $0x33] sm:$0xff] }
  0xbd   : > { %9769 = vmatmul.mubr.msk.f32.gmra.mrb[18].mxu0 %vm514_vm1, %v458_v55  ;;  %v2093_v55 = vld [vmem:[%s12147_s16 + $0x3b] sm:$0xff] }
  0xbe   : > { %9771 = vmatprep.mubr.msk.f32.mxu0 %vm514_vm1, %v459_v56  ;;  %v2094_v56 = vld [vmem:[%s12147_s16 + $0x43] sm:$0xff] }
  0xc1   : > { %9772 = vmatmul.mubr.msk.f32.gmra.mrb[20].mxu0 %vm514_vm1, %v460_v57  ;;  %v2095_v57 = vld [vmem:[%s12147_s16 + $0x4b] sm:$0xff] }
  0xc2   : > { %9774 = vmatprep.mubr.msk.f32.mxu0 %vm514_vm1, %v461_v58  ;;  %v2096_v58 = vld [vmem:[%s12147_s16 + $0x53] sm:$0xff] }
  0xc5   : > { %9775 = vmatmul.mubr.msk.f32.gmra.mrb[22].mxu0 %vm514_vm1, %v462_v59  ;;  %v2097_v59 = vld [vmem:[%s12147_s16 + $0x5b] sm:$0xff] }
  0xc6   : > { %9777 = vmatprep.mubr.msk.f32.mxu0 %vm514_vm1, %v463_v60  ;;  %v2098_v60 = vld [vmem:[%s12147_s16 + $0x63] sm:$0xff] }
  0xc9   : > { %9778 = vmatmul.mubr.msk.f32.gmra.mrb[24].mxu0 %vm514_vm1, %v464_v61  ;;  %v2099_v61 = vld [vmem:[%s12147_s16 + $0x6b] sm:$0xff] }
  0xca   : > { %9780 = vmatprep.mubr.msk.f32.mxu0 %vm514_vm1, %v465_v62  ;;  %v2100_v62 = vld [vmem:[%s12147_s16 + $0x73] sm:$0xff] }
  0xcd   : > { %9781 = vmatmul.mubr.msk.f32.gmra.mrb[26].mxu0 %vm514_vm1, %v466_v63  ;;  %v2101_v63 = vld [vmem:[%s12147_s16 + $0x7b] sm:$0xff] }
  0xce   : > { %9783 = vmatprep.mubr.msk.f32.mxu0 %vm514_vm1, %v467_v0  ;;  %v2102_v0 = vld [vmem:[%s12147_s16 + $0x83] sm:$0xff] }
  0xd1   : > { %9784 = vmatmul.mubr.msk.f32.gmra.mrb[28].mxu0 %vm514_vm1, %v468_v1  ;;  %v2103_v1 = vld [vmem:[%s12147_s16 + $0x8b] sm:$0xff] }
  0xd2   : > { %9786 = vmatprep.mubr.msk.f32.mxu0 %vm514_vm1, %v469_v2  ;;  %v2104_v2 = vld [vmem:[%s12147_s16 + $0x93] sm:$0xff] }
  0xd5   : > { %9787 = vmatmul.mubr.msk.f32.gmra.mrb[30].mxu0 %vm514_vm1, %v470_v3  ;;  %v2105_v3 = vld [vmem:[%s12147_s16 + $0x9b] sm:$0xff] }
  0xd6   : > { %9789 = vmatprep.mubr.msk.f32.mxu0 %vm514_vm1, %v471_v4  ;;  %v2106_v4 = vld [vmem:[%s12147_s16 + $0xa3] sm:$0xff] }
  0xd9   : > { %9790 = vmatmul.mubr.msk.f32.gmra.mrb[32].mxu0 %vm514_vm1, %v472_v5  ;;  %v2107_v5 = vld [vmem:[%s12147_s16 + $0xab] sm:$0xff] }
  0xda   : > { %9792 = vmatprep.mubr.msk.f32.mxu0 %vm514_vm1, %v473_v6  ;;  %v2108_v6 = vld [vmem:[%s12147_s16 + $0xb3] sm:$0xff] }
  0xdd   : > { %9793 = vmatmul.mubr.msk.f32.gmra.mrb[34].mxu0 %vm514_vm1, %v474_v7  ;;  %v2109_v7 = vld [vmem:[%s12147_s16 + $0xbb] sm:$0xff] }
  0xde   : > { %9797 = vmatprep.mubr.msk.f32.mxu0 %vm514_vm1, %v1228_v8  ;;  %v2110_v8 = vld [vmem:[%s12147_s16 + $0xc3] sm:$0xff] }
  0xe1   : > { %9798 = vmatmul.mubr.msk.f32.vlgmr.msra.gmra.mrb[0].mxu0 %vm514_vm1, %v1229_v9  ;;  %v2111_v9 = vld [vmem:[%s12147_s16 + $0xcb] sm:$0xff] }
  0xe2   : > { %9852 = vmatpush3.msk.msra.mxu0 %vm623_vm0, %v12236_v38  ;;  %9800 = vmatprep.mubr.msk.f32.mxu0 %vm514_vm1, %v12313_v10  ;;  %v1257_v38 = vld [vmem:[%s12147_s16 + $0xea] sm:$0xff] }
  0xe3   : > { %9907 = vmatprep.subr.msk.mxu0 %vm623_vm0, %v12318_v11 }
  0xe5   : > { %9801 = vmatmul.mubr.msk.f32.gmra.mrb[2].mxu0 %vm514_vm1, %v12326_v12 }
  0xe6   : > { %9803 = vmatprep.mubr.msk.f32.mxu0 %vm514_vm1, %v12329_v13 }
  0xe9   : > { %9804 = vmatmul.mubr.msk.f32.gmra.mrb[4].mxu0 %vm514_vm1, %v12338_v14 }
  0xea   : > { %9806 = vmatprep.mubr.msk.f32.mxu0 %vm514_vm1, %v12341_v15 }
  0xed   : > { %9807 = vmatmul.mubr.msk.f32.gmra.mrb[6].mxu0 %vm514_vm1, %v12348_v16 }
  0xee   : > { %9809 = vmatprep.mubr.msk.f32.mxu0 %vm514_vm1, %v12351_v17 }
  0xf1   : > { %9810 = vmatmul.mubr.msk.f32.gmra.mrb[8].mxu0 %vm514_vm1, %v12358_v18 }
  0xf2   : > { %9812 = vmatprep.mubr.msk.f32.mxu0 %vm514_vm1, %v12361_v19 }
  0xf5   : > { %9813 = vmatmul.mubr.msk.f32.gmra.mrb[10].mxu0 %vm514_vm1, %v1239_v20 }
  0xf6   : > { %9815 = vmatprep.mubr.msk.f32.mxu0 %vm514_vm1, %v1240_v21 }
  0xf9   : > { %9816 = vmatmul.mubr.msk.f32.gmra.mrb[12].mxu0 %vm514_vm1, %v1241_v22 }
  0xfa   : > { %9818 = vmatprep.mubr.msk.f32.mxu0 %vm514_vm1, %v1242_v23 }
  0xfd   : > { %9819 = vmatmul.mubr.msk.f32.gmra.mrb[14].mxu0 %vm514_vm1, %v1243_v24 }
  0xfe   : > { %9821 = vmatprep.mubr.msk.f32.mxu0 %vm514_vm1, %v1244_v25 }
 0x101   : > { %9822 = vmatmul.mubr.msk.f32.gmra.mrb[16].mxu0 %vm514_vm1, %v1245_v26 }
 0x102   : > { %9824 = vmatprep.mubr.msk.f32.mxu0 %vm514_vm1, %v1246_v27 }
 0x105   : > { %9825 = vmatmul.mubr.msk.f32.gmra.mrb[18].mxu0 %vm514_vm1, %v1247_v28 }
 0x106   : > { %9827 = vmatprep.mubr.msk.f32.mxu0 %vm514_vm1, %v1248_v29 }
 0x109   : > { %9828 = vmatmul.mubr.msk.f32.gmra.mrb[20].mxu0 %vm514_vm1, %v1249_v30 }
 0x10a   : > { %9830 = vmatprep.mubr.msk.f32.mxu0 %vm514_vm1, %v1250_v31 }
 0x10d   : > { %9831 = vmatmul.mubr.msk.f32.gmra.mrb[22].mxu0 %vm514_vm1, %v1251_v32 }
 0x10e   : > { %9833 = vmatprep.mubr.msk.f32.mxu0 %vm514_vm1, %v1252_v33 }
 0x111   : > { %9834 = vmatmul.mubr.msk.f32.gmra.mrb[24].mxu0 %vm514_vm1, %v1253_v34 }
 0x112   : > { %9836 = vmatprep.mubr.msk.f32.mxu0 %vm514_vm1, %v1254_v35 }
 0x115   : > { %9837 = vmatmul.mubr.msk.f32.gmra.mrb[26].mxu0 %vm514_vm1, %v1255_v36 }
 0x116   : > { %9839 = vmatprep.mubr.msk.f32.mxu0 %vm514_vm1, %v1256_v37 }
 0x119   : > { %9840 = vmatmul.mubr.msk.f32.gmra.mrb[28].mxu0 %vm514_vm1, %v1257_v38 }
 0x11a   : > { %9842 = vmatprep.mubr.msk.f32.mxu0 %vm514_vm1, %v1258_v39 }
 0x11d   : > { %9843 = vmatmul.mubr.msk.f32.gmra.mrb[30].mxu0 %vm514_vm1, %v1259_v40 }
 0x11e   : > { %9845 = vmatprep.mubr.msk.f32.mxu0 %vm514_vm1, %v1260_v41 }
 0x121   : > { %9846 = vmatmul.mubr.msk.f32.gmra.mrb[32].mxu0 %vm514_vm1, %v1261_v42 }
 0x122   : > { %9848 = vmatprep.mubr.msk.f32.mxu0 %vm514_vm1, %v1262_v43 }
 0x125   : > { %9849 = vmatmul.mubr.msk.f32.gmra.mrb[34].mxu0 %vm514_vm1, %v1263_v44  ;;  %v2539_v44 = vld [vmem:[%s12147_s16 + $0xbc] sm:$0xff] }
 0x126   : > { %9853 = vmatprep.mubr.msk.f32.mxu0 %vm514_vm1, %v12313_v10  ;;  %v2112_v10 = vld [vmem:[%s12147_s16 + $0xd3] sm:$0xff] }
 0x129   : > { %9854 = vmatmul.mubr.msk.f32.vlgmr.msra.gmra.mrb[0].mxu0 %vm514_vm1, %v12326_v12  ;;  %v2114_v12 = vld [vmem:[%s12147_s16 + $0xe3] sm:$0xff] }
 0x12a   : > { %9908 = vmatpush3.msk.msra.mxu0 %vm623_vm0, %v12318_v11  ;;  %9856 = vmatprep.mubr.msk.f32.mxu0 %vm514_vm1, %v12329_v13  ;;  %v2113_v11 = vld [vmem:[%s12147_s16 + $0xdb] sm:$0xff]  ;;  %v2115_v13 = vld [vmem:[%s12147_s16 + $0xeb] sm:$0xff] }
 0x12b   : > { %9963 = vmatprep.subr.msk.mxu0 %vm623_vm0, %v8549_v45 }
 0x12d   : > { %9857 = vmatmul.mubr.msk.f32.gmra.mrb[2].mxu0 %vm514_vm1, %v12338_v14  ;;  %v2116_v14 = vld [vmem:[%s12147_s16 + $0xf3] sm:$0xff] }
 0x12e   : > { %9859 = vmatprep.mubr.msk.f32.mxu0 %vm514_vm1, %v12341_v15  ;;  %v2117_v15 = vld [vmem:[%s12147_s16 + $0xfb] sm:$0xff] }
 0x131   : > { %9860 = vmatmul.mubr.msk.f32.gmra.mrb[4].mxu0 %vm514_vm1, %v12348_v16  ;;  %v2118_v16 = vld [vmem:[%s12147_s16 + $0x103] sm:$0xff] }
 0x132   : > { %9862 = vmatprep.mubr.msk.f32.mxu0 %vm514_vm1, %v12351_v17  ;;  %v2119_v17 = vld [vmem:[%s12147_s16 + $0x10b] sm:$0xff] }
 0x135   : > { %9863 = vmatmul.mubr.msk.f32.gmra.mrb[6].mxu0 %vm514_vm1, %v12358_v18  ;;  %v2120_v18 = vld [vmem:[%s12147_s16 + $0x113] sm:$0xff] }
 0x136   : > { %9865 = vmatprep.mubr.msk.f32.mxu0 %vm514_vm1, %v12361_v19  ;;  %v2121_v19 = vld [vmem:[%s12147_s16 + $0x11b] sm:$0xff] }
 0x139   : > { %9866 = vmatmul.mubr.msk.f32.gmra.mrb[8].mxu0 %vm514_vm1, %v1239_v20  ;;  %v2122_v20 = vld [vmem:[%s12147_s16 + $0x123] sm:$0xff] }
 0x13a   : > { %9868 = vmatprep.mubr.msk.f32.mxu0 %vm514_vm1, %v1240_v21  ;;  %v2123_v21 = vld [vmem:[%s12147_s16 + $0x12b] sm:$0x3f] }
 0x13d   : > { %9869 = vmatmul.mubr.msk.f32.gmra.mrb[10].mxu0 %vm514_vm1, %v1241_v22  ;;  %v2518_v22 = vld [vmem:[%s12147_s16 + $0x14] sm:$0xff] }
 0x13e   : > { %9871 = vmatprep.mubr.msk.f32.mxu0 %vm514_vm1, %v1242_v23  ;;  %v2519_v23 = vld [vmem:[%s12147_s16 + $0x1c] sm:$0xff] }
 0x141   : > { %9872 = vmatmul.mubr.msk.f32.gmra.mrb[12].mxu0 %vm514_vm1, %v1243_v24  ;;  %v12555_v24 = vld [vmem:[%s12147_s16 + $0x24] sm:$0xff] }
 0x142   : > { %9874 = vmatprep.mubr.msk.f32.mxu0 %vm514_vm1, %v1244_v25  ;;  %v12560_v25 = vld [vmem:[%s13967_s1 + $0x1c] sm:$0x7] }
 0x145   : > { %9875 = vmatmul.mubr.msk.f32.gmra.mrb[14].mxu0 %vm514_vm1, %v1245_v26  ;;  %v12568_v26 = vld [vmem:[%s12147_s16 + $0x2c] sm:$0xff] }
 0x146   : > { %9877 = vmatprep.mubr.msk.f32.mxu0 %vm514_vm1, %v1246_v27  ;;  %v12571_v27 = vld [vmem:[%s12147_s16 + $0x34] sm:$0xff] }
 0x149   : > { %9878 = vmatmul.mubr.msk.f32.gmra.mrb[16].mxu0 %vm514_vm1, %v1247_v28  ;;  %v12580_v28 = vld [vmem:[%s12147_s16 + $0x3c] sm:$0xff] }
 0x14a   : > { %9880 = vmatprep.mubr.msk.f32.mxu0 %vm514_vm1, %v1248_v29  ;;  %v12583_v29 = vld [vmem:[%s12147_s16 + $0x44] sm:$0xff] }
 0x14d   : > { %9881 = vmatmul.mubr.msk.f32.gmra.mrb[18].mxu0 %vm514_vm1, %v1249_v30  ;;  %v12590_v30 = vld [vmem:[%s12147_s16 + $0x4c] sm:$0xff] }
 0x14e   : > { %9883 = vmatprep.mubr.msk.f32.mxu0 %vm514_vm1, %v1250_v31  ;;  %v12593_v31 = vld [vmem:[%s12147_s16 + $0x54] sm:$0xff] }
 0x151   : > { %9884 = vmatmul.mubr.msk.f32.gmra.mrb[20].mxu0 %vm514_vm1, %v1251_v32  ;;  %v12600_v32 = vld [vmem:[%s12147_s16 + $0x5c] sm:$0xff] }
 0x152   : > { %9886 = vmatprep.mubr.msk.f32.mxu0 %vm514_vm1, %v1252_v33  ;;  %v12603_v33 = vld [vmem:[%s12147_s16 + $0x64] sm:$0xff] }
 0x155   : > { %9887 = vmatmul.mubr.msk.f32.gmra.mrb[22].mxu0 %vm514_vm1, %v1253_v34  ;;  %v2529_v34 = vld [vmem:[%s12147_s16 + $0x6c] sm:$0xff] }
 0x156   : > { %9889 = vmatprep.mubr.msk.f32.mxu0 %vm514_vm1, %v1254_v35  ;;  %v2530_v35 = vld [vmem:[%s12147_s16 + $0x74] sm:$0xff] }
 0x159   : > { %9890 = vmatmul.mubr.msk.f32.gmra.mrb[24].mxu0 %vm514_vm1, %v1255_v36  ;;  %v2531_v36 = vld [vmem:[%s12147_s16 + $0x7c] sm:$0xff] }
 0x15a   : > { %9892 = vmatprep.mubr.msk.f32.mxu0 %vm514_vm1, %v1256_v37  ;;  %v2532_v37 = vld [vmem:[%s12147_s16 + $0x84] sm:$0xff] }
 0x15d   : > { %9893 = vmatmul.mubr.msk.f32.gmra.mrb[26].mxu0 %vm514_vm1, %v1257_v38  ;;  %v2533_v38 = vld [vmem:[%s12147_s16 + $0x8c] sm:$0xff] }
 0x15e   : > { %9895 = vmatprep.mubr.msk.f32.mxu0 %vm514_vm1, %v1258_v39  ;;  %v2534_v39 = vld [vmem:[%s12147_s16 + $0x94] sm:$0xff] }
 0x161   : > { %9896 = vmatmul.mubr.msk.f32.gmra.mrb[28].mxu0 %vm514_vm1, %v1259_v40  ;;  %v2535_v40 = vld [vmem:[%s12147_s16 + $0x9c] sm:$0xff] }
 0x162   : > { %9898 = vmatprep.mubr.msk.f32.mxu0 %vm514_vm1, %v1260_v41  ;;  %v2536_v41 = vld [vmem:[%s12147_s16 + $0xa4] sm:$0xff] }
 0x165   : > { %9899 = vmatmul.mubr.msk.f32.gmra.mrb[30].mxu0 %vm514_vm1, %v1261_v42  ;;  %v2537_v42 = vld [vmem:[%s12147_s16 + $0xac] sm:$0xff] }
 0x166   : > { %9901 = vmatprep.mubr.msk.f32.mxu0 %vm514_vm1, %v1262_v43  ;;  %v2538_v43 = vld [vmem:[%s12147_s16 + $0xb4] sm:$0xff] }
 0x169   : > { %9902 = vmatmul.mubr.msk.f32.gmra.mrb[32].mxu0 %vm514_vm1, %v1691_v46  ;;  %v2541_v46 = vld [vmem:[%s12147_s16 + $0xcc] sm:$0xff] }
 0x16a   : > { %9904 = vmatprep.mubr.msk.f32.mxu0 %vm514_vm1, %v1692_v47  ;;  %v2542_v47 = vld [vmem:[%s12147_s16 + $0xd4] sm:$0xff] }
 0x16d   : > { %9905 = vmatmul.mubr.msk.f32.gmra.mrb[34].mxu0 %vm514_vm1, %v1693_v48  ;;  %v2543_v48 = vld [vmem:[%s12147_s16 + $0xdc] sm:$0xff] }
 0x16e   : > { %9909 = vmatprep.mubr.msk.f32.mxu0 %vm514_vm1, %v2088_v49  ;;  %v2544_v49 = vld [vmem:[%s12147_s16 + $0xe4] sm:$0xff] }
 0x171   : > { %9910 = vmatmul.mubr.msk.f32.vlgmr.msra.gmra.mrb[0].mxu0 %vm514_vm1, %v2089_v50  ;;  %v2545_v50 = vld [vmem:[%s12147_s16 + $0xec] sm:$0xff] }
 0x172   : > { %9964 = vmatpush3.msk.msra.mxu0 %vm623_vm0, %v8549_v45  ;;  %9912 = vmatprep.mubr.msk.f32.mxu0 %vm514_vm1, %v2090_v51  ;;  %v2540_v45 = vld [vmem:[%s12147_s16 + $0xc4] sm:$0xff]  ;;  %v2546_v51 = vld [vmem:[%s12147_s16 + $0xf4] sm:$0xff] }
 0x173   : > { %10019 = vmatprep.subr.msk.mxu0 %vm623_vm0, %v12478_v52 }
 0x175   : > { %9913 = vmatmul.mubr.msk.f32.gmra.mrb[2].mxu0 %vm514_vm1, %v2091_v53  ;;  %v2548_v53 = vld [vmem:[%s12147_s16 + $0x104] sm:$0xff] }
 0x176   : > { %9915 = vmatprep.mubr.msk.f32.mxu0 %vm514_vm1, %v2092_v54  ;;  %v2549_v54 = vld [vmem:[%s12147_s16 + $0x10c] sm:$0xff] }
 0x179   : > { %9916 = vmatmul.mubr.msk.f32.gmra.mrb[4].mxu0 %vm514_vm1, %v2093_v55  ;;  %v2550_v55 = vld [vmem:[%s12147_s16 + $0x114] sm:$0xff] }
 0x17a   : > { %9918 = vmatprep.mubr.msk.f32.mxu0 %vm514_vm1, %v2094_v56  ;;  %v2551_v56 = vld [vmem:[%s12147_s16 + $0x11c] sm:$0xff] }
 0x17d   : > { %9919 = vmatmul.mubr.msk.f32.gmra.mrb[6].mxu0 %vm514_vm1, %v2095_v57  ;;  %v2552_v57 = vld [vmem:[%s12147_s16 + $0x124] sm:$0xff] }
 0x17e   : > { %9921 = vmatprep.mubr.msk.f32.mxu0 %vm514_vm1, %v2096_v58  ;;  %v2553_v58 = vld [vmem:[%s12147_s16 + $0x12c] sm:$0x3f] }
 0x181   : > { %9922 = vmatmul.mubr.msk.f32.gmra.mrb[8].mxu0 %vm514_vm1, %v2097_v59  ;;  %v8663_v59 = vld [vmem:[%s13967_s1 + $0x20] sm:$0x7] }
 0x182   : > { %9924 = vmatprep.mubr.msk.f32.mxu0 %vm514_vm1, %v2098_v60  ;;  %v2981_v60 = vld [vmem:[%s12147_s16 + $0x12c] sm:$0xff] }
 0x185   : > { %9925 = vmatmul.mubr.msk.f32.gmra.mrb[10].mxu0 %vm514_vm1, %v2099_v61  ;;  %v2982_v61 = vld [vmem:[%s12147_s16 + $0x134] sm:$0xff] }
 0x186   : > { %9927 = vmatprep.mubr.msk.f32.mxu0 %vm514_vm1, %v2100_v62  ;;  %v2983_v62 = vld [vmem:[%s12147_s16 + $0x13c] sm:$0x3f] }
 0x189   : > { %9928 = vmatmul.mubr.msk.f32.gmra.mrb[12].mxu0 %vm514_vm1, %v2101_v63  ;;  %v3378_v63 = vld [vmem:[%s12147_s16 + $0x25] sm:$0xff] }
 0x18a   : > { %9930 = vmatprep.mubr.msk.f32.mxu0 %vm514_vm1, %v2102_v0  ;;  %v3379_v0 = vld [vmem:[%s12147_s16 + $0x2d] sm:$0xff] }
 0x18d   : > { %9931 = vmatmul.mubr.msk.f32.gmra.mrb[14].mxu0 %vm514_vm1, %v2103_v1  ;;  %v3380_v1 = vld [vmem:[%s12147_s16 + $0x35] sm:$0xff] }
 0x18e   : > { %9933 = vmatprep.mubr.msk.f32.mxu0 %vm514_vm1, %v2104_v2  ;;  %v3381_v2 = vld [vmem:[%s12147_s16 + $0x3d] sm:$0xff] }
 0x191   : > { %9934 = vmatmul.mubr.msk.f32.gmra.mrb[16].mxu0 %vm514_vm1, %v2105_v3  ;;  %v3382_v3 = vld [vmem:[%s12147_s16 + $0x45] sm:$0xff] }
 0x192   : > { %9936 = vmatprep.mubr.msk.f32.mxu0 %vm514_vm1, %v2106_v4  ;;  %v508_v4 = vld [vmem:[%s12147_s16 + $0x101] sm:$0xff] }
 0x193   : > { %9733 = vmatprep.mubr.msk.f32.mxu1 %vm514_vm1, %v508_v4  ;;  %v3837_v4 = vld [vmem:[%s12147_s16 + $0x10e] sm:$0xff] }
 0x195   : > { %9937 = vmatmul.mubr.msk.f32.gmra.mrb[18].mxu0 %vm514_vm1, %v2107_v5  ;;  %v3383_v5 = vld [vmem:[%s12147_s16 + $0x4d] sm:$0xff] }
 0x196   : > { %9939 = vmatprep.mubr.msk.f32.mxu0 %vm514_vm1, %v2108_v6  ;;  %v509_v6 = vld [vmem:[%s12147_s16 + $0x109] sm:$0xff] }
 0x197   : > { %9734 = vmatmul.mubr.msk.f32.vlgmr.msra.gmra.mrb[0].mxu1 %vm514_vm1, %v509_v6  ;;  %v3839_v6 = vld [vmem:[%s12147_s16 + $0x11e] sm:$0xff] }
 0x199   : > { %9940 = vmatmul.mubr.msk.f32.gmra.mrb[20].mxu0 %vm514_vm1, %v2109_v7  ;;  %v3384_v7 = vld [vmem:[%s12147_s16 + $0x55] sm:$0xff] }
 0x19a   : > { %9942 = vmatprep.mubr.msk.f32.mxu0 %vm514_vm1, %v2110_v8  ;;  %v510_v8 = vld [vmem:[%s12147_s16 + $0x111] sm:$0xff] }
 0x19b   : > { %9736 = vmatprep.mubr.msk.f32.mxu1 %vm514_vm1, %v510_v8  ;;  %v3841_v8 = vld [vmem:[%s12147_s16 + $0x12e] sm:$0xff] }
 0x19d   : > { %9943 = vmatmul.mubr.msk.f32.gmra.mrb[22].mxu0 %vm514_vm1, %v2111_v9  ;;  %v3385_v9 = vld [vmem:[%s12147_s16 + $0x5d] sm:$0xff] }
 0x19e   : > { %9945 = vmatprep.mubr.msk.f32.mxu0 %vm514_vm1, %v2112_v10  ;;  %v511_v10 = vld [vmem:[%s12147_s16 + $0x119] sm:$0x3f] }
 0x19f   : > { %9737 = vmatmul.mubr.msk.f32.gmra.mrb[2].mxu1 %vm514_vm1, %v511_v10  ;;  %v3843_v10 = vld [vmem:[%s12147_s16 + $0x13e] sm:$0x3f] }
 0x1a1   : > { %9946 = vmatmul.mubr.msk.f32.gmra.mrb[24].mxu0 %vm514_vm1, %v2113_v11  ;;  %v3386_v11 = vld [vmem:[%s12147_s16 + $0x65] sm:$0xff] }
 0x1a2   : > { %9948 = vmatprep.mubr.msk.f32.mxu0 %vm514_vm1, %v2114_v12  ;;  %v3387_v12 = vld [vmem:[%s12147_s16 + $0x6d] sm:$0xff] }
 0x1a5   : > { %9949 = vmatmul.mubr.msk.f32.gmra.mrb[26].mxu0 %vm514_vm1, %v2115_v13  ;;  %v3388_v13 = vld [vmem:[%s12147_s16 + $0x75] sm:$0xff] }
 0x1a6   : > { %9951 = vmatprep.mubr.msk.f32.mxu0 %vm514_vm1, %v2116_v14  ;;  %v3389_v14 = vld [vmem:[%s12147_s16 + $0x7d] sm:$0xff] }
 0x1a9   : > { %9952 = vmatmul.mubr.msk.f32.gmra.mrb[28].mxu0 %vm514_vm1, %v2117_v15  ;;  %v3390_v15 = vld [vmem:[%s12147_s16 + $0x85] sm:$0xff] }
 0x1aa   : > { %9954 = vmatprep.mubr.msk.f32.mxu0 %vm514_vm1, %v2118_v16  ;;  %v3391_v16 = vld [vmem:[%s12147_s16 + $0x8d] sm:$0xff] }
 0x1ad   : > { %9955 = vmatmul.mubr.msk.f32.gmra.mrb[30].mxu0 %vm514_vm1, %v2119_v17  ;;  %v3392_v17 = vld [vmem:[%s12147_s16 + $0x95] sm:$0xff] }
 0x1ae   : > { %9957 = vmatprep.mubr.msk.f32.mxu0 %vm514_vm1, %v2120_v18  ;;  %v3393_v18 = vld [vmem:[%s12147_s16 + $0x9d] sm:$0xff] }
 0x1b1   : > { %9958 = vmatmul.mubr.msk.f32.gmra.mrb[32].mxu0 %vm514_vm1, %v2121_v19  ;;  %v3394_v19 = vld [vmem:[%s12147_s16 + $0xa5] sm:$0xff] }
 0x1b2   : > { %9960 = vmatprep.mubr.msk.f32.mxu0 %vm514_vm1, %v2122_v20  ;;  %v3395_v20 = vld [vmem:[%s12147_s16 + $0xad] sm:$0xff] }
 0x1b5   : > { %9961 = vmatmul.mubr.msk.f32.gmra.mrb[34].mxu0 %vm514_vm1, %v2123_v21  ;;  %v3396_v21 = vld [vmem:[%s12147_s16 + $0xb5] sm:$0xff] }
 0x1b6   : > { %9965 = vmatprep.mubr.msk.f32.mxu0 %vm514_vm1, %v2518_v22  ;;  %v3397_v22 = vld [vmem:[%s12147_s16 + $0xbd] sm:$0xff] }
 0x1b9   : > { %9966 = vmatmul.mubr.msk.f32.vlgmr.msra.gmra.mrb[0].mxu0 %vm514_vm1, %v2519_v23  ;;  %v3398_v23 = vld [vmem:[%s12147_s16 + $0xc5] sm:$0xff] }
 0x1ba   : > { %10020 = vmatpush3.msk.msra.mxu0 %vm623_vm0, %v12478_v52  ;;  %9968 = vmatprep.mubr.msk.f32.mxu0 %vm514_vm1, %v12555_v24  ;;  %v2547_v52 = vld [vmem:[%s12147_s16 + $0xfc] sm:$0xff] }
 0x1bb   : > { %10075 = vmatprep.subr.msk.mxu0 %vm623_vm0, %v12560_v25 }
 0x1bd   : > { %9969 = vmatmul.mubr.msk.f32.gmra.mrb[2].mxu0 %vm514_vm1, %v12568_v26 }
 0x1be   : > { %9971 = vmatprep.mubr.msk.f32.mxu0 %vm514_vm1, %v12571_v27 }
 0x1c1   : > { %9972 = vmatmul.mubr.msk.f32.gmra.mrb[4].mxu0 %vm514_vm1, %v12580_v28 }
 0x1c2   : > { %9974 = vmatprep.mubr.msk.f32.mxu0 %vm514_vm1, %v12583_v29 }
 0x1c5   : > { %9975 = vmatmul.mubr.msk.f32.gmra.mrb[6].mxu0 %vm514_vm1, %v12590_v30 }
 0x1c6   : > { %9977 = vmatprep.mubr.msk.f32.mxu0 %vm514_vm1, %v12593_v31 }
 0x1c9   : > { %9978 = vmatmul.mubr.msk.f32.gmra.mrb[8].mxu0 %vm514_vm1, %v12600_v32 }
 0x1ca   : > { %9980 = vmatprep.mubr.msk.f32.mxu0 %vm514_vm1, %v12603_v33 }
 0x1cd   : > { %9981 = vmatmul.mubr.msk.f32.gmra.mrb[10].mxu0 %vm514_vm1, %v2529_v34 }
 0x1ce   : > { %9983 = vmatprep.mubr.msk.f32.mxu0 %vm514_vm1, %v2530_v35 }
 0x1d1   : > { %9984 = vmatmul.mubr.msk.f32.gmra.mrb[12].mxu0 %vm514_vm1, %v2531_v36 }
 0x1d2   : > { %9986 = vmatprep.mubr.msk.f32.mxu0 %vm514_vm1, %v2532_v37 }
 0x1d5   : > { %9987 = vmatmul.mubr.msk.f32.gmra.mrb[14].mxu0 %vm514_vm1, %v2533_v38 }
 0x1d6   : > { %9989 = vmatprep.mubr.msk.f32.mxu0 %vm514_vm1, %v2534_v39 }
 0x1d9   : > { %9990 = vmatmul.mubr.msk.f32.gmra.mrb[16].mxu0 %vm514_vm1, %v2535_v40 }
 0x1da   : > { %9992 = vmatprep.mubr.msk.f32.mxu0 %vm514_vm1, %v2536_v41 }
 0x1dd   : > { %9993 = vmatmul.mubr.msk.f32.gmra.mrb[18].mxu0 %vm514_vm1, %v2537_v42 }
 0x1de   : > { %9995 = vmatprep.mubr.msk.f32.mxu0 %vm514_vm1, %v2538_v43 }
 0x1e1   : > { %9996 = vmatmul.mubr.msk.f32.gmra.mrb[20].mxu0 %vm514_vm1, %v2539_v44 }
 0x1e2   : > { %9998 = vmatprep.mubr.msk.f32.mxu0 %vm514_vm1, %v2540_v45 }
 0x1e5   : > { %9999 = vmatmul.mubr.msk.f32.gmra.mrb[22].mxu0 %vm514_vm1, %v2541_v46 }
 0x1e6   : > { %10001 = vmatprep.mubr.msk.f32.mxu0 %vm514_vm1, %v2542_v47 }
 0x1e9   : > { %10002 = vmatmul.mubr.msk.f32.gmra.mrb[24].mxu0 %vm514_vm1, %v2543_v48 }
 0x1ea   : > { %10004 = vmatprep.mubr.msk.f32.mxu0 %vm514_vm1, %v2544_v49 }
 0x1ed   : > { %10005 = vmatmul.mubr.msk.f32.gmra.mrb[26].mxu0 %vm514_vm1, %v2545_v50 }
 0x1ee   : > { %10007 = vmatprep.mubr.msk.f32.mxu0 %vm514_vm1, %v2546_v51 }
 0x1f1   : > { %10008 = vmatmul.mubr.msk.f32.gmra.mrb[28].mxu0 %vm514_vm1, %v2547_v52 }
 0x1f2   : > { %10010 = vmatprep.mubr.msk.f32.mxu0 %vm514_vm1, %v2548_v53 }
 0x1f5   : > { %10011 = vmatmul.mubr.msk.f32.gmra.mrb[30].mxu0 %vm514_vm1, %v2549_v54 }
 0x1f6   : > { %10013 = vmatprep.mubr.msk.f32.mxu0 %vm514_vm1, %v2550_v55 }
 0x1f9   : > { %10014 = vmatmul.mubr.msk.f32.gmra.mrb[32].mxu0 %vm514_vm1, %v2551_v56 }
 0x1fa   : > { %10016 = vmatprep.mubr.msk.f32.mxu0 %vm514_vm1, %v2552_v57 }
 0x1fd   : > { %10017 = vmatmul.mubr.msk.f32.gmra.mrb[34].mxu0 %vm514_vm1, %v2553_v58  ;;  %v3827_v58 = vld [vmem:[%s12147_s16 + $0xbe] sm:$0xff] }
 0x1fe   : > { %10021 = vmatprep.mubr.msk.f32.mxu0 %vm514_vm1, %v12555_v24  ;;  %v3399_v24 = vld [vmem:[%s12147_s16 + $0xcd] sm:$0xff] }
 0x201   : > { %10022 = vmatmul.mubr.msk.f32.vlgmr.msra.gmra.mrb[0].mxu0 %vm514_vm1, %v12568_v26  ;;  %v3401_v26 = vld [vmem:[%s12147_s16 + $0xdd] sm:$0xff] }
 0x202   : > { %10076 = vmatpush3.msk.msra.mxu0 %vm623_vm0, %v12560_v25  ;;  %10024 = vmatprep.mubr.msk.f32.mxu0 %vm514_vm1, %v12571_v27  ;;  %v3400_v25 = vld [vmem:[%s12147_s16 + $0xd5] sm:$0xff]  ;;  %v3402_v27 = vld [vmem:[%s12147_s16 + $0xe5] sm:$0xff] }
 0x203   : > { %10131 = vmatprep.subr.msk.mxu0 %vm623_vm0, %v8663_v59 }
 0x205   : > { %10025 = vmatmul.mubr.msk.f32.gmra.mrb[2].mxu0 %vm514_vm1, %v12580_v28  ;;  %v3403_v28 = vld [vmem:[%s12147_s16 + $0xed] sm:$0xff] }
 0x206   : > { %10027 = vmatprep.mubr.msk.f32.mxu0 %vm514_vm1, %v12583_v29  ;;  %v3404_v29 = vld [vmem:[%s12147_s16 + $0xf5] sm:$0xff] }
 0x209   : > { %10028 = vmatmul.mubr.msk.f32.gmra.mrb[4].mxu0 %vm514_vm1, %v12590_v30  ;;  %v3405_v30 = vld [vmem:[%s12147_s16 + $0xfd] sm:$0xff] }
 0x20a   : > { %10030 = vmatprep.mubr.msk.f32.mxu0 %vm514_vm1, %v12593_v31  ;;  %v3406_v31 = vld [vmem:[%s12147_s16 + $0x105] sm:$0xff] }
 0x20d   : > { %10031 = vmatmul.mubr.msk.f32.gmra.mrb[6].mxu0 %vm514_vm1, %v12600_v32  ;;  %v3407_v32 = vld [vmem:[%s12147_s16 + $0x10d] sm:$0xff] }
 0x20e   : > { %10033 = vmatprep.mubr.msk.f32.mxu0 %vm514_vm1, %v12603_v33  ;;  %v3408_v33 = vld [vmem:[%s12147_s16 + $0x115] sm:$0xff] }
 0x211   : > { %10034 = vmatmul.mubr.msk.f32.gmra.mrb[8].mxu0 %vm514_vm1, %v2529_v34  ;;  %v3409_v34 = vld [vmem:[%s12147_s16 + $0x11d] sm:$0xff] }
 0x212   : > { %10036 = vmatprep.mubr.msk.f32.mxu0 %vm514_vm1, %v2530_v35  ;;  %v3410_v35 = vld [vmem:[%s12147_s16 + $0x125] sm:$0xff] }
 0x215   : > { %10037 = vmatmul.mubr.msk.f32.gmra.mrb[10].mxu0 %vm514_vm1, %v2531_v36  ;;  %v3411_v36 = vld [vmem:[%s12147_s16 + $0x12d] sm:$0xff] }
 0x216   : > { %10039 = vmatprep.mubr.msk.f32.mxu0 %vm514_vm1, %v2532_v37  ;;  %v3412_v37 = vld [vmem:[%s12147_s16 + $0x135] sm:$0xff] }
 0x219   : > { %10040 = vmatmul.mubr.msk.f32.gmra.mrb[12].mxu0 %vm514_vm1, %v2533_v38  ;;  %v3413_v38 = vld [vmem:[%s12147_s16 + $0x13d] sm:$0x3f] }
 0x21a   : > { %10042 = vmatprep.mubr.msk.f32.mxu0 %vm514_vm1, %v2534_v39  ;;  %v3808_v39 = vld [vmem:[%s12147_s16 + $0x26] sm:$0xff] }
 0x21d   : > { %10043 = vmatmul.mubr.msk.f32.gmra.mrb[14].mxu0 %vm514_vm1, %v2535_v40  ;;  %v3809_v40 = vld [vmem:[%s12147_s16 + $0x2e] sm:$0xff] }
 0x21e   : > { %10045 = vmatprep.mubr.msk.f32.mxu0 %vm514_vm1, %v2536_v41  ;;  %v3810_v41 = vld [vmem:[%s12147_s16 + $0x36] sm:$0xff] }
 0x221   : > { %10046 = vmatmul.mubr.msk.f32.gmra.mrb[16].mxu0 %vm514_vm1, %v2537_v42  ;;  %v3811_v42 = vld [vmem:[%s12147_s16 + $0x3e] sm:$0xff] }
 0x222   : > { %10048 = vmatprep.mubr.msk.f32.mxu0 %vm514_vm1, %v2538_v43  ;;  %v3812_v43 = vld [vmem:[%s12147_s16 + $0x46] sm:$0xff] }
 0x225   : > { %10049 = vmatmul.mubr.msk.f32.gmra.mrb[18].mxu0 %vm514_vm1, %v2539_v44  ;;  %v3813_v44 = vld [vmem:[%s12147_s16 + $0x4e] sm:$0xff] }
 0x226   : > { %10051 = vmatprep.mubr.msk.f32.mxu0 %vm514_vm1, %v2540_v45  ;;  %v3814_v45 = vld [vmem:[%s12147_s16 + $0x56] sm:$0xff] }
 0x229   : > { %10052 = vmatmul.mubr.msk.f32.gmra.mrb[20].mxu0 %vm514_vm1, %v2541_v46  ;;  %v3815_v46 = vld [vmem:[%s12147_s16 + $0x5e] sm:$0xff] }
 0x22a   : > { %10054 = vmatprep.mubr.msk.f32.mxu0 %vm514_vm1, %v2542_v47  ;;  %v3816_v47 = vld [vmem:[%s12147_s16 + $0x66] sm:$0xff] }
 0x22d   : > { %10055 = vmatmul.mubr.msk.f32.gmra.mrb[22].mxu0 %vm514_vm1, %v2543_v48  ;;  %v3817_v48 = vld [vmem:[%s12147_s16 + $0x6e] sm:$0xff] }
 0x22e   : > { %10057 = vmatprep.mubr.msk.f32.mxu0 %vm514_vm1, %v2544_v49  ;;  %v3818_v49 = vld [vmem:[%s12147_s16 + $0x76] sm:$0xff] }
 0x231   : > { %10058 = vmatmul.mubr.msk.f32.gmra.mrb[24].mxu0 %vm514_vm1, %v2545_v50  ;;  %v3819_v50 = vld [vmem:[%s12147_s16 + $0x7e] sm:$0xff] }
 0x232   : > { %10060 = vmatprep.mubr.msk.f32.mxu0 %vm514_vm1, %v2546_v51  ;;  %v3820_v51 = vld [vmem:[%s12147_s16 + $0x86] sm:$0xff] }
 0x235   : > { %10061 = vmatmul.mubr.msk.f32.gmra.mrb[26].mxu0 %vm514_vm1, %v2547_v52  ;;  %v3821_v52 = vld [vmem:[%s12147_s16 + $0x8e] sm:$0xff] }
 0x236   : > { %10063 = vmatprep.mubr.msk.f32.mxu0 %vm514_vm1, %v2548_v53  ;;  %v3822_v53 = vld [vmem:[%s12147_s16 + $0x96] sm:$0xff] }
 0x239   : > { %10064 = vmatmul.mubr.msk.f32.gmra.mrb[28].mxu0 %vm514_vm1, %v2549_v54  ;;  %v3823_v54 = vld [vmem:[%s12147_s16 + $0x9e] sm:$0xff] }
 0x23a   : > { %10066 = vmatprep.mubr.msk.f32.mxu0 %vm514_vm1, %v2550_v55  ;;  %v3824_v55 = vld [vmem:[%s12147_s16 + $0xa6] sm:$0xff] }
 0x23d   : > { %10067 = vmatmul.mubr.msk.f32.gmra.mrb[30].mxu0 %vm514_vm1, %v2551_v56  ;;  %v3825_v56 = vld [vmem:[%s12147_s16 + $0xae] sm:$0xff] }
 0x23e   : > { %10069 = vmatprep.mubr.msk.f32.mxu0 %vm514_vm1, %v2552_v57  ;;  %v3826_v57 = vld [vmem:[%s12147_s16 + $0xb6] sm:$0xff] }
 0x241   : > { %10070 = vmatmul.mubr.msk.f32.gmra.mrb[32].mxu0 %vm514_vm1, %v2981_v60  ;;  %v3829_v60 = vld [vmem:[%s12147_s16 + $0xce] sm:$0xff] }
 0x242   : > { %10072 = vmatprep.mubr.msk.f32.mxu0 %vm514_vm1, %v2982_v61  ;;  %v3830_v61 = vld [vmem:[%s12147_s16 + $0xd6] sm:$0xff] }
 0x245   : > { %10073 = vmatmul.mubr.msk.f32.gmra.mrb[34].mxu0 %vm514_vm1, %v2983_v62  ;;  %v3831_v62 = vld [vmem:[%s12147_s16 + $0xde] sm:$0xff] }
 0x246   : > { %10077 = vmatprep.mubr.msk.f32.mxu0 %vm514_vm1, %v3378_v63  ;;  %v3832_v63 = vld [vmem:[%s12147_s16 + $0xe6] sm:$0xff] }
 0x249   : > { %10078 = vmatmul.mubr.msk.f32.vlgmr.msra.gmra.mrb[0].mxu0 %vm514_vm1, %v3379_v0  ;;  %v3833_v0 = vld [vmem:[%s12147_s16 + $0xee] sm:$0xff] }
 0x24a   : > { %10132 = vmatpush3.msk.msra.mxu0 %vm623_vm0, %v8663_v59  ;;  %10080 = vmatprep.mubr.msk.f32.mxu0 %vm514_vm1, %v3380_v1  ;;  %v3828_v59 = vld [vmem:[%s12147_s16 + $0xc6] sm:$0xff]  ;;  %v3834_v1 = vld [vmem:[%s12147_s16 + $0xf6] sm:$0xff] }
 0x24d   : > { %10081 = vmatmul.mubr.msk.f32.gmra.mrb[2].mxu0 %vm514_vm1, %v3381_v2  ;;  %v3835_v2 = vld [vmem:[%s12147_s16 + $0xfe] sm:$0xff] }
 0x24e   : > { %10083 = vmatprep.mubr.msk.f32.mxu0 %vm514_vm1, %v3382_v3  ;;  %v3836_v3 = vld [vmem:[%s12147_s16 + $0x106] sm:$0xff] }
 0x251   : > { %10084 = vmatmul.mubr.msk.f32.gmra.mrb[4].mxu0 %vm514_vm1, %v3383_v5  ;;  %v3838_v5 = vld [vmem:[%s12147_s16 + $0x116] sm:$0xff] }
 0x252   : > { %10086 = vmatprep.mubr.msk.f32.mxu0 %vm514_vm1, %v3384_v7  ;;  %v3840_v7 = vld [vmem:[%s12147_s16 + $0x126] sm:$0xff] }
 0x255   : > { %10087 = vmatmul.mubr.msk.f32.gmra.mrb[6].mxu0 %vm514_vm1, %v3385_v9  ;;  %v3842_v9 = vld [vmem:[%s12147_s16 + $0x136] sm:$0xff] }
 0x256   : > { %10089 = vmatprep.mubr.msk.f32.mxu0 %vm514_vm1, %v3386_v11  ;;  %v4750_v11 = vld [vmem:[#allocation8 + $0x20] sm:$0xff] }
 0x259   : > { %10090 = vmatmul.mubr.msk.f32.gmra.mrb[8].mxu0 %vm514_vm1, %v3387_v12  ;;  %v4751_v12 = vld [vmem:[#allocation8 + $0x28] sm:$0xff] }
 0x25a   : > { %10092 = vmatprep.mubr.msk.f32.mxu0 %vm514_vm1, %v3388_v13  ;;  %v10969_v13 = vpack.c.bf16 %v4751_v12, %v4750_v11 }
 0x25c   : > { %10970 = vmatprep.subr.bf16.mxu1 %v10969_v13 }
 0x25d   : > { %10093 = vmatmul.mubr.msk.f32.gmra.mrb[10].mxu0 %vm514_vm1, %v3389_v14  ;;  %v11958_v14 = vmov 0.0   ;;  %10972 = vmatpush3.bf16.msra.mxu1 %v10969_v13 }
 0x25e   : > { %10095 = vmatprep.mubr.msk.f32.mxu0 %vm514_vm1, %v3390_v15  ;;  %416 = vst.msk [vmem:[#allocation2] sm:$0xff] %vm415_vm2, %v11958_v14  ;;  %417 = vst.msk [vmem:[#allocation2 + $0x8] sm:$0xff] %vm415_vm2, %v11958_v14  ;;  %v4752_v15 = vld [vmem:[#allocation8 + $0x30] sm:$0xff] }
 0x25f   : > { %418 = vst.msk [vmem:[#allocation2 + $0x10] sm:$0xff] %vm415_vm2, %v11958_v14  ;;  %419 = vst.msk [vmem:[#allocation2 + $0x18] sm:$0xff] %vm415_vm2, %v11958_v14 }
 0x260   : > { %420 = vst.msk [vmem:[#allocation2 + $0x20] sm:$0xff] %vm415_vm2, %v11958_v14  ;;  %421 = vst.msk [vmem:[#allocation2 + $0x28] sm:$0xff] %vm415_vm2, %v11958_v14 }
 0x261   : > { %10096 = vmatmul.mubr.msk.f32.gmra.mrb[12].mxu0 %vm514_vm1, %v3391_v16  ;;  %422 = vst.msk [vmem:[#allocation2 + $0x30] sm:$0xff] %vm415_vm2, %v11958_v14  ;;  %423 = vst.msk [vmem:[#allocation2 + $0x38] sm:$0xff] %vm415_vm2, %v11958_v14  ;;  %v4753_v16 = vld [vmem:[#allocation8 + $0x38] sm:$0xff] }
 0x262   : > { %10098 = vmatprep.mubr.msk.f32.mxu0 %vm514_vm1, %v3392_v17  ;;  %424 = vst.msk [vmem:[#allocation2 + $0x40] sm:$0xff] %vm415_vm2, %v11958_v14  ;;  %425 = vst.msk [vmem:[#allocation2 + $0x48] sm:$0xff] %vm415_vm2, %v11958_v14  ;;  %v10973_v17 = vpack.c.bf16 %v4753_v16, %v4752_v15 }
 0x263   : > { %426 = vst.msk [vmem:[#allocation2 + $0x50] sm:$0xff] %vm415_vm2, %v11958_v14  ;;  %427 = vst.msk [vmem:[#allocation2 + $0x58] sm:$0xff] %vm415_vm2, %v11958_v14 }
 0x264   : > { %437 = vst [vmem:[#allocation4] sm:$0xff] %v11958_v14  ;;  %438 = vst [vmem:[#allocation4 + $0x8] sm:$0xff] %v11958_v14  ;;  %10974 = vmatprep.subr.bf16.mxu1 %v10973_v17 }
 0x265   : > { %10099 = vmatmul.mubr.msk.f32.gmra.mrb[14].mxu0 %vm514_vm1, %v3393_v18  ;;  %10976 = vmatpush3.bf16.msra.mxu1 %v10973_v17  ;;  %v4739_v18 = vld [vmem:[#allocation2 + $0x1] sm:$0xff]  ;;  %429 = vst.msk [vmem:[#allocation2 + $0x60] sm:$0xf] %vm428_vm6, %v11958_v14 }
 0x266   : > { %10101 = vmatprep.mubr.msk.f32.mxu0 %vm514_vm1, %v3394_v19  ;;  %10195 = vmatprep.mubr.msk.f32.mxu1 %vm415_vm2, %v4739_v18  ;;  %v5058_v14 = vld [vmem:[#allocation8 + $0x58] sm:$0xff] }
 0x269   : > { %10102 = vmatmul.mubr.msk.f32.gmra.mrb[16].mxu0 %vm514_vm1, %v3395_v20 }
 0x26a   : > { %10104 = vmatprep.mubr.msk.f32.mxu0 %vm514_vm1, %v3396_v21  ;;  %v12893_v19 = vpop.f32.mrb[0].mxu1 }
 0x26b   : > { %v12895_v20 = vpop.f32.mrb[1].mxu1 }
 0x26d   : > { %10105 = vmatmul.mubr.msk.f32.gmra.mrb[18].mxu0 %vm514_vm1, %v3397_v22 }
 0x26e   : > { %10107 = vmatprep.mubr.msk.f32.mxu0 %vm514_vm1, %v3398_v23  ;;  %v4735_v23 = vld [vmem:[#allocation8] sm:$0xff] }
 0x271   : > { %10108 = vmatmul.mubr.msk.f32.gmra.mrb[20].mxu0 %vm514_vm1, %v3399_v24  ;;  %v4736_v24 = vld [vmem:[#allocation8 + $0x8] sm:$0xff] }
 0x272   : > { %10110 = vmatprep.mubr.msk.f32.mxu0 %vm514_vm1, %v3400_v25  ;;  %v12897_v21 = vpop.f32.mrb[2].mxu1  ;;  %v12901_v25 = vpack.c.bf16 %v4736_v24, %v4735_v23 }
 0x273   : > { %v12899_v22 = vpop.f32.mrb[3].mxu1 }
 0x274   : > { %10978 = vmatprep.subr.bf16.mxu1 %v12901_v25 }
 0x275   : > { %10111 = vmatmul.mubr.msk.f32.gmra.mrb[22].mxu0 %vm514_vm1, %v3401_v26  ;;  %v12907_v26 = vld [vmem:[%s13968_s2] ss:$0 sm:$0xff] }
 0x276   : > { %10113 = vmatprep.mubr.msk.f32.mxu0 %vm514_vm1, %v3402_v27 }
 0x279   : > { %10114 = vmatmul.mubr.msk.f32.gmra.mrb[24].mxu0 %vm514_vm1, %v3403_v28 }
 0x27a   : > { %10116 = vmatprep.mubr.msk.f32.mxu0 %vm514_vm1, %v3404_v29 }
 0x27d   : > { %10117 = vmatmul.mubr.msk.f32.gmra.mrb[26].mxu0 %vm514_vm1, %v3405_v30 }
 0x27e   : > { %10119 = vmatprep.mubr.msk.f32.mxu0 %vm514_vm1, %v3406_v31 }
 0x281   : > { %10120 = vmatmul.mubr.msk.f32.gmra.mrb[28].mxu0 %vm514_vm1, %v3407_v32 }
 0x282   : > { %10122 = vmatprep.mubr.msk.f32.mxu0 %vm514_vm1, %v3408_v33 }
 0x285   : > { %10123 = vmatmul.mubr.msk.f32.gmra.mrb[30].mxu0 %vm514_vm1, %v3409_v34 }
 0x286   : > { %10125 = vmatprep.mubr.msk.f32.mxu0 %vm514_vm1, %v3410_v35 }
 0x289   : > { %10126 = vmatmul.mubr.msk.f32.gmra.mrb[32].mxu0 %vm514_vm1, %v3411_v36 }
 0x28a   : > { %10128 = vmatprep.mubr.msk.f32.mxu0 %vm514_vm1, %v3412_v37 }
 0x28d   : > { %10129 = vmatmul.mubr.msk.f32.gmra.mrb[34].mxu0 %vm514_vm1, %v3413_v38 }
 0x28e   : > { %10133 = vmatprep.mubr.msk.f32.mxu0 %vm514_vm1, %v3808_v39 }
 0x291   : > { %10134 = vmatmul.mubr.msk.f32.vlgmr.msra.gmra.mrb[0].mxu0 %vm514_vm1, %v3809_v40 }
 0x292   : > { %10136 = vmatprep.mubr.msk.f32.mxu0 %vm514_vm1, %v3810_v41 }
 0x295   : > { %10137 = vmatmul.mubr.msk.f32.gmra.mrb[2].mxu0 %vm514_vm1, %v3811_v42 }
 0x296   : > { %10139 = vmatprep.mubr.msk.f32.mxu0 %vm514_vm1, %v3812_v43 }
 0x299   : > { %10140 = vmatmul.mubr.msk.f32.gmra.mrb[4].mxu0 %vm514_vm1, %v3813_v44 }
 0x29a   : > { %10142 = vmatprep.mubr.msk.f32.mxu0 %vm514_vm1, %v3814_v45 }
 0x29d   : > { %10143 = vmatmul.mubr.msk.f32.gmra.mrb[6].mxu0 %vm514_vm1, %v3815_v46 }
 0x29e   : > { %10145 = vmatprep.mubr.msk.f32.mxu0 %vm514_vm1, %v3816_v47 }
 0x2a1   : > { %10146 = vmatmul.mubr.msk.f32.gmra.mrb[8].mxu0 %vm514_vm1, %v3817_v48 }
 0x2a2   : > { %10148 = vmatprep.mubr.msk.f32.mxu0 %vm514_vm1, %v3818_v49 }
 0x2a5   : > { %10149 = vmatmul.mubr.msk.f32.gmra.mrb[10].mxu0 %vm514_vm1, %v3819_v50 }
 0x2a6   : > { %10151 = vmatprep.mubr.msk.f32.mxu0 %vm514_vm1, %v3820_v51 }
 0x2a9   : > { %10152 = vmatmul.mubr.msk.f32.gmra.mrb[12].mxu0 %vm514_vm1, %v3821_v52 }
 0x2aa   : > { %10154 = vmatprep.mubr.msk.f32.mxu0 %vm514_vm1, %v3822_v53 }
 0x2ad   : > { %10155 = vmatmul.mubr.msk.f32.gmra.mrb[14].mxu0 %vm514_vm1, %v3823_v54 }
 0x2ae   : > { %10157 = vmatprep.mubr.msk.f32.mxu0 %vm514_vm1, %v3824_v55 }
 0x2b1   : > { %10158 = vmatmul.mubr.msk.f32.gmra.mrb[16].mxu0 %vm514_vm1, %v3825_v56 }
 0x2b2   : > { %10160 = vmatprep.mubr.msk.f32.mxu0 %vm514_vm1, %v3826_v57 }
 0x2b5   : > { %10161 = vmatmul.mubr.msk.f32.gmra.mrb[18].mxu0 %vm514_vm1, %v3827_v58 }
 0x2b6   : > { %10163 = vmatprep.mubr.msk.f32.mxu0 %vm514_vm1, %v3828_v59 }
 0x2b9   : > { %10164 = vmatmul.mubr.msk.f32.gmra.mrb[20].mxu0 %vm514_vm1, %v3829_v60 }
 0x2ba   : > { %10166 = vmatprep.mubr.msk.f32.mxu0 %vm514_vm1, %v3830_v61 }
 0x2bd   : > { %10167 = vmatmul.mubr.msk.f32.gmra.mrb[22].mxu0 %vm514_vm1, %v3831_v62 }
 0x2be   : > { %10169 = vmatprep.mubr.msk.f32.mxu0 %vm514_vm1, %v3832_v63 }
 0x2c1   : > { %10170 = vmatmul.mubr.msk.f32.gmra.mrb[24].mxu0 %vm514_vm1, %v3833_v0 }
 0x2c2   : > { %10172 = vmatprep.mubr.msk.f32.mxu0 %vm514_vm1, %v3834_v1 }
 0x2c5   : > { %10173 = vmatmul.mubr.msk.f32.gmra.mrb[26].mxu0 %vm514_vm1, %v3835_v2 }
 0x2c6   : > { %10175 = vmatprep.mubr.msk.f32.mxu0 %vm514_vm1, %v3836_v3 }
 0x2c9   : > { %10176 = vmatmul.mubr.msk.f32.gmra.mrb[28].mxu0 %vm514_vm1, %v3837_v4 }
 0x2ca   : > { %10178 = vmatprep.mubr.msk.f32.mxu0 %vm514_vm1, %v3838_v5 }
 0x2cd   : > { %10179 = vmatmul.mubr.msk.f32.gmra.mrb[30].mxu0 %vm514_vm1, %v3839_v6 }
 0x2ce   : > { %10181 = vmatprep.mubr.msk.f32.mxu0 %vm514_vm1, %v3840_v7 }
 0x2d1   : > { %10182 = vmatmul.mubr.msk.f32.gmra.mrb[32].mxu0 %vm514_vm1, %v3841_v8 }
 0x2d2   : > { %10184 = vmatprep.mubr.msk.f32.mxu0 %vm514_vm1, %v3842_v9 }
 0x2d5   : > { %10185 = vmatmul.mubr.msk.f32.gmra.mrb[34].mxu0 %vm514_vm1, %v3843_v10 }
 0x364   : > { %v10135_v27 = vpop.f32.mrb[0].mxu0 }
 0x365   : > { %v4246_v28 = vadd.f32 %v10135_v27, %v12907_v26  ;;  %v4023_v29 = vpop.f32.mrb[1].mxu0 }
 0x366   : > { %v4245_v30 = vadd.f32 %v12907_v26, %v4023_v29 }
 0x367   : > { %v4282_v31 = vmax.f32 %v4246_v28, 0.0 }
 0x368   : > { %v4281_v32 = vmax.f32 %v4245_v30, 0.0  ;;  %v10138_v33 = vpop.f32.mrb[2].mxu0 }
 0x369   : > { %v4355_v34 = vrot.slane %v4282_v31, 1  ;;  %v4248_v35 = vadd.f32 %v10138_v33, %v12907_v26  ;;  %v4033_v36 = vpop.f32.mrb[3].mxu0 }
 0x36a   : > { %v4354_v37 = vrot.slane %v4281_v32, 1  ;;  %v4247_v38 = vadd.f32 %v12907_v26, %v4033_v36 }
 0x36b   : > { %v4284_v39 = vmax.f32 %v4248_v35, 0.0 }
 0x36c   : > { %v4356_v40 = vsel %vm4353_vm3, %v4354_v37, %v4355_v34  ;;  %v4283_v41 = vmax.f32 %v4247_v38, 0.0  ;;  %v10141_v42 = vpop.f32.mrb[4].mxu0 }
 0x36d   : > { %v4461_v43 = vmax.f32 %v4281_v32, %v4356_v40  ;;  %v4359_v44 = vrot.slane %v4284_v39, 1  ;;  %v4250_v45 = vadd.f32 %v10141_v42, %v12907_v26  ;;  %v4043_v46 = vpop.f32.mrb[5].mxu0 }
 0x36e   : > { %v4357_v47 = vrot.slane %v4283_v41, 1  ;;  %v4249_v48 = vadd.f32 %v12907_v26, %v4043_v46 }
 0x36f   : > { %v4286_v49 = vmax.f32 %v4250_v45, 0.0 }
 0x370   : > { %v4358_v50 = vsel %vm4353_vm3, %v4355_v34, %v4357_v47  ;;  %v4360_v51 = vsel %vm4353_vm3, %v4357_v47, %v4359_v44  ;;  %v4285_v52 = vmax.f32 %v4249_v48, 0.0  ;;  %v10144_v53 = vpop.f32.mrb[6].mxu0 }
 0x371   : > { %v4462_v54 = vmax.f32 %v4282_v31, %v4358_v50  ;;  %v4463_v55 = vmax.f32 %v4283_v41, %v4360_v51  ;;  %v4363_v56 = vrot.slane %v4286_v49, 1  ;;  %v4252_v57 = vadd.f32 %v10144_v53, %v12907_v26  ;;  %v4053_v58 = vpop.f32.mrb[7].mxu0 }
 0x372   : > { %v4361_v59 = vrot.slane %v4285_v52, 1  ;;  %v4251_v60 = vadd.f32 %v12907_v26, %v4053_v58 }
 0x373   : > { %v4288_v61 = vmax.f32 %v4252_v57, 0.0  ;;  %v4532_v9 = vrot.slane %v4463_v55, 2  ;;  %v4738_v57 = vld [vmem:[#allocation8 + $0x18] sm:$0xff] }
 0x374   : > { %v4362_v62 = vsel %vm4353_vm3, %v4359_v44, %v4361_v59  ;;  %v4364_v63 = vsel %vm4353_vm3, %v4361_v59, %v4363_v56  ;;  %v4287_v0 = vmax.f32 %v4251_v60, 0.0  ;;  %v10147_v1 = vpop.f32.mrb[8].mxu0 }
 0x375   : > { %v4464_v2 = vmax.f32 %v4284_v39, %v4362_v62  ;;  %v4465_v3 = vmax.f32 %v4285_v52, %v4364_v63  ;;  %v4367_v4 = vrot.slane %v4288_v61, 1  ;;  %v4254_v5 = vadd.f32 %v10147_v1, %v12907_v26  ;;  %v4063_v6 = vpop.f32.mrb[9].mxu0 }
 0x376   : > { %v4365_v7 = vrot.slane %v4287_v0, 1  ;;  %v4253_v8 = vadd.f32 %v12907_v26, %v4063_v6 }
 0x377   : > { %v4533_v10 = vrot.slane %v4464_v2, 2  ;;  %v4535_v11 = vrot.slane %v4465_v3, 2  ;;  %v4290_v12 = vmax.f32 %v4254_v5, 0.0 }
 0x378   : > { %v4366_v13 = vsel %vm4353_vm3, %v4363_v56, %v4365_v7  ;;  %v4368_v15 = vsel %vm4353_vm3, %v4365_v7, %v4367_v4  ;;  %v4289_v16 = vmax.f32 %v4253_v8, 0.0  ;;  %v10150_v17 = vpop.f32.mrb[10].mxu0  ;;  %v4737_v56 = vld [vmem:[#allocation8 + $0x10] sm:$0xff] }
 0x379   : > { %v4534_v18 = vsel %vm4531_vm4, %v4532_v9, %v4533_v10  ;;  %v4536_v23 = vsel %vm4531_vm4, %v4533_v10, %v4535_v11  ;;  %v4466_v24 = vmax.f32 %v4286_v49, %v4366_v13  ;;  %v12928_v27 = vmax.f32 %v4287_v0, %v4368_v15  ;;  %v4073_v28 = vpop.f32.mrb[11].mxu0 }
 0x37a   : > { %v4633_v29 = vmax.f32 %v4461_v43, %v4534_v18  ;;  %v4634_v30 = vmax.f32 %v4462_v54, %v4536_v23  ;;  %v4371_v31 = vrot.slane %v4290_v12, 1  ;;  %v4369_v32 = vrot.slane %v4289_v16, 1 }
 0x37b   : > { %v4539_v33 = vrot.slane %v12928_v27, 2  ;;  %v4256_v34 = vadd.f32 %v10150_v17, %v12907_v26  ;;  %v4255_v35 = vadd.f32 %v12907_v26, %v4073_v28  ;;  %v10981_v6 = vpack.c.bf16 %v4738_v57, %v4737_v56 }
 0x37c   : > { %4667 = vst.msk [vmem:[#allocation5] sm:$0xff] %vm415_vm2, %v4633_v29  ;;  %4668 = vst.msk [vmem:[#allocation5 + $0x8] sm:$0xff] %vm415_vm2, %v4634_v30  ;;  %v4370_v36 = vsel %vm4353_vm3, %v4367_v4, %v4369_v32  ;;  %v4372_v37 = vsel %vm4353_vm3, %v4369_v32, %v4371_v31  ;;  %v10153_v38 = vpop.f32.mrb[12].mxu0 }
 0x37d   : > { %v4468_v39 = vmax.f32 %v4288_v61, %v4370_v36  ;;  %v4469_v40 = vmax.f32 %v4289_v16, %v4372_v37  ;;  %v4083_v41 = vpop.f32.mrb[13].mxu0  ;;  %v4292_v42 = vmax.f32 %v4256_v34, 0.0  ;;  %v4291_v43 = vmax.f32 %v4255_v35, 0.0 }
 0x37e   : > { %v4258_v46 = vadd.f32 %v10153_v38, %v12907_v26  ;;  %v4257_v47 = vadd.f32 %v12907_v26, %v4083_v41  ;;  %v5055_v38 = vld [vmem:[#allocation8 + $0x40] sm:$0xff] }
 0x37f   : > { %v4541_v44 = vrot.slane %v4468_v39, 2  ;;  %v4543_v45 = vrot.slane %v4469_v40, 2  ;;  %v4375_v48 = vrot.slane %v4292_v42, 1  ;;  %v4373_v49 = vrot.slane %v4291_v43, 1  ;;  %v5056_v39 = vld [vmem:[#allocation8 + $0x48] sm:$0xff] }
 0x380   : > { %v10156_v50 = vpop.f32.mrb[14].mxu0  ;;  %v4294_v53 = vmax.f32 %v4258_v46, 0.0  ;;  %v4293_v54 = vmax.f32 %v4257_v47, 0.0 }
 0x381   : > { %v4542_v51 = vsel %vm4531_vm4, %v4539_v33, %v4541_v44  ;;  %v4544_v52 = vsel %vm4531_vm4, %v4541_v44, %v4543_v45  ;;  %v4093_v55 = vpop.f32.mrb[15].mxu0  ;;  %v4374_v60 = vsel %vm4353_vm3, %v4371_v31, %v4373_v49  ;;  %v4376_v61 = vsel %vm4353_vm3, %v4373_v49, %v4375_v48 }
 0x382   : > { %v4637_v58 = vmax.f32 %v4465_v3, %v4542_v51  ;;  %v4638_v59 = vmax.f32 %v4466_v24, %v4544_v52  ;;  %v4470_v62 = vmax.f32 %v4290_v12, %v4374_v60  ;;  %v12943_v63 = vmax.f32 %v4291_v43, %v4376_v61 }
 0x383   : > { %v4379_v0 = vrot.slane %v4294_v53, 1  ;;  %v4377_v1 = vrot.slane %v4293_v54, 1  ;;  %v4702_v2 = vld [vmem:[#allocation5] ss:$2 sm:$0xff]  ;;  %v4260_v4 = vadd.f32 %v10156_v50, %v12907_v26  ;;  %v4259_v5 = vadd.f32 %v12907_v26, %v4093_v55 }
 0x384   : > { %4671 = vst.msk [vmem:[#allocation5 + $0x20] sm:$0xff] %vm415_vm2, %v4637_v58  ;;  %4672 = vst.msk [vmem:[#allocation5 + $0x28] sm:$0xff] %vm415_vm2, %v4638_v59  ;;  %v10159_v3 = vpop.f32.mrb[16].mxu0  ;;  %v4545_v7 = vrot.slane %v4470_v62, 2  ;;  %v12973_v52 = vpack.c.bf16 %v5056_v39, %v5055_v38 }
 0x385   : > { %4703 = vst.msk [vmem:[#allocation2 + $0xb] sm:$0xff] %vm415_vm2, %v4702_v2  ;;  %v4378_v8 = vsel %vm4353_vm3, %v4375_v48, %v4377_v1  ;;  %v4380_v9 = vsel %vm4353_vm3, %v4377_v1, %v4379_v0  ;;  %v4103_v10 = vpop.f32.mrb[17].mxu0  ;;  %v4296_v13 = vmax.f32 %v4260_v4, 0.0  ;;  %v4295_v15 = vmax.f32 %v4259_v5, 0.0 }
 0x386   : > { %v4472_v11 = vmax.f32 %v4292_v42, %v4378_v8  ;;  %v4473_v12 = vmax.f32 %v4293_v54, %v4380_v9  ;;  %v4546_v16 = vsel %vm4531_vm4, %v4543_v45, %v4545_v7  ;;  %v4262_v17 = vadd.f32 %v10159_v3, %v12907_v26 }
 0x387   : > { %v4261_v18 = vadd.f32 %v12907_v26, %v4103_v10  ;;  %v4639_v23 = vmax.f32 %v12928_v27, %v4546_v16  ;;  %v4383_v30 = vrot.slane %v4296_v13, 1  ;;  %v4381_v31 = vrot.slane %v4295_v15, 1 }
 0x388   : > { %v4549_v24 = vrot.slane %v4472_v11, 2  ;;  %v4551_v28 = vrot.slane %v4473_v12, 2  ;;  %v10162_v29 = vpop.f32.mrb[18].mxu0  ;;  %v4298_v32 = vmax.f32 %v4262_v17, 0.0 }
 0x389   : > { %v4297_v33 = vmax.f32 %v4261_v18, 0.0  ;;  %v4113_v34 = vpop.f32.mrb[19].mxu0  ;;  %4673 = vst.msk [vmem:[#allocation5 + $0x30] sm:$0xff] %vm415_vm2, %v4639_v23  ;;  %v12959_v36 = vadd.f32 %v10162_v29, %v12907_v26  ;;  %v4382_v40 = vsel %vm4353_vm3, %v4379_v0, %v4381_v31  ;;  %v4384_v41 = vsel %vm4353_vm3, %v4381_v31, %v4383_v30 }
 0x38a   : > { %v4552_v35 = vsel %vm4531_vm4, %v4549_v24, %v4551_v28  ;;  %v4263_v37 = vadd.f32 %v12907_v26, %v4113_v34  ;;  %v4474_v43 = vmax.f32 %v4294_v53, %v4382_v40  ;;  %v12964_v44 = vmax.f32 %v4295_v15, %v4384_v41 }
 0x38b   : > { %v4642_v27 = vmax.f32 %v4470_v62, %v4552_v35  ;;  %v4387_v45 = vrot.slane %v4298_v32, 1  ;;  %v4385_v46 = vrot.slane %v4297_v33, 1  ;;  %v4300_v48 = vmax.f32 %v12959_v36, 0.0 }
 0x38c   : > { %v4740_v42 = vld [vmem:[#allocation2 + $0x9] sm:$0xff]  ;;  %v10165_v47 = vpop.f32.mrb[20].mxu0  ;;  %v4299_v49 = vmax.f32 %v4263_v37, 0.0  ;;  %v4553_v53 = vrot.slane %v4474_v43, 2 }
 0x38d   : > { %10196 = vmatmul.mubr.msk.f32.vlgmr.msra.gmra.mrb[4].mxu1 %vm415_vm2, %v4740_v42  ;;  %4676 = vst.msk [vmem:[#allocation5 + $0x48] sm:$0xff] %vm415_vm2, %v4642_v27  ;;  %v12970_v50 = vadd.f32 %v10165_v47, %v12907_v26  ;;  %v4123_v51 = vpop.f32.mrb[21].mxu0  ;;  %v4386_v54 = vsel %vm4353_vm3, %v4383_v30, %v4385_v46  ;;  %v4388_v55 = vsel %vm4353_vm3, %v4385_v46, %v4387_v45  ;;  %v4391_v58 = vrot.slane %v4300_v48, 1 }
 0x38e   : > { %10980 = vmatpush3.bf16.msra.mxu1 %v12901_v25  ;;  %v4476_v56 = vmax.f32 %v4296_v13, %v4386_v54  ;;  %v4477_v57 = vmax.f32 %v4297_v33, %v4388_v55  ;;  %v4389_v59 = vrot.slane %v4299_v49, 1  ;;  %v4554_v60 = vsel %vm4531_vm4, %v4551_v28, %v4553_v53 }
 0x38f   : > { %10982 = vmatprep.subr.bf16.mxu1 %v10981_v6  ;;  %v4302_v61 = vmax.f32 %v12970_v50, 0.0  ;;  %v4265_v62 = vadd.f32 %v12907_v26, %v4123_v51  ;;  %v4643_v25 = vmax.f32 %v12943_v63, %v4554_v60 }
 0x390   : > { %v10168_v0 = vpop.f32.mrb[22].mxu0  ;;  %v4557_v1 = vrot.slane %v4476_v56, 2  ;;  %v4559_v2 = vrot.slane %v4477_v57, 2  ;;  %v4705_v5 = vld [vmem:[#allocation5 + $0x24] ss:$2 sm:$0xff]  ;;  %v4390_v3 = vsel %vm4353_vm3, %v4387_v45, %v4389_v59  ;;  %v4392_v7 = vsel %vm4353_vm3, %v4389_v59, %v4391_v58 }
 0x391   : > { %v4133_v4 = vpop.f32.mrb[23].mxu0  ;;  %v4395_v8 = vrot.slane %v4302_v61, 1  ;;  %v4301_v9 = vmax.f32 %v4265_v62, 0.0  ;;  %4706 = vst.msk [vmem:[#allocation2 + $0x15] sm:$0xff] %vm415_vm2, %v4705_v5  ;;  %4677 = vst.msk [vmem:[#allocation5 + $0x50] sm:$0xff] %vm415_vm2, %v4643_v25  ;;  %v4478_v63 = vmax.f32 %v4298_v32, %v4390_v3  ;;  %v12987_v11 = vmax.f32 %v4299_v49, %v4392_v7 }
 0x392   : > { %10984 = vmatpush3.bf16.msra.mxu1 %v10981_v6  ;;  %v4560_v10 = vsel %vm4531_vm4, %v4557_v1, %v4559_v2  ;;  %v4268_v6 = vadd.f32 %v10168_v0, %v12907_v26  ;;  %v4267_v18 = vadd.f32 %v12907_v26, %v4133_v4 }
 0x393   : > { %10986 = vmatprep.subr.bf16.mxu1 %v12973_v52  ;;  %v4646_v12 = vmax.f32 %v4474_v43, %v4560_v10  ;;  %v4393_v13 = vrot.slane %v4301_v9, 1  ;;  %v4561_v16 = vrot.slane %v4478_v63, 2  ;;  %v4563_v17 = vrot.slane %v12987_v11, 2 }
 0x394   : > { %v10171_v15 = vpop.f32.mrb[24].mxu0  ;;  %v4304_v30 = vmax.f32 %v4268_v6, 0.0  ;;  %v4303_v39 = vmax.f32 %v4267_v18, 0.0 }
 0x395   : > { %v12993_v23 = vadd.f32 %v10171_v15, %v12907_v26  ;;  %v4143_v24 = vpop.f32.mrb[25].mxu0  ;;  %4680 = vst.msk [vmem:[#allocation5 + $0x68] sm:$0xff] %vm415_vm2, %v4646_v12  ;;  %v4394_v28 = vsel %vm4353_vm3, %v4391_v58, %v4393_v13  ;;  %v4396_v29 = vsel %vm4353_vm3, %v4393_v13, %v4395_v8  ;;  %v4562_v32 = vsel %vm4531_vm4, %v4559_v2, %v4561_v16 }
 0x396   : > { %v4269_v31 = vadd.f32 %v12907_v26, %v4143_v24  ;;  %v4564_v33 = vsel %vm4531_vm4, %v4561_v16, %v4563_v17  ;;  %v4480_v34 = vmax.f32 %v4300_v48, %v4394_v28  ;;  %v4481_v35 = vmax.f32 %v4301_v9, %v4396_v29 }
 0x397   : > { %v4647_v36 = vmax.f32 %v12964_v44, %v4562_v32  ;;  %v4648_v37 = vmax.f32 %v4476_v56, %v4564_v33  ;;  %v4399_v38 = vrot.slane %v4304_v30, 1  ;;  %v4306_v41 = vmax.f32 %v12993_v23, 0.0 }
 0x398   : > { %v10174_v27 = vpop.f32.mrb[26].mxu0  ;;  %v4567_v40 = vrot.slane %v4481_v35, 2  ;;  %v4305_v42 = vmax.f32 %v4269_v31, 0.0  ;;  %v4741_v43 = vld [vmem:[#allocation2 + $0x11] sm:$0xff]  ;;  %v4397_v46 = vrot.slane %v4303_v39, 1 }
 0x399   : > { %v4153_v45 = vpop.f32.mrb[27].mxu0  ;;  %4681 = vst.msk [vmem:[#allocation5 + $0x70] sm:$0xff] %vm415_vm2, %v4647_v36  ;;  %4682 = vst.msk [vmem:[#allocation5 + $0x78] sm:$0xff] %vm415_vm2, %v4648_v37  ;;  %v4272_v47 = vadd.f32 %v10174_v27, %v12907_v26  ;;  %10198 = vmatprep.mubr.msk.f32.mxu1 %vm415_vm2, %v4741_v43  ;;  %v4708_v48 = vld [vmem:[#allocation5 + $0x48] ss:$2 sm:$0xff]  ;;  %v4403_v49 = vrot.slane %v4306_v41, 1 }
 0x39a   : > { %v4271_v44 = vadd.f32 %v12907_v26, %v4153_v45  ;;  %v4401_v50 = vrot.slane %v4305_v42, 1  ;;  %4709 = vst.msk [vmem:[#allocation2 + $0x1f] sm:$0xff] %vm415_vm2, %v4708_v48  ;;  %v4398_v51 = vsel %vm4353_vm3, %v4395_v8, %v4397_v46  ;;  %v4400_v53 = vsel %vm4353_vm3, %v4397_v46, %v4399_v38 }
 0x39b   : > { %v4482_v55 = vmax.f32 %v4302_v61, %v4398_v51  ;;  %v13011_v56 = vmax.f32 %v4303_v39, %v4400_v53  ;;  %v4308_v0 = vmax.f32 %v4272_v47, 0.0 }
 0x39c   : > { %v10177_v54 = vpop.f32.mrb[28].mxu0  ;;  %v4402_v57 = vsel %vm4353_vm3, %v4399_v38, %v4401_v50  ;;  %v4404_v58 = vsel %vm4353_vm3, %v4401_v50, %v4403_v49  ;;  %v4307_v25 = vmax.f32 %v4271_v44, 0.0 }
 0x39d   : > { %v4163_v59 = vpop.f32.mrb[29].mxu0  ;;  %v13015_v60 = vmax.f32 %v4304_v30, %v4402_v57  ;;  %v13017_v62 = vmax.f32 %v4305_v42, %v4404_v58  ;;  %v4569_v1 = vrot.slane %v4482_v55, 2  ;;  %v4571_v2 = vrot.slane %v13011_v56, 2 }
 0x39e   : > { %v13021_v4 = vadd.f32 %v10177_v54, %v12907_v26  ;;  %v4273_v61 = vadd.f32 %v12907_v26, %v4163_v59  ;;  %v4407_v3 = vrot.slane %v4308_v0, 1  ;;  %v4405_v7 = vrot.slane %v4307_v25, 1 }
 0x39f   : > { %v4575_v5 = vrot.slane %v13017_v62, 2  ;;  %v4570_v9 = vsel %vm4531_vm4, %v4567_v40, %v4569_v1  ;;  %v4572_v10 = vsel %vm4531_vm4, %v4569_v1, %v4571_v2 }
 0x3a0   : > { %v10180_v8 = vpop.f32.mrb[30].mxu0  ;;  %v4310_v63 = vmax.f32 %v13021_v4, 0.0  ;;  %v4309_v12 = vmax.f32 %v4273_v61, 0.0  ;;  %v4711_v6 = vld [vmem:[#allocation5 + $0x6c] ss:$2 sm:$0xff]  ;;  %v4651_v15 = vmax.f32 %v12987_v11, %v4570_v9  ;;  %v4652_v16 = vmax.f32 %v4480_v34, %v4572_v10 }
 0x3a1   : > { %v4173_v13 = vpop.f32.mrb[31].mxu0  ;;  %v4742_v17 = vld [vmem:[#allocation2 + $0x19] sm:$0xff]  ;;  %v4743_v18 = vld [vmem:[#allocation2 + $0x21] sm:$0xff]  ;;  %4712 = vst.msk [vmem:[#allocation2 + $0x29] sm:$0xff] %vm415_vm2, %v4711_v6  ;;  %v4406_v23 = vsel %vm4353_vm3, %v4403_v49, %v4405_v7  ;;  %v4408_v24 = vsel %vm4353_vm3, %v4405_v7, %v4407_v3  ;;  %v4276_v32 = vadd.f32 %v10180_v8, %v12907_v26 }
 0x3a2   : > { %10199 = vmatmul.mubr.msk.f32.gmra.mrb[6].mxu1 %vm415_vm2, %v4742_v17  ;;  %4685 = vst.msk [vmem:[#allocation5 + $0x90] sm:$0xff] %vm415_vm2, %v4651_v15  ;;  %4686 = vst.msk [vmem:[#allocation5 + $0x98] sm:$0xff] %vm415_vm2, %v4652_v16  ;;  %v4486_v28 = vmax.f32 %v4306_v41, %v4406_v23  ;;  %v4487_v29 = vmax.f32 %v4307_v25, %v4408_v24  ;;  %v4411_v30 = vrot.slane %v4310_v63, 1  ;;  %v4409_v31 = vrot.slane %v4309_v12, 1 }
 0x3a3   : > { %10201 = vmatprep.mubr.msk.f32.mxu1 %vm415_vm2, %v4743_v18  ;;  %v4275_v33 = vadd.f32 %v12907_v26, %v4173_v13  ;;  %v4312_v41 = vmax.f32 %v4276_v32, 0.0 }
 0x3a4   : > { %v10183_v11 = vpop.f32.mrb[32].mxu0  ;;  %v4577_v36 = vrot.slane %v4486_v28, 2  ;;  %v4579_v37 = vrot.slane %v4487_v29, 2  ;;  %v4410_v38 = vsel %vm4353_vm3, %v4407_v3, %v4409_v31  ;;  %v4412_v39 = vsel %vm4353_vm3, %v4409_v31, %v4411_v30 }
 0x3a5   : > { %v11391_v34 = vadd.f32 %v10183_v11, %v12893_v19  ;;  %v4183_v35 = vpop.f32.mrb[33].mxu0  ;;  %v4488_v27 = vmax.f32 %v4308_v0, %v4410_v38  ;;  %v13041_v40 = vmax.f32 %v4309_v12, %v4412_v39  ;;  %v4311_v42 = vmax.f32 %v4275_v33, 0.0 }
 0x3a6   : > { %v4578_v43 = vsel %vm4531_vm4, %v4575_v5, %v4577_v36  ;;  %v4580_v45 = vsel %vm4531_vm4, %v4577_v36, %v4579_v37  ;;  %v11392_v19 = vadd.f32 %v4183_v35, %v12895_v20  ;;  %v4415_v53 = vrot.slane %v4312_v41, 1 }
 0x3a7   : > { %v4278_v46 = vadd.f32 %v11391_v34, %v12907_v26  ;;  %v4655_v44 = vmax.f32 %v13011_v56, %v4578_v43  ;;  %v4656_v48 = vmax.f32 %v13015_v60, %v4580_v45  ;;  %v4581_v49 = vrot.slane %v4488_v27, 2  ;;  %v4725_v45 = vld [vmem:[#allocation2] sm:$0xff] }
 0x3a8   : > { %v10186_v47 = vpop.f32.mrb[34].mxu0  ;;  %v4744_v50 = vld [vmem:[#allocation2 + $0x29] sm:$0xff]  ;;  %v4413_v54 = vrot.slane %v4311_v42, 1  ;;  %v4277_v57 = vadd.f32 %v11392_v19, %v12907_v26 }
 0x3a9   : > { %v4193_v51 = vpop.f32.mrb[35].mxu0  ;;  %v4314_v55 = vmax.f32 %v4278_v46, 0.0  ;;  %10202 = vmatmul.mubr.msk.f32.gmra.mrb[8].mxu1 %vm415_vm2, %v4744_v50  ;;  %4689 = vst.msk [vmem:[#allocation5 + $0xb0] sm:$0xff] %vm415_vm2, %v4655_v44  ;;  %4690 = vst.msk [vmem:[#allocation5 + $0xb8] sm:$0xff] %vm415_vm2, %v4656_v48  ;;  %v4582_v20 = vsel %vm4531_vm4, %v4579_v37, %v4581_v49  ;;  %v11393_v56 = vadd.f32 %v10186_v47, %v12897_v21  ;;  %v4714_v59 = vld [vmem:[#allocation5 + $0x90] ss:$2 sm:$0xff] }
 0x3aa   : > { %v11394_v58 = vadd.f32 %v4193_v51, %v12899_v22  ;;  %v4657_v60 = vmax.f32 %v13017_v62, %v4582_v20  ;;  %v4414_v0 = vsel %vm4353_vm3, %v4411_v30, %v4413_v54  ;;  %v4416_v25 = vsel %vm4353_vm3, %v4413_v54, %v4415_v53  ;;  %4715 = vst.msk [vmem:[#allocation2 + $0x33] sm:$0xff] %vm415_vm2, %v4714_v59  ;;  %v5057_v46 = vld [vmem:[#allocation8 + $0x50] sm:$0xff]  ;;  %v4726_v47 = vld [vmem:[#allocation2 + $0x8] sm:$0xff]  ;;  %v5226_v48 = vld [vmem:[#allocation8 + $0x68] sm:$0xff] }
 0x3ab   : > { %v4490_v1 = vmax.f32 %v4310_v63, %v4414_v0  ;;  %v4491_v2 = vmax.f32 %v4311_v42, %v4416_v25  ;;  %v4419_v4 = vrot.slane %v4314_v55, 1  ;;  %v4313_v61 = vmax.f32 %v4277_v57, 0.0  ;;  %v5225_v44 = vld [vmem:[#allocation8 + $0x60] sm:$0xff]  ;;  %v4727_v49 = vld [vmem:[#allocation2 + $0x10] sm:$0xff]  ;;  %v4728_v51 = vld [vmem:[#allocation2 + $0x18] sm:$0xff] }
 0x3ac   : > { %4691 = vst.msk [vmem:[#allocation5 + $0xc0] sm:$0xff] %vm415_vm2, %v4657_v60  ;;  %v4280_v5 = vadd.f32 %v11393_v56, %v12907_v26  ;;  %v4279_v21 = vadd.f32 %v11394_v58, %v12907_v26  ;;  %v10989_v19 = vpack.c.bf16 %v5058_v14, %v5057_v46  ;;  %v10993_v50 = vpack.c.bf16 %v5226_v48, %v5225_v44  ;;  %v4730_v54 = vld [vmem:[#allocation2 + $0x28] sm:$0xff]  ;;  %v5227_v58 = vld [vmem:[#allocation8 + $0x70] sm:$0xff]  ;;  %v5228_v59 = vld [vmem:[#allocation8 + $0x78] sm:$0xff] }
 0x3ad   : > { %v4585_v22 = vrot.slane %v4490_v1, 2  ;;  %v4587_v3 = vrot.slane %v4491_v2, 2  ;;  %v4417_v7 = vrot.slane %v4313_v61, 1  ;;  %v5044_v20 = vld [vmem:[#allocation2 + $0x2] sm:$0xff]  ;;  %v10997_v60 = vpack.c.bf16 %v5228_v59, %v5227_v58  ;;  %v5045_v0 = vld [vmem:[#allocation2 + $0xa] sm:$0xff]  ;;  %v5046_v2 = vld [vmem:[#allocation2 + $0x12] sm:$0xff] }
 0x3ae   : > { %v4316_v62 = vmax.f32 %v4280_v5, 0.0  ;;  %v4315_v8 = vmax.f32 %v4279_v21, 0.0  ;;  %v5395_v25 = vld [vmem:[#allocation8 + $0x80] sm:$0xff]  ;;  %v5396_v1 = vld [vmem:[#allocation8 + $0x88] sm:$0xff]  ;;  %v6078_v58 = vld [vmem:[#allocation8 + $0x118] sm:$0xff] }
 0x3af   : > { %v4588_v9 = vsel %vm4531_vm4, %v4585_v22, %v4587_v3  ;;  %v4418_v10 = vsel %vm4353_vm3, %v4415_v53, %v4417_v7  ;;  %v4420_v63 = vsel %vm4353_vm3, %v4417_v7, %v4419_v4  ;;  %v4729_v53 = vld [vmem:[#allocation2 + $0x20] sm:$0xff]  ;;  %v5049_v21 = vld [vmem:[#allocation2 + $0x2a] sm:$0xff]  ;;  %v5894_v59 = vld [vmem:[#allocation2 + $0x15] sm:$0xff] }
 0x3b0   : > { %v4660_v12 = vmax.f32 %v4488_v27, %v4588_v9  ;;  %v4492_v13 = vmax.f32 %v4312_v41, %v4418_v10  ;;  %v4493_v6 = vmax.f32 %v4313_v61, %v4420_v63  ;;  %v4423_v15 = vrot.slane %v4316_v62, 1  ;;  %v5047_v61 = vld [vmem:[#allocation2 + $0x1a] sm:$0xff]  ;;  %v5048_v5 = vld [vmem:[#allocation2 + $0x22] sm:$0xff] }
 0x3b1   : > { %v4421_v16 = vrot.slane %v4315_v8, 1  ;;  %v4745_v17 = vld [vmem:[#allocation2 + $0x31] sm:$0xff]  ;;  %v5398_v9 = vld [vmem:[#allocation8 + $0x98] sm:$0xff]  ;;  %v5565_v63 = vld [vmem:[#allocation8 + $0xa0] sm:$0xff] }
 0x3b2   : > { %4694 = vst.msk [vmem:[#allocation5 + $0xd8] sm:$0xff] %vm415_vm2, %v4660_v12  ;;  %v4589_v26 = vrot.slane %v4492_v13, 2  ;;  %10204 = vmatprep.mubr.msk.f32.mxu1 %vm415_vm2, %v4745_v17  ;;  %v4496_v18 = vmax.f32 %v4316_v62, %v4423_v15  ;;  %v5050_v22 = vld [vmem:[#allocation2 + $0x32] sm:$0xff]  ;;  %v5568_v17 = vld [vmem:[#allocation8 + $0xb8] sm:$0xff] }
 0x3b3   : > { %v4422_v23 = vsel %vm4353_vm3, %v4419_v4, %v4421_v16  ;;  %v4424_v24 = vsel %vm4353_vm3, %v4421_v16, %v4423_v15  ;;  %v4717_v28 = vld [vmem:[#allocation5 + $0xb4] ss:$2 sm:$0xff]  ;;  %v11001_v4 = vpack.c.bf16 %v5396_v1, %v5395_v25  ;;  %v5557_v46 = vld [vmem:[#allocation2 + $0x24] sm:$0xff]  ;;  %v5558_v14 = vld [vmem:[#allocation2 + $0x2c] sm:$0xff] }
 0x3b4   : > { %v4590_v29 = vsel %vm4531_vm4, %v4587_v3, %v4589_v26  ;;  %v4494_v30 = vmax.f32 %v4314_v55, %v4422_v23  ;;  %v4495_v31 = vmax.f32 %v4315_v8, %v4424_v24  ;;  %4718 = vst.msk [vmem:[#allocation2 + $0x3d] sm:$0xff] %vm415_vm2, %v4717_v28  ;;  %v4597_v32 = vrot.slane %v4496_v18, 2  ;;  %v4731_v55 = vld [vmem:[#allocation2 + $0x30] sm:$0xff]  ;;  %v5397_v8 = vld [vmem:[#allocation8 + $0x90] sm:$0xff]  ;;  %v5735_v24 = vld [vmem:[#allocation8 + $0xc0] sm:$0xff] }
 0x3b5   : > { %v4661_v11 = vmax.f32 %v13041_v40, %v4590_v29  ;;  %v11005_v10 = vpack.c.bf16 %v5398_v9, %v5397_v8  ;;  %v5566_v12 = vld [vmem:[#allocation8 + $0xa8] sm:$0xff]  ;;  %v5567_v16 = vld [vmem:[#allocation8 + $0xb0] sm:$0xff]  ;;  %v5896_v25 = vld [vmem:[#allocation2 + $0x25] sm:$0xff] }
 0x3b6   : > { %v4593_v33 = vrot.slane %v4494_v30, 2  ;;  %v4595_v34 = vrot.slane %v4495_v31, 2  ;;  %v4666_v35 = vmax.f32 %v4494_v30, %v4597_v32  ;;  %v5384_v26 = vld [vmem:[#allocation2 + $0xb] sm:$0xff]  ;;  %v11013_v18 = vpack.c.bf16 %v5568_v17, %v5567_v16  ;;  %v5385_v23 = vld [vmem:[#allocation2 + $0x13] sm:$0xff]  ;;  %v5386_v29 = vld [vmem:[#allocation2 + $0x1b] sm:$0xff] }
 0x3b7   : > { %4695 = vst.msk [vmem:[#allocation5 + $0xe0] sm:$0xff] %vm415_vm2, %v4661_v11  ;;  %v5736_v28 = vld [vmem:[#allocation8 + $0xc8] sm:$0xff]  ;;  %v5387_v31 = vld [vmem:[#allocation2 + $0x23] sm:$0xff] }
 0x3b8   : > { %v4596_v36 = vsel %vm4531_vm4, %v4593_v33, %v4595_v34  ;;  %v4598_v37 = vsel %vm4531_vm4, %v4595_v34, %v4597_v32  ;;  %4701 = vst.msk [vmem:[#allocation5 + $0x108] sm:$0x7] %vm4700_vm5, %v4666_v35  ;;  %v11017_v30 = vpack.c.bf16 %v5736_v28, %v5735_v24  ;;  %v5388_v11 = vld [vmem:[#allocation2 + $0x2b] sm:$0xff]  ;;  %v5389_v32 = vld [vmem:[#allocation2 + $0x33] sm:$0xff]  ;;  %v6393_v24 = vld [vmem:[#allocation11 + $0x58] sm:$0xff] }
 0x3b9   : > { %v4664_v38 = vmax.f32 %v4492_v13, %v4596_v36  ;;  %v4665_v39 = vmax.f32 %v4493_v6, %v4598_v37  ;;  %v11009_v13 = vpack.c.bf16 %v5566_v12, %v5565_v63  ;;  %v5737_v37 = vld [vmem:[#allocation8 + $0xd0] sm:$0xff]  ;;  %v5897_v1 = vld [vmem:[#allocation2 + $0x2d] sm:$0xff] }
 0x3ba   : > { %v6067_v8 = vld [vmem:[#allocation2 + $0x2e] sm:$0xff] }
 0x3bb   : > { %4698 = vst.msk [vmem:[#allocation5 + $0xf8] sm:$0xff] %vm415_vm2, %v4664_v38  ;;  %4699 = vst.msk [vmem:[#allocation5 + $0x100] sm:$0xff] %vm415_vm2, %v4665_v39  ;;  %v4746_v27 = vld [vmem:[#allocation2 + $0x39] sm:$0xff]  ;;  %v5554_v39 = vld [vmem:[#allocation2 + $0xc] sm:$0xff] }
 0x3bc   : > { %10205 = vmatmul.mubr.msk.f32.gmra.mrb[10].mxu1 %vm415_vm2, %v4746_v27  ;;  %v4732_v57 = vld [vmem:[#allocation2 + $0x38] sm:$0xff]  ;;  %v5738_v38 = vld [vmem:[#allocation8 + $0xd8] sm:$0xff]  ;;  %v6390_v16 = vld [vmem:[#allocation11 + $0x40] sm:$0xff] }
 0x3bd   : > { %v5051_v3 = vld [vmem:[#allocation2 + $0x3a] sm:$0xff]  ;;  %v11021_v27 = vpack.c.bf16 %v5738_v38, %v5737_v37  ;;  %v6391_v17 = vld [vmem:[#allocation11 + $0x48] sm:$0xff] }
 0x3be   : > { %v4720_v40 = vld [vmem:[#allocation5 + $0xd8] ss:$2 sm:$0xff] }
 0x3bf   : > { %4721 = vst.msk [vmem:[#allocation2 + $0x47] sm:$0xff] %vm415_vm2, %v4720_v40  ;;  %v5390_v33 = vld [vmem:[#allocation2 + $0x3b] sm:$0xff] }
 0x3c0   : > { %v5555_v40 = vld [vmem:[#allocation2 + $0x14] sm:$0xff] }
 0x3c1   : > { %v6068_v9 = vld [vmem:[#allocation2 + $0x36] sm:$0xff] }
 0x3c2   : > { %v4723_v41 = vld [vmem:[#allocation5 + $0xfc] ss:$2 sm:$0xff] }
 0x3c3   : > { %4724 = vst.msk [vmem:[#allocation2 + $0x51] sm:$0xff] %vm415_vm2, %v4723_v41  ;;  %v5905_v41 = vld [vmem:[#allocation8 + $0xe0] sm:$0xff] }
 0x3c6   : > { %v4747_v42 = vld [vmem:[#allocation2 + $0x41] sm:$0xff]  ;;  %v4748_v43 = vld [vmem:[#allocation2 + $0x49] sm:$0x3f] }
 0x3c7   : > { %10207 = vmatprep.mubr.msk.f32.mxu1 %vm415_vm2, %v4747_v42  ;;  %v4734_v56 = vld [vmem:[#allocation2 + $0x48] sm:$0x3f]  ;;  %v5906_v42 = vld [vmem:[#allocation8 + $0xe8] sm:$0xff] }
 0x3c8   : > { %10208 = vmatmul.mubr.msk.f32.gmra.mrb[12].mxu1 %vm415_vm2, %v4748_v43  ;;  %v5052_v7 = vld [vmem:[#allocation2 + $0x42] sm:$0xff]  ;;  %v5053_v62 = vld [vmem:[#allocation2 + $0x4a] sm:$0x3f] }
 0x3c9   : > { %10218 = vmatprep.mubr.msk.f32.mxu1 %vm415_vm2, %v4725_v45  ;;  %v5391_v34 = vld [vmem:[#allocation2 + $0x43] sm:$0xff]  ;;  %v11025_v45 = vpack.c.bf16 %v5906_v42, %v5905_v41 }
 0x3ca   : > { %v5222_v6 = vld [vmem:[#allocation2 + $0x4a] sm:$0xff]  ;;  %v5223_v15 = vld [vmem:[#allocation2 + $0x52] sm:$0x3f]  ;;  %v5556_v43 = vld [vmem:[#allocation2 + $0x1c] sm:$0xff] }
 0x3cb   : > { %v5392_v35 = vld [vmem:[#allocation2 + $0x4b] sm:$0xff]  ;;  %v5393_v36 = vld [vmem:[#allocation2 + $0x53] sm:$0x3f] }
 0x3cc   : > { %10219 = vmatmul.mubr.msk.f32.vlgmr.msra.gmra.mrb[4].mxu1 %vm415_vm2, %v4726_v47  ;;  %v5560_v47 = vld [vmem:[#allocation2 + $0x3c] sm:$0xff]  ;;  %v5561_v44 = vld [vmem:[#allocation2 + $0x44] sm:$0xff]  ;;  %v5562_v48 = vld [vmem:[#allocation2 + $0x4c] sm:$0xff] }
 0x3cd   : > { %10221 = vmatprep.mubr.msk.f32.mxu1 %vm415_vm2, %v4727_v49  ;;  %10988 = vmatpush3.bf16.msra.mxu1 %v12973_v52  ;;  %v4733_v52 = vld [vmem:[#allocation2 + $0x40] sm:$0xff]  ;;  %v5563_v49 = vld [vmem:[#allocation2 + $0x54] sm:$0x3f] }
 0x3ce   : > { %10990 = vmatprep.subr.bf16.mxu1 %v10989_v19  ;;  %v6070_v63 = vld [vmem:[#allocation2 + $0x46] sm:$0xff]  ;;  %v6071_v12 = vld [vmem:[#allocation2 + $0x4e] sm:$0xff] }
 0x3d0   : > { %10222 = vmatmul.mubr.msk.f32.gmra.mrb[6].mxu1 %vm415_vm2, %v4728_v51  ;;  %v5908_v51 = vld [vmem:[#allocation8 + $0xf8] sm:$0xff] }
 0x3d1   : > { %10224 = vmatprep.mubr.msk.f32.mxu1 %vm415_vm2, %v4729_v53  ;;  %10992 = vmatpush3.bf16.msra.mxu1 %v10989_v19  ;;  %v5559_v19 = vld [vmem:[#allocation2 + $0x34] sm:$0xff] }
 0x3d2   : > { %10994 = vmatprep.subr.bf16.mxu1 %v10993_v50 }
 0x3d4   : > { %10225 = vmatmul.mubr.msk.f32.gmra.mrb[8].mxu1 %vm415_vm2, %v4730_v54  ;;  %v6075_v54 = vld [vmem:[#allocation8 + $0x100] sm:$0xff] }
 0x3d5   : > { %10227 = vmatprep.mubr.msk.f32.mxu1 %vm415_vm2, %v4731_v55  ;;  %v6076_v55 = vld [vmem:[#allocation8 + $0x108] sm:$0xff] }
 0x3d8   : > { %10228 = vmatmul.mubr.msk.f32.gmra.mrb[10].mxu1 %vm415_vm2, %v4732_v57  ;;  %v11033_v57 = vpack.c.bf16 %v6076_v55, %v6075_v54 }
 0x3d9   : > { %10230 = vmatprep.mubr.msk.f32.mxu1 %vm415_vm2, %v4733_v52  ;;  %v5732_v52 = vld [vmem:[#allocation2 + $0x54] sm:$0xff] }
 0x3dc   : > { %10231 = vmatmul.mubr.msk.f32.gmra.mrb[12].mxu1 %vm415_vm2, %v4734_v56  ;;  %v6077_v56 = vld [vmem:[#allocation8 + $0x110] sm:$0xff] }
 0x3dd   : > { %10241 = vmatprep.mubr.msk.f32.mxu1 %vm415_vm2, %v5044_v20  ;;  %v5733_v20 = vld [vmem:[#allocation2 + $0x5c] sm:$0x3f] }
 0x3e0   : > { %10242 = vmatmul.mubr.msk.f32.vlgmr.msra.gmra.mrb[4].mxu1 %vm415_vm2, %v5045_v0 }
 0x3e1   : > { %10244 = vmatprep.mubr.msk.f32.mxu1 %vm415_vm2, %v5046_v2  ;;  %10996 = vmatpush3.bf16.msra.mxu1 %v10993_v50  ;;  %v5907_v50 = vld [vmem:[#allocation8 + $0xf0] sm:$0xff] }
 0x3e2   : > { %10998 = vmatprep.subr.bf16.mxu1 %v10997_v60  ;;  %v11029_v53 = vpack.c.bf16 %v5908_v51, %v5907_v50 }
 0x3e4   : > { %10245 = vmatmul.mubr.msk.f32.gmra.mrb[6].mxu1 %vm415_vm2, %v5047_v61 }
 0x3e5   : > { %10247 = vmatprep.mubr.msk.f32.mxu1 %vm415_vm2, %v5048_v5  ;;  %11000 = vmatpush3.bf16.msra.mxu1 %v10997_v60  ;;  %v11037_v60 = vpack.c.bf16 %v6078_v58, %v6077_v56 }
 0x3e6   : > { %11002 = vmatprep.subr.bf16.mxu1 %v11001_v4 }
 0x3e8   : > { %10248 = vmatmul.mubr.msk.f32.gmra.mrb[8].mxu1 %vm415_vm2, %v5049_v21 }
 0x3e9   : > { %10250 = vmatprep.mubr.msk.f32.mxu1 %vm415_vm2, %v5050_v22 }
 0x3ec   : > { %10251 = vmatmul.mubr.msk.f32.gmra.mrb[10].mxu1 %vm415_vm2, %v5051_v3 }
 0x3ed   : > { %10253 = vmatprep.mubr.msk.f32.mxu1 %vm415_vm2, %v5052_v7 }
 0x3f0   : > { %10254 = vmatmul.mubr.msk.f32.gmra.mrb[12].mxu1 %vm415_vm2, %v5053_v62  ;;  %v6066_v62 = vld [vmem:[#allocation2 + $0x26] sm:$0xff] }
 0x3f1   : > { %10264 = vmatprep.mubr.msk.f32.mxu1 %vm415_vm2, %v5045_v0  ;;  %v5895_v0 = vld [vmem:[#allocation2 + $0x1d] sm:$0xff] }
 0x3f4   : > { %10265 = vmatmul.mubr.msk.f32.vlgmr.msra.gmra.mrb[4].mxu1 %vm415_vm2, %v5046_v2  ;;  %v5898_v2 = vld [vmem:[#allocation2 + $0x35] sm:$0xff] }
 0x3f5   : > { %10267 = vmatprep.mubr.msk.f32.mxu1 %vm415_vm2, %v5047_v61  ;;  %11004 = vmatpush3.bf16.msra.mxu1 %v11001_v4  ;;  %v5899_v4 = vld [vmem:[#allocation2 + $0x3d] sm:$0xff]  ;;  %v5900_v61 = vld [vmem:[#allocation2 + $0x45] sm:$0xff] }
 0x3f6   : > { %11006 = vmatprep.subr.bf16.mxu1 %v11005_v10 }
 0x3f8   : > { %10268 = vmatmul.mubr.msk.f32.gmra.mrb[6].mxu1 %vm415_vm2, %v5048_v5  ;;  %v5901_v5 = vld [vmem:[#allocation2 + $0x4d] sm:$0xff] }
 0x3f9   : > { %10270 = vmatprep.mubr.msk.f32.mxu1 %vm415_vm2, %v5049_v21  ;;  %11008 = vmatpush3.bf16.msra.mxu1 %v11005_v10  ;;  %v5902_v21 = vld [vmem:[#allocation2 + $0x55] sm:$0xff]  ;;  %v6069_v10 = vld [vmem:[#allocation2 + $0x3e] sm:$0xff] }
 0x3fa   : > { %11010 = vmatprep.subr.bf16.mxu1 %v11009_v13 }
 0x3fc   : > { %10271 = vmatmul.mubr.msk.f32.gmra.mrb[8].mxu1 %vm415_vm2, %v5050_v22  ;;  %v5903_v22 = vld [vmem:[#allocation2 + $0x5d] sm:$0x3f] }
 0x3fd   : > { %10273 = vmatprep.mubr.msk.f32.mxu1 %vm415_vm2, %v5051_v3  ;;  %v6064_v3 = vld [vmem:[#allocation2 + $0x16] sm:$0xff] }
 0x400   : > { %10274 = vmatmul.mubr.msk.f32.gmra.mrb[10].mxu1 %vm415_vm2, %v5052_v7  ;;  %v6065_v7 = vld [vmem:[#allocation2 + $0x1e] sm:$0xff] }
 0x401   : > { %10276 = vmatprep.mubr.msk.f32.mxu1 %vm415_vm2, %v5222_v6  ;;  %v6073_v6 = vld [vmem:[#allocation2 + $0x5e] sm:$0x3f] }
 0x404   : > { %10277 = vmatmul.mubr.msk.f32.gmra.mrb[12].mxu1 %vm415_vm2, %v5223_v15  ;;  %v13165_v15 = vld [vmem:[#allocation4] sm:$0xff] }
 0x405   : > { %10287 = vmatprep.mubr.msk.f32.mxu1 %vm415_vm2, %v5384_v26  ;;  %431 = vst.msk [vmem:[#allocation3] sm:$0xff] %vm430_vm7, %v13165_v15  ;;  %432 = vst.msk [vmem:[#allocation3 + $0x8] sm:$0xff] %vm430_vm7, %v13165_v15  ;;  %v11042_v26 = vpack.c.bf16 %v6391_v17, %v6390_v16 }
 0x406   : > { %433 = vst.msk [vmem:[#allocation3 + $0x10] sm:$0xff] %vm430_vm7, %v13165_v15  ;;  %434 = vst.msk [vmem:[#allocation3 + $0x18] sm:$0xff] %vm430_vm7, %v13165_v15 }
 0x407   : > { %436 = vst.msk [vmem:[#allocation3 + $0x20] sm:$0xf] %vm435_vm8, %v13165_v15 }
 0x408   : > { %10288 = vmatmul.mubr.msk.f32.vlgmr.msra.gmra.mrb[4].mxu1 %vm415_vm2, %v5385_v23  ;;  %v6392_v23 = vld [vmem:[#allocation11 + $0x50] sm:$0xff] }
 0x409   : > { %10290 = vmatprep.mubr.msk.f32.mxu1 %vm415_vm2, %v5386_v29  ;;  %11012 = vmatpush3.bf16.msra.mxu1 %v11009_v13  ;;  %v6072_v13 = vld [vmem:[#allocation2 + $0x56] sm:$0xff]  ;;  %v11045_v28 = vpack.c.bf16 %v6393_v24, %v6392_v23  ;;  %v6394_v29 = vld [vmem:[#allocation11 + $0x60] sm:$0xff] }
 0x40a   : > { %11014 = vmatprep.subr.bf16.mxu1 %v11013_v18 }
 0x40c   : > { %10291 = vmatmul.mubr.msk.f32.gmra.mrb[6].mxu1 %vm415_vm2, %v5387_v31 }
 0x40d   : > { %10293 = vmatprep.mubr.msk.f32.mxu1 %vm415_vm2, %v5388_v11  ;;  %11016 = vmatpush3.bf16.msra.mxu1 %v11013_v18  ;;  %v11959_v18 = vmov 0.0|0.0   ;;  %v6396_v11 = vld [vmem:[#allocation11 + $0x70] sm:$0xff] }
 0x40e   : > { %11018 = vmatprep.subr.bf16.mxu1 %v11017_v30 }
 0x410   : > { %10294 = vmatmul.mubr.msk.f32.gmra.mrb[8].mxu1 %vm415_vm2, %v5389_v32  ;;  %v6397_v32 = vld [vmem:[#allocation11 + $0x78] sm:$0xff] }
 0x411   : > { %10296 = vmatprep.mubr.msk.f32.mxu1 %vm415_vm2, %v5390_v33  ;;  %v11051_v33 = vpack.c.bf16 %v6397_v32, %v6396_v11 }
 0x414   : > { %10297 = vmatmul.mubr.msk.f32.gmra.mrb[10].mxu1 %vm415_vm2, %v5391_v34  ;;  %v8792_v34 = vld [vmem:[%s13970_s4] ss:$0 sm:$0xff] }
 0x415   : > { %10299 = vmatprep.mubr.msk.f32.mxu1 %vm415_vm2, %v5392_v35 }
 0x418   : > { %10300 = vmatmul.mubr.msk.f32.gmra.mrb[12].mxu1 %vm415_vm2, %v5393_v36 }
 0x419   : > { %10310 = vmatprep.mubr.msk.f32.mxu1 %vm415_vm2, %v5554_v39 }
 0x41c   : > { %10311 = vmatmul.mubr.msk.f32.vlgmr.msra.gmra.mrb[4].mxu1 %vm415_vm2, %v5555_v40 }
 0x41d   : > { %10313 = vmatprep.mubr.msk.f32.mxu1 %vm415_vm2, %v5556_v43  ;;  %11020 = vmatpush3.bf16.msra.mxu1 %v11017_v30  ;;  %v6395_v30 = vld [vmem:[#allocation11 + $0x68] sm:$0xff] }
 0x41e   : > { %11022 = vmatprep.subr.bf16.mxu1 %v11021_v27  ;;  %v11048_v31 = vpack.c.bf16 %v6395_v30, %v6394_v29 }
 0x420   : > { %10314 = vmatmul.mubr.msk.f32.gmra.mrb[6].mxu1 %vm415_vm2, %v5557_v46 }
 0x421   : > { %10316 = vmatprep.mubr.msk.f32.mxu1 %vm415_vm2, %v5558_v14  ;;  %11024 = vmatpush3.bf16.msra.mxu1 %v11021_v27 }
 0x422   : > { %11026 = vmatprep.subr.bf16.mxu1 %v11025_v45 }
 0x424   : > { %10317 = vmatmul.mubr.msk.f32.gmra.mrb[8].mxu1 %vm415_vm2, %v5559_v19 }
 0x425   : > { %10319 = vmatprep.mubr.msk.f32.mxu1 %vm415_vm2, %v5560_v47 }
 0x428   : > { %10320 = vmatmul.mubr.msk.f32.gmra.mrb[10].mxu1 %vm415_vm2, %v5561_v44 }
 0x429   : > { %10322 = vmatprep.mubr.msk.f32.mxu1 %vm415_vm2, %v5562_v48 }
 0x42c   : > { %10323 = vmatmul.mubr.msk.f32.gmra.mrb[12].mxu1 %vm415_vm2, %v5563_v49 }
 0x42d   : > { %10333 = vmatprep.mubr.msk.f32.mxu1 %vm415_vm2, %v5555_v40 }
 0x430   : > { %10334 = vmatmul.mubr.msk.f32.vlgmr.msra.gmra.mrb[4].mxu1 %vm415_vm2, %v5556_v43 }
 0x431   : > { %10336 = vmatprep.mubr.msk.f32.mxu1 %vm415_vm2, %v5557_v46  ;;  %11028 = vmatpush3.bf16.msra.mxu1 %v11025_v45 }
 0x432   : > { %11030 = vmatprep.subr.bf16.mxu1 %v11029_v53 }
 0x434   : > { %10337 = vmatmul.mubr.msk.f32.gmra.mrb[6].mxu1 %vm415_vm2, %v5558_v14 }
 0x435   : > { %10339 = vmatprep.mubr.msk.f32.mxu1 %vm415_vm2, %v5559_v19  ;;  %11032 = vmatpush3.bf16.msra.mxu1 %v11029_v53 }
 0x436   : > { %11034 = vmatprep.subr.bf16.mxu1 %v11033_v57 }
 0x438   : > { %10340 = vmatmul.mubr.msk.f32.gmra.mrb[8].mxu1 %vm415_vm2, %v5560_v47 }
 0x439   : > { %10342 = vmatprep.mubr.msk.f32.mxu1 %vm415_vm2, %v5561_v44 }
 0x43c   : > { %10343 = vmatmul.mubr.msk.f32.gmra.mrb[10].mxu1 %vm415_vm2, %v5562_v48 }
 0x43d   : > { %10345 = vmatprep.mubr.msk.f32.mxu1 %vm415_vm2, %v5732_v52 }
 0x440   : > { %10346 = vmatmul.mubr.msk.f32.gmra.mrb[12].mxu1 %vm415_vm2, %v5733_v20 }
 0x441   : > { %10356 = vmatprep.mubr.msk.f32.mxu1 %vm415_vm2, %v5894_v59 }
 0x444   : > { %10357 = vmatmul.mubr.msk.f32.vlgmr.msra.gmra.mrb[4].mxu1 %vm415_vm2, %v5895_v0 }
 0x445   : > { %10359 = vmatprep.mubr.msk.f32.mxu1 %vm415_vm2, %v5896_v25  ;;  %11036 = vmatpush3.bf16.msra.mxu1 %v11033_v57 }
 0x446   : > { %11038 = vmatprep.subr.bf16.mxu1 %v11037_v60 }
 0x448   : > { %10360 = vmatmul.mubr.msk.f32.gmra.mrb[6].mxu1 %vm415_vm2, %v5897_v1 }
 0x449   : > { %10362 = vmatprep.mubr.msk.f32.mxu1 %vm415_vm2, %v5898_v2  ;;  %11040 = vmatpush3.bf16.msra.mxu1 %v11037_v60 }
 0x44a   : > { %11041 = vmatprep.subr.bf16.mxu1 %v11959_v18 }
 0x44c   : > { %10363 = vmatmul.mubr.msk.f32.gmra.mrb[8].mxu1 %vm415_vm2, %v5899_v4 }
 0x44d   : > { %10365 = vmatprep.mubr.msk.f32.mxu1 %vm415_vm2, %v5900_v61 }
 0x450   : > { %10366 = vmatmul.mubr.msk.f32.gmra.mrb[10].mxu1 %vm415_vm2, %v5901_v5 }
 0x451   : > { %10368 = vmatprep.mubr.msk.f32.mxu1 %vm415_vm2, %v5902_v21 }
 0x454   : > { %10369 = vmatmul.mubr.msk.f32.gmra.mrb[12].mxu1 %vm415_vm2, %v5903_v22 }
 0x455   : > { %10379 = vmatprep.mubr.msk.f32.mxu1 %vm415_vm2, %v6064_v3 }
 0x458   : > { %10380 = vmatmul.mubr.msk.f32.vlgmr.msra.gmra.mrb[4].mxu1 %vm415_vm2, %v6065_v7 }
 0x459   : > { %10382 = vmatprep.mubr.msk.f32.mxu1 %vm415_vm2, %v6066_v62  ;;  %11043 = vmatpush3.bf16.msra.mxu1 %v11042_v26 }
 0x45a   : > { %11044 = vmatprep.subr.bf16.mxu1 %v11959_v18 }
 0x45c   : > { %10383 = vmatmul.mubr.msk.f32.gmra.mrb[6].mxu1 %vm415_vm2, %v6067_v8 }
 0x45d   : > { %10385 = vmatprep.mubr.msk.f32.mxu1 %vm415_vm2, %v6068_v9  ;;  %11046 = vmatpush3.bf16.msra.mxu1 %v11045_v28 }
 0x45e   : > { %11047 = vmatprep.subr.bf16.mxu1 %v11959_v18 }
 0x460   : > { %10386 = vmatmul.mubr.msk.f32.gmra.mrb[8].mxu1 %vm415_vm2, %v6069_v10 }
 0x461   : > { %10388 = vmatprep.mubr.msk.f32.mxu1 %vm415_vm2, %v6070_v63  ;;  %11049 = vmatpush3.bf16.msra.mxu1 %v11048_v31 }
 0x462   : > { %11050 = vmatprep.subr.bf16.mxu1 %v11959_v18 }
 0x464   : > { %10389 = vmatmul.mubr.msk.f32.gmra.mrb[10].mxu1 %vm415_vm2, %v6071_v12 }
 0x465   : > { %10391 = vmatprep.mubr.msk.f32.mxu1 %vm415_vm2, %v6072_v13  ;;  %11052 = vmatpush3.bf16.msra.mxu1 %v11051_v33 }
 0x466   : > { %11053 = vmatprep.subr.bf16.mxu1 %v11959_v18 }
 0x468   : > { %10392 = vmatmul.mubr.msk.f32.gmra.mrb[12].mxu1 %vm415_vm2, %v6073_v6 }
 0x469   : > { %10410 = vmatprep.mubr.msk.f32.mxu1 %vm11960_vm9, %v13165_v15 }
 0x52b   : > { %v10381_v35 = vpop.f32.mrb[4].mxu1 }
 0x52c   : > { %v6242_v36 = vadd.f32 %v10381_v35, %v8792_v34  ;;  %v6175_v37 = vpop.f32.mrb[5].mxu1 }
 0x52d   : > { %v6241_v38 = vadd.f32 %v8792_v34, %v6175_v37 }
 0x52e   : > { %v6252_v39 = vmax.f32 %v6242_v36, 0.0 }
 0x52f   : > { %v6251_v27 = vmax.f32 %v6241_v38, 0.0  ;;  %v10384_v40 = vpop.f32.mrb[6].mxu1 }
 0x530   : > { %v6272_v41 = vrot.slane %v6252_v39, 1  ;;  %v6244_v42 = vadd.f32 %v10384_v40, %v8792_v34  ;;  %v6185_v43 = vpop.f32.mrb[7].mxu1 }
 0x531   : > { %v6271_v45 = vrot.slane %v6251_v27, 1  ;;  %v6243_v46 = vadd.f32 %v8792_v34, %v6185_v43 }
 0x532   : > { %v6254_v14 = vmax.f32 %v6244_v42, 0.0 }
 0x533   : > { %v6273_v19 = vsel %vm4353_vm3, %v6271_v45, %v6272_v41  ;;  %v6253_v47 = vmax.f32 %v6243_v46, 0.0  ;;  %v10387_v44 = vpop.f32.mrb[8].mxu1 }
 0x534   : > { %v6300_v48 = vmax.f32 %v6251_v27, %v6273_v19  ;;  %v6276_v49 = vrot.slane %v6254_v14, 1  ;;  %v6246_v50 = vadd.f32 %v10387_v44, %v8792_v34  ;;  %v6195_v51 = vpop.f32.mrb[9].mxu1 }
 0x535   : > { %v6274_v53 = vrot.slane %v6253_v47, 1  ;;  %v6245_v54 = vadd.f32 %v8792_v34, %v6195_v51  ;;  %v6379_v51 = vld [vmem:[#allocation11 + $0x8] sm:$0xff] }
 0x536   : > { %v6256_v55 = vmax.f32 %v6246_v50, 0.0  ;;  %v6378_v50 = vld [vmem:[#allocation11] sm:$0xff] }
 0x537   : > { %v6275_v57 = vsel %vm4353_vm3, %v6272_v41, %v6274_v53  ;;  %v6277_v52 = vsel %vm4353_vm3, %v6274_v53, %v6276_v49  ;;  %v6255_v20 = vmax.f32 %v6245_v54, 0.0  ;;  %v10390_v56 = vpop.f32.mrb[10].mxu1  ;;  %v11054_v53 = vpack.c.bf16 %v6379_v51, %v6378_v50  ;;  %v6380_v54 = vld [vmem:[#allocation11 + $0x10] sm:$0xff]  ;;  %v6892_v51 = vld [vmem:[#allocation11 + $0x140] sm:$0xff] }
 0x538   : > { %v6301_v58 = vmax.f32 %v6252_v39, %v6275_v57  ;;  %v6302_v59 = vmax.f32 %v6253_v47, %v6277_v52  ;;  %v6280_v60 = vrot.slane %v6256_v55, 1  ;;  %v6248_v0 = vadd.f32 %v10390_v56, %v8792_v34  ;;  %v6205_v25 = vpop.f32.mrb[11].mxu1  ;;  %v6382_v56 = vld [vmem:[#allocation11 + $0x20] sm:$0xff] }
 0x539   : > { %v6278_v1 = vrot.slane %v6255_v20, 1  ;;  %v6247_v2 = vadd.f32 %v8792_v34, %v6205_v25  ;;  %v6384_v25 = vld [vmem:[#allocation11 + $0x30] sm:$0xff] }
 0x53a   : > { %v6319_v4 = vrot.slane %v6301_v58, 2  ;;  %v6320_v61 = vrot.slane %v6302_v59, 2  ;;  %v6258_v5 = vmax.f32 %v6248_v0, 0.0  ;;  %v6383_v58 = vld [vmem:[#allocation11 + $0x28] sm:$0xff] }
 0x53b   : > { %v6279_v21 = vsel %vm4353_vm3, %v6276_v49, %v6278_v1  ;;  %v6281_v22 = vsel %vm4353_vm3, %v6278_v1, %v6280_v60  ;;  %v6257_v3 = vmax.f32 %v6247_v2, 0.0  ;;  %v10393_v7 = vpop.f32.mrb[12].mxu1  ;;  %v11060_v0 = vpack.c.bf16 %v6383_v58, %v6382_v56  ;;  %v6385_v1 = vld [vmem:[#allocation11 + $0x38] sm:$0xff]  ;;  %v6896_v56 = vld [vmem:[#allocation11 + $0x160] sm:$0xff]  ;;  %v6897_v58 = vld [vmem:[#allocation11 + $0x168] sm:$0xff] }
 0x53c   : > { %v6321_v62 = vsel %vm4531_vm4, %v6319_v4, %v6320_v61  ;;  %v6303_v8 = vmax.f32 %v6254_v14, %v6279_v21  ;;  %v6304_v9 = vmax.f32 %v6255_v20, %v6281_v22  ;;  %v6284_v10 = vrot.slane %v6258_v5, 1  ;;  %v6215_v63 = vpop.f32.mrb[13].mxu1  ;;  %v6580_v61 = vld [vmem:[#allocation11 + $0x80] sm:$0xff] }
 0x53d   : > { %v6345_v12 = vmax.f32 %v6300_v48, %v6321_v62  ;;  %v6282_v13 = vrot.slane %v6257_v3, 1  ;;  %v6250_v6 = vadd.f32 %v10393_v7, %v8792_v34  ;;  %v6249_v16 = vadd.f32 %v8792_v34, %v6215_v63  ;;  %v6583_v7 = vld [vmem:[#allocation11 + $0x98] sm:$0xff] }
 0x53e   : > { %v6322_v17 = vrot.slane %v6303_v8, 2  ;;  %v6324_v26 = vrot.slane %v6304_v9, 2  ;;  %v11063_v4 = vpack.c.bf16 %v6385_v1, %v6384_v25  ;;  %v6584_v9 = vld [vmem:[#allocation11 + $0xa0] sm:$0xff]  ;;  %v6899_v25 = vld [vmem:[#allocation11 + $0x178] sm:$0xff] }
 0x53f   : > { %6354 = vst.msk [vmem:[#allocation6] sm:$0xff] %vm430_vm7, %v6345_v12  ;;  %v6283_v23 = vsel %vm4353_vm3, %v6280_v60, %v6282_v13  ;;  %v6285_v24 = vsel %vm4353_vm3, %v6282_v13, %v6284_v10  ;;  %v6260_v28 = vmax.f32 %v6250_v6, 0.0  ;;  %v6259_v29 = vmax.f32 %v6249_v16, 0.0  ;;  %v6586_v13 = vld [vmem:[#allocation11 + $0xb0] sm:$0xff]  ;;  %v6587_v6 = vld [vmem:[#allocation11 + $0xb8] sm:$0xff] }
 0x540   : > { %v6325_v30 = vsel %vm4531_vm4, %v6322_v17, %v6324_v26  ;;  %v6305_v31 = vmax.f32 %v6256_v55, %v6283_v23  ;;  %v6306_v11 = vmax.f32 %v6257_v3, %v6285_v24  ;;  %v6381_v55 = vld [vmem:[#allocation11 + $0x18] sm:$0xff]  ;;  %v6582_v3 = vld [vmem:[#allocation11 + $0x90] sm:$0xff]  ;;  %v11075_v17 = vpack.c.bf16 %v6587_v6, %v6586_v13  ;;  %v6685_v23 = vld [vmem:[#allocation11 + $0xc8] sm:$0xff] }
 0x541   : > { %v6347_v32 = vmax.f32 %v6302_v59, %v6325_v30  ;;  %v6288_v33 = vrot.slane %v6260_v28, 1  ;;  %v6286_v35 = vrot.slane %v6259_v29, 1  ;;  %v11057_v20 = vpack.c.bf16 %v6381_v55, %v6380_v54  ;;  %v6894_v55 = vld [vmem:[#allocation11 + $0x150] sm:$0xff]  ;;  %v7100_v6 = vld [vmem:[#allocation11 + $0x1c0] sm:$0xff] }
 0x542   : > { %v6326_v36 = vrot.slane %v6305_v31, 2  ;;  %v6328_v37 = vrot.slane %v6306_v11, 2  ;;  %v6688_v11 = vld [vmem:[#allocation11 + $0xe0] sm:$0xff] }
 0x543   : > { %6356 = vst.msk [vmem:[#allocation6 + $0x10] sm:$0xff] %vm430_vm7, %v6347_v32  ;;  %v6309_v34 = vmax.f32 %v6260_v28, %v6288_v33  ;;  %v6287_v38 = vsel %vm4353_vm3, %v6284_v10, %v6286_v35  ;;  %v6289_v39 = vsel %vm4353_vm3, %v6286_v35, %v6288_v33  ;;  %v6585_v10 = vld [vmem:[#allocation11 + $0xa8] sm:$0xff]  ;;  %v6686_v28 = vld [vmem:[#allocation11 + $0xd0] sm:$0xff] }
 0x544   : > { %v6327_v27 = vsel %vm4531_vm4, %v6324_v26, %v6326_v36  ;;  %v6307_v40 = vmax.f32 %v6258_v5, %v6287_v38  ;;  %v6308_v41 = vmax.f32 %v6259_v29, %v6289_v39  ;;  %v6581_v5 = vld [vmem:[#allocation11 + $0x88] sm:$0xff]  ;;  %v11072_v12 = vpack.c.bf16 %v6585_v10, %v6584_v9  ;;  %v6684_v26 = vld [vmem:[#allocation11 + $0xc0] sm:$0xff]  ;;  %v6687_v29 = vld [vmem:[#allocation11 + $0xd8] sm:$0xff] }
 0x545   : > { %v6348_v42 = vmax.f32 %v6303_v8, %v6327_v27  ;;  %v6334_v43 = vrot.slane %v6309_v34, 2  ;;  %v11066_v22 = vpack.c.bf16 %v6581_v5, %v6580_v61  ;;  %v11069_v8 = vpack.c.bf16 %v6583_v7, %v6582_v3  ;;  %v6689_v32 = vld [vmem:[#allocation11 + $0xe8] sm:$0xff]  ;;  %v6690_v36 = vld [vmem:[#allocation11 + $0xf0] sm:$0xff]  ;;  %v6788_v39 = vld [vmem:[#allocation11 + $0x100] sm:$0xff] }
 0x546   : > { %v6330_v45 = vrot.slane %v6307_v40, 2  ;;  %v6332_v46 = vrot.slane %v6308_v41, 2  ;;  %v6364_v14 = vld [vmem:[#allocation6] ss:$2 sm:$0xf]  ;;  %v11078_v24 = vpack.c.bf16 %v6685_v23, %v6684_v26  ;;  %v11084_v35 = vpack.c.bf16 %v6689_v32, %v6688_v11  ;;  %v7000_v7 = vld [vmem:[#allocation11 + $0x1a0] sm:$0xff] }
 0x547   : > { %6357 = vst.msk [vmem:[#allocation6 + $0x18] sm:$0xff] %vm430_vm7, %v6348_v42  ;;  %v6353_v19 = vmax.f32 %v6308_v41, %v6334_v43  ;;  %v6789_v27 = vld [vmem:[#allocation11 + $0x108] sm:$0xff]  ;;  %v6790_v41 = vld [vmem:[#allocation11 + $0x110] sm:$0xff]  ;;  %v6791_v42 = vld [vmem:[#allocation11 + $0x118] sm:$0xff] }
 0x548   : > { %6365 = vst.msk [vmem:[#allocation3 + $0x7] sm:$0xf] %vm435_vm8, %v6364_v14  ;;  %v6331_v47 = vsel %vm4531_vm4, %v6328_v37, %v6330_v45  ;;  %v6335_v44 = vsel %vm4531_vm4, %v6332_v46, %v6334_v43  ;;  %v6691_v37 = vld [vmem:[#allocation11 + $0xf8] sm:$0xff]  ;;  %v11093_v45 = vpack.c.bf16 %v6791_v42, %v6790_v41  ;;  %v6792_v46 = vld [vmem:[#allocation11 + $0x120] sm:$0xff]  ;;  %v6793_v14 = vld [vmem:[#allocation11 + $0x128] sm:$0xff] }
 0x549   : > { %v6350_v48 = vmax.f32 %v6305_v31, %v6331_v47  ;;  %v6352_v49 = vmax.f32 %v6307_v40, %v6335_v44  ;;  %6363 = vst.msk [vmem:[#allocation6 + $0x40] sm:$0x7] %vm6362_vm10, %v6353_v19  ;;  %v11081_v31 = vpack.c.bf16 %v6687_v29, %v6686_v28  ;;  %v11087_v38 = vpack.c.bf16 %v6691_v37, %v6690_v36  ;;  %v6794_v44 = vld [vmem:[#allocation11 + $0x130] sm:$0xff]  ;;  %v6997_v61 = vld [vmem:[#allocation11 + $0x188] sm:$0xff]  ;;  %v7103_v23 = vld [vmem:[#allocation11 + $0x1d8] sm:$0xff] }
 0x54a   : > { %v11090_v40 = vpack.c.bf16 %v6789_v27, %v6788_v39  ;;  %v11096_v47 = vpack.c.bf16 %v6793_v14, %v6792_v46  ;;  %v7002_v10 = vld [vmem:[#allocation11 + $0x1b0] sm:$0xff]  ;;  %v7104_v29 = vld [vmem:[#allocation11 + $0x1e0] sm:$0xff]  ;;  %v7207_v27 = vld [vmem:[#allocation11 + $0x218] sm:$0xff] }
 0x54b   : > { %6359 = vst.msk [vmem:[#allocation6 + $0x28] sm:$0xff] %vm430_vm7, %v6350_v48  ;;  %6361 = vst.msk [vmem:[#allocation6 + $0x38] sm:$0xff] %vm430_vm7, %v6352_v49  ;;  %v6795_v48 = vld [vmem:[#allocation11 + $0x138] sm:$0xff]  ;;  %v7102_v26 = vld [vmem:[#allocation11 + $0x1d0] sm:$0xff] }
 0x54c   : > { %v11099_v50 = vpack.c.bf16 %v6795_v48, %v6794_v44  ;;  %v11129_v28 = vpack.c.bf16 %v7103_v23, %v7102_v26  ;;  %v7106_v32 = vld [vmem:[#allocation11 + $0x1f0] sm:$0xff]  ;;  %v7204_v37 = vld [vmem:[#allocation11 + $0x200] sm:$0xff]  ;;  %v7211_v44 = vld [vmem:[#allocation11 + $0x238] sm:$0xff] }
 0x54d   : > { %v7206_v39 = vld [vmem:[#allocation11 + $0x210] sm:$0xff]  ;;  %v7208_v42 = vld [vmem:[#allocation11 + $0x220] sm:$0xff]  ;;  %v8833_v26 = vld [vmem:[%s13973_s7 + $0xe0] sm:$0xff] }
 0x54e   : > { %v6367_v52 = vld [vmem:[#allocation6 + $0x14] ss:$2 sm:$0xf]  ;;  %v11141_v41 = vpack.c.bf16 %v7207_v27, %v7206_v39 }
 0x54f   : > { %v6386_v57 = vld [vmem:[#allocation3 + $0x1] sm:$0xff]  ;;  %6368 = vst.msk [vmem:[#allocation3 + $0xd] sm:$0xf] %vm435_vm8, %v6367_v52 }
 0x550   : > { %10411 = vmatmul.mubr.msk.f32.vlgmr.msra.gmra.mrb[14].mxu1 %vm430_vm7, %v6386_v57  ;;  %v6375_v62 = vld [vmem:[#allocation3] sm:$0xff]  ;;  %v6895_v57 = vld [vmem:[#allocation11 + $0x158] sm:$0xff] }
 0x551   : > { %11055 = vmatpush3.bf16.msra.mxu1 %v11054_v53  ;;  %10413 = vmatprep.mubr.msk.f32.mxu1 %vm11960_vm9, %v13165_v15  ;;  %v6576_v30 = vld [vmem:[#allocation3 + $0x2] sm:$0xff] }
 0x552   : > { %11056 = vmatprep.subr.bf16.mxu1 %v11959_v18  ;;  %v6370_v59 = vld [vmem:[#allocation6 + $0x28] ss:$2 sm:$0xf]  ;;  %v6373_v60 = vld [vmem:[#allocation6 + $0x3c] ss:$2 sm:$0xf] }
 0x553   : > { %6371 = vst.msk [vmem:[#allocation3 + $0x13] sm:$0xf] %vm435_vm8, %v6370_v59  ;;  %6374 = vst.msk [vmem:[#allocation3 + $0x19] sm:$0xf] %vm435_vm8, %v6373_v60  ;;  %v6893_v53 = vld [vmem:[#allocation11 + $0x148] sm:$0xff]  ;;  %v11108_v60 = vpack.c.bf16 %v6897_v58, %v6896_v56  ;;  %v8834_v23 = vld [vmem:[%s13973_s7 + $0xe8] sm:$0xff] }
 0x554   : > { %v11102_v54 = vpack.c.bf16 %v6893_v53, %v6892_v51  ;;  %v7098_v46 = vld [vmem:[#allocation3 + $0x1d] sm:$0x3f]  ;;  %v8823_v58 = vld [vmem:[%s13973_s7 + $0x90] sm:$0xff] }
 0x555   : > { %11058 = vmatpush3.bf16.msra.mxu1 %v11057_v20  ;;  %v11105_v20 = vpack.c.bf16 %v6895_v57, %v6894_v55  ;;  %v8822_v57 = vld [vmem:[%s13973_s7 + $0x88] sm:$0xff] }
 0x556   : > { %11059 = vmatprep.subr.bf16.mxu1 %v11959_v18  ;;  %v6387_v2 = vld [vmem:[#allocation3 + $0x9] sm:$0xff] }
 0x557   : > { %10414 = vmatmul.mubr.msk.f32.gmra.mrb[16].mxu1 %vm430_vm7, %v6387_v2  ;;  %v13227_v63 = vld [vmem:[#allocation3 + $0x8] sm:$0xff] }
 0x558   : > { %10416 = vmatprep.mubr.msk.f32.mxu1 %vm11960_vm9, %v13165_v15  ;;  %v6577_v33 = vld [vmem:[#allocation3 + $0xa] sm:$0xff] }
 0x559   : > { %11061 = vmatpush3.bf16.msra.mxu1 %v11060_v0  ;;  %v6680_v43 = vld [vmem:[#allocation3 + $0x6] sm:$0xff]  ;;  %v6898_v0 = vld [vmem:[#allocation11 + $0x170] sm:$0xff] }
 0x55a   : > { %11062 = vmatprep.subr.bf16.mxu1 %v11959_v18  ;;  %v6388_v21 = vld [vmem:[#allocation3 + $0x11] sm:$0x3f]  ;;  %v6784_v52 = vld [vmem:[#allocation3 + $0x7] sm:$0xff]  ;;  %v6786_v1 = vld [vmem:[#allocation3 + $0x17] sm:$0x3f]  ;;  %v11111_v2 = vpack.c.bf16 %v6899_v25, %v6898_v0 }
 0x55b   : > { %10417 = vmatmul.mubr.msk.f32.gmra.mrb[18].mxu1 %vm430_vm7, %v6388_v21  ;;  %v6377_v16 = vld [vmem:[#allocation3 + $0x10] sm:$0x3f]  ;;  %v6682_v49 = vld [vmem:[#allocation3 + $0x16] sm:$0x3f] }
 0x55c   : > { %10435 = vmatprep.mubr.msk.f32.mxu1 %vm11960_vm9, %v13165_v15  ;;  %v6578_v34 = vld [vmem:[#allocation3 + $0x12] sm:$0x3f] }
 0x55d   : > { %11064 = vmatpush3.bf16.msra.mxu1 %v11063_v4  ;;  %v13256_v19 = vld [vmem:[#allocation3 + $0xe] sm:$0xff]  ;;  %v6996_v4 = vld [vmem:[#allocation11 + $0x180] sm:$0xff] }
 0x55e   : > { %11065 = vmatprep.subr.bf16.mxu1 %v11959_v18  ;;  %v6785_v59 = vld [vmem:[#allocation3 + $0xf] sm:$0xff]  ;;  %v11114_v5 = vpack.c.bf16 %v6997_v61, %v6996_v4  ;;  %v8826_v4 = vld [vmem:[%s13973_s7 + $0xa8] sm:$0xff] }
 0x55f   : > { %v6998_v21 = vld [vmem:[#allocation11 + $0x190] sm:$0xff] }
 0x560   : > { %10436 = vmatmul.mubr.msk.f32.vlgmr.msra.gmra.mrb[20].mxu1 %vm430_vm7, %v6375_v62  ;;  %v7001_v62 = vld [vmem:[#allocation11 + $0x1a8] sm:$0xff] }
 0x561   : > { %11067 = vmatpush3.bf16.msra.mxu1 %v11066_v22  ;;  %10438 = vmatprep.mubr.msk.f32.mxu1 %vm11960_vm9, %v13165_v15  ;;  %v6999_v22 = vld [vmem:[#allocation11 + $0x198] sm:$0xff]  ;;  %v11120_v9 = vpack.c.bf16 %v7001_v62, %v7000_v7  ;;  %v8828_v7 = vld [vmem:[%s13973_s7 + $0xb8] sm:$0xff] }
 0x562   : > { %11068 = vmatprep.subr.bf16.mxu1 %v11959_v18  ;;  %v11117_v3 = vpack.c.bf16 %v6999_v22, %v6998_v21 }
 0x564   : > { %10439 = vmatmul.mubr.msk.f32.gmra.mrb[22].mxu1 %vm430_vm7, %v13227_v63 }
 0x565   : > { %11070 = vmatpush3.bf16.msra.mxu1 %v11069_v8  ;;  %10441 = vmatprep.mubr.msk.f32.mxu1 %vm11960_vm9, %v13165_v15  ;;  %v6889_v8 = vld [vmem:[#allocation3 + $0x10] sm:$0xff] }
 0x566   : > { %11071 = vmatprep.subr.bf16.mxu1 %v11959_v18 }
 0x568   : > { %10442 = vmatmul.mubr.msk.f32.gmra.mrb[24].mxu1 %vm430_vm7, %v6377_v16  ;;  %v7101_v16 = vld [vmem:[#allocation11 + $0x1c8] sm:$0xff] }
 0x569   : > { %11073 = vmatpush3.bf16.msra.mxu1 %v11072_v12  ;;  %10460 = vmatprep.mubr.msk.f32.mxu1 %vm11960_vm9, %v13165_v15  ;;  %v6890_v12 = vld [vmem:[#allocation3 + $0x18] sm:$0x3f] }
 0x56a   : > { %11074 = vmatprep.subr.bf16.mxu1 %v11959_v18 }
 0x56d   : > { %11076 = vmatpush3.bf16.msra.mxu1 %v11075_v17  ;;  %v11126_v17 = vpack.c.bf16 %v7101_v16, %v7100_v6  ;;  %v8832_v16 = vld [vmem:[%s13973_s7 + $0xd8] sm:$0xff] }
 0x56e   : > { %11077 = vmatprep.subr.bf16.mxu1 %v11959_v18 }
 0x570   : > { %10461 = vmatmul.mubr.msk.f32.vlgmr.msra.gmra.mrb[26].mxu1 %vm430_vm7, %v6576_v30  ;;  %v7105_v30 = vld [vmem:[#allocation11 + $0x1e8] sm:$0xff] }
 0x571   : > { %11079 = vmatpush3.bf16.msra.mxu1 %v11078_v24  ;;  %10463 = vmatprep.mubr.msk.f32.mxu1 %vm11960_vm9, %v13165_v15  ;;  %v6992_v24 = vld [vmem:[#allocation3 + $0xc] sm:$0xff]  ;;  %v11132_v11 = vpack.c.bf16 %v7105_v30, %v7104_v29 }
 0x572   : > { %11080 = vmatprep.subr.bf16.mxu1 %v11959_v18 }
 0x574   : > { %10464 = vmatmul.mubr.msk.f32.gmra.mrb[28].mxu1 %vm430_vm7, %v6577_v33  ;;  %v7107_v33 = vld [vmem:[#allocation11 + $0x1f8] sm:$0xff] }
 0x575   : > { %11082 = vmatpush3.bf16.msra.mxu1 %v11081_v31  ;;  %10466 = vmatprep.mubr.msk.f32.mxu1 %vm11960_vm9, %v13165_v15  ;;  %v6993_v31 = vld [vmem:[#allocation3 + $0x14] sm:$0xff]  ;;  %v11135_v36 = vpack.c.bf16 %v7107_v33, %v7106_v32 }
 0x576   : > { %11083 = vmatprep.subr.bf16.mxu1 %v11959_v18 }
 0x578   : > { %10467 = vmatmul.mubr.msk.f32.gmra.mrb[30].mxu1 %vm430_vm7, %v6578_v34  ;;  %v7205_v34 = vld [vmem:[#allocation11 + $0x208] sm:$0xff] }
 0x579   : > { %11085 = vmatpush3.bf16.msra.mxu1 %v11084_v35  ;;  %10485 = vmatprep.mubr.msk.f32.mxu1 %vm11960_vm9, %v13165_v15  ;;  %v6994_v35 = vld [vmem:[#allocation3 + $0x1c] sm:$0x3f] }
 0x57a   : > { %11086 = vmatprep.subr.bf16.mxu1 %v11959_v18 }
 0x57d   : > { %11088 = vmatpush3.bf16.msra.mxu1 %v11087_v38  ;;  %v11138_v38 = vpack.c.bf16 %v7205_v34, %v7204_v37 }
 0x57e   : > { %11089 = vmatprep.subr.bf16.mxu1 %v11959_v18 }
 0x580   : > { %10486 = vmatmul.mubr.msk.f32.vlgmr.msra.gmra.mrb[32].mxu1 %vm430_vm7, %v6680_v43  ;;  %v7209_v43 = vld [vmem:[#allocation11 + $0x228] sm:$0xff] }
 0x581   : > { %11091 = vmatpush3.bf16.msra.mxu1 %v11090_v40  ;;  %10488 = vmatprep.mubr.msk.f32.mxu1 %vm11960_vm9, %v13165_v15  ;;  %v7096_v40 = vld [vmem:[#allocation3 + $0xd] sm:$0xff]  ;;  %v11144_v14 = vpack.c.bf16 %v7209_v43, %v7208_v42 }
 0x582   : > { %11092 = vmatprep.subr.bf16.mxu1 %v11959_v18 }
 0x584   : > { %10489 = vmatmul.mubr.msk.f32.gmra.mrb[34].mxu1 %vm430_vm7, %v13256_v19 }
 0x585   : > { %11094 = vmatpush3.bf16.msra.mxu1 %v11093_v45  ;;  %10491 = vmatprep.mubr.msk.f32.mxu1 %vm11960_vm9, %v13165_v15  ;;  %v7097_v45 = vld [vmem:[#allocation3 + $0x15] sm:$0xff] }
 0x586   : > { %11095 = vmatprep.subr.bf16.mxu1 %v11959_v18 }
 0x588   : > { %10492 = vmatmul.mubr.msk.f32.gmra.mrb[36].mxu1 %vm430_vm7, %v6682_v49  ;;  %v7201_v49 = vld [vmem:[#allocation3 + $0x16] sm:$0xff] }
 0x589   : > { %11097 = vmatpush3.bf16.msra.mxu1 %v11096_v47  ;;  %10510 = vmatprep.mubr.msk.f32.mxu1 %vm11960_vm9, %v13165_v15  ;;  %v7210_v47 = vld [vmem:[#allocation11 + $0x230] sm:$0xff] }
 0x58a   : > { %11098 = vmatprep.subr.bf16.mxu1 %v11959_v18  ;;  %v11147_v48 = vpack.c.bf16 %v7211_v44, %v7210_v47 }
 0x58d   : > { %11100 = vmatpush3.bf16.msra.mxu1 %v11099_v50  ;;  %v7202_v50 = vld [vmem:[#allocation3 + $0x1e] sm:$0x3f] }
 0x58e   : > { %11101 = vmatprep.subr.bf16.mxu1 %v11959_v18 }
 0x590   : > { %10511 = vmatmul.mubr.msk.f32.vlgmr.msra.gmra.mrb[38].mxu1 %vm430_vm7, %v6784_v52 }
 0x591   : > { %11103 = vmatpush3.bf16.msra.mxu1 %v11102_v54  ;;  %10513 = vmatprep.mubr.msk.f32.mxu1 %vm11960_vm9, %v13165_v15 }
 0x592   : > { %11104 = vmatprep.subr.bf16.mxu1 %v11959_v18 }
 0x594   : > { %10514 = vmatmul.mubr.msk.f32.gmra.mrb[40].mxu1 %vm430_vm7, %v6785_v59  ;;  %v8824_v59 = vld [vmem:[%s13973_s7 + $0x98] sm:$0xff] }
 0x595   : > { %11106 = vmatpush3.bf16.msra.mxu1 %v11105_v20  ;;  %10516 = vmatprep.mubr.msk.f32.mxu1 %vm11960_vm9, %v13165_v15 }
 0x596   : > { %11107 = vmatprep.subr.bf16.mxu1 %v11959_v18 }
 0x598   : > { %10517 = vmatmul.mubr.msk.f32.gmra.mrb[42].mxu1 %vm430_vm7, %v6786_v1 }
 0x599   : > { %11109 = vmatpush3.bf16.msra.mxu1 %v11108_v60  ;;  %10535 = vmatprep.mubr.msk.f32.mxu1 %vm11960_vm9, %v13165_v15  ;;  %v11153_v60 = vpack.c.bf16 %v8824_v59, %v8823_v58 }
 0x59a   : > { %11110 = vmatprep.subr.bf16.mxu1 %v11959_v18 }
 0x59d   : > { %11112 = vmatpush3.bf16.msra.mxu1 %v11111_v2  ;;  %v8825_v2 = vld [vmem:[%s13973_s7 + $0xa0] sm:$0xff] }
 0x59e   : > { %11113 = vmatprep.subr.bf16.mxu1 %v11959_v18  ;;  %v11156_v61 = vpack.c.bf16 %v8826_v4, %v8825_v2 }
 0x5a0   : > { %10536 = vmatmul.mubr.msk.f32.vlgmr.msra.gmra.mrb[44].mxu1 %vm430_vm7, %v13227_v63  ;;  %v7003_v63 = vld [vmem:[#allocation11 + $0x1b8] sm:$0xff] }
 0x5a1   : > { %11115 = vmatpush3.bf16.msra.mxu1 %v11114_v5  ;;  %10538 = vmatprep.mubr.msk.f32.mxu1 %vm11960_vm9, %v13165_v15  ;;  %v11123_v13 = vpack.c.bf16 %v7003_v63, %v7002_v10  ;;  %v8829_v63 = vld [vmem:[%s13973_s7 + $0xc0] sm:$0xff] }
 0x5a2   : > { %11116 = vmatprep.subr.bf16.mxu1 %v11959_v18 }
 0x5a4   : > { %10539 = vmatmul.mubr.msk.f32.gmra.mrb[46].mxu1 %vm430_vm7, %v6889_v8 }
 0x5a5   : > { %11118 = vmatpush3.bf16.msra.mxu1 %v11117_v3  ;;  %10541 = vmatprep.mubr.msk.f32.mxu1 %vm11960_vm9, %v13165_v15  ;;  %v8827_v3 = vld [vmem:[%s13973_s7 + $0xb0] sm:$0xff] }
 0x5a6   : > { %11119 = vmatprep.subr.bf16.mxu1 %v11959_v18  ;;  %v11159_v62 = vpack.c.bf16 %v8828_v7, %v8827_v3 }
 0x5a8   : > { %10542 = vmatmul.mubr.msk.f32.gmra.mrb[48].mxu1 %vm430_vm7, %v6890_v12  ;;  %v8830_v12 = vld [vmem:[%s13973_s7 + $0xc8] sm:$0xff] }
 0x5a9   : > { %11121 = vmatpush3.bf16.msra.mxu1 %v11120_v9  ;;  %10560 = vmatprep.mubr.msk.f32.mxu1 %vm11960_vm9, %v13165_v15  ;;  %v11162_v6 = vpack.c.bf16 %v8830_v12, %v8829_v63 }
 0x5aa   : > { %11122 = vmatprep.subr.bf16.mxu1 %v11959_v18 }
 0x5ad   : > { %11124 = vmatpush3.bf16.msra.mxu1 %v11123_v13  ;;  %v8831_v13 = vld [vmem:[%s13973_s7 + $0xd0] sm:$0xff] }
 0x5ae   : > { %11125 = vmatprep.subr.bf16.mxu1 %v11959_v18 }
 0x5b0   : > { %10561 = vmatmul.mubr.msk.f32.vlgmr.msra.gmra.mrb[50].mxu1 %vm430_vm7, %v6992_v24 }
 0x5b1   : > { %11127 = vmatpush3.bf16.msra.mxu1 %v11126_v17  ;;  %10563 = vmatprep.mubr.msk.f32.mxu1 %vm11960_vm9, %v13165_v15  ;;  %v11165_v17 = vpack.c.bf16 %v8832_v16, %v8831_v13 }
 0x5b2   : > { %11128 = vmatprep.subr.bf16.mxu1 %v11959_v18 }
 0x5b4   : > { %10564 = vmatmul.mubr.msk.f32.gmra.mrb[52].mxu1 %vm430_vm7, %v6993_v31  ;;  %v8835_v31 = vld [vmem:[%s13973_s7 + $0xf0] sm:$0xff] }
 0x5b5   : > { %11130 = vmatpush3.bf16.msra.mxu1 %v11129_v28  ;;  %10566 = vmatprep.mubr.msk.f32.mxu1 %vm11960_vm9, %v13165_v15  ;;  %v11168_v28 = vpack.c.bf16 %v8834_v23, %v8833_v26 }
 0x5b6   : > { %11131 = vmatprep.subr.bf16.mxu1 %v11959_v18 }
 0x5b8   : > { %10567 = vmatmul.mubr.msk.f32.gmra.mrb[54].mxu1 %vm430_vm7, %v6994_v35 }
 0x5b9   : > { %11133 = vmatpush3.bf16.msra.mxu1 %v11132_v11  ;;  %10585 = vmatprep.mubr.msk.f32.mxu1 %vm11960_vm9, %v13165_v15  ;;  %v8836_v11 = vld [vmem:[%s13973_s7 + $0xf8] sm:$0xff] }
 0x5ba   : > { %11134 = vmatprep.subr.bf16.mxu1 %v11959_v18  ;;  %v11171_v33 = vpack.c.bf16 %v8836_v11, %v8835_v31 }
 0x5bd   : > { %11136 = vmatpush3.bf16.msra.mxu1 %v11135_v36 }
 0x5be   : > { %11137 = vmatprep.subr.bf16.mxu1 %v11959_v18 }
 0x5c0   : > { %10586 = vmatmul.mubr.msk.f32.vlgmr.msra.gmra.mrb[56].mxu1 %vm430_vm7, %v7096_v40 }
 0x5c1   : > { %11139 = vmatpush3.bf16.msra.mxu1 %v11138_v38  ;;  %10588 = vmatprep.mubr.msk.f32.mxu1 %vm11960_vm9, %v13165_v15 }
 0x5c2   : > { %11140 = vmatprep.subr.bf16.mxu1 %v11959_v18 }
 0x5c4   : > { %10589 = vmatmul.mubr.msk.f32.gmra.mrb[58].mxu1 %vm430_vm7, %v7097_v45 }
 0x5c5   : > { %11142 = vmatpush3.bf16.msra.mxu1 %v11141_v41  ;;  %10591 = vmatprep.mubr.msk.f32.mxu1 %vm11960_vm9, %v13165_v15 }
 0x5c6   : > { %11143 = vmatprep.subr.bf16.mxu1 %v11959_v18 }
 0x5c8   : > { %10592 = vmatmul.mubr.msk.f32.gmra.mrb[60].mxu1 %vm430_vm7, %v7098_v46 }
 0x5c9   : > { %11145 = vmatpush3.bf16.msra.mxu1 %v11144_v14  ;;  %10610 = vmatprep.mubr.msk.f32.mxu1 %vm11960_vm9, %v13165_v15 }
 0x5ca   : > { %11146 = vmatprep.subr.bf16.mxu1 %v11959_v18 }
 0x5cd   : > { %11148 = vmatpush3.bf16.msra.mxu1 %v11147_v48 }
 0x5ce   : > { %11149 = vmatprep.subr.bf16.mxu1 %v11959_v18 }
 0x5d0   : > { %10611 = vmatmul.mubr.msk.f32.vlgmr.msra.gmra.mrb[62].mxu1 %vm430_vm7, %v13256_v19  ;;  %v8821_v19 = vld [vmem:[%s13973_s7 + $0x80] sm:$0xff] }
 0x5d1   : > { %10613 = vmatprep.mubr.msk.f32.mxu1 %vm11960_vm9, %v13165_v15  ;;  %v11150_v52 = vpack.c.bf16 %v8822_v57, %v8821_v19 }
 0x5d3   : > { %11151 = vmatpush3.bf16.msra.mxu1 %v11150_v52 }
 0x5d4   : > { %10614 = vmatmul.mubr.msk.f32.gmra.mrb[64].mxu1 %vm430_vm7, %v7201_v49  ;;  %11152 = vmatprep.subr.bf16.mxu1 %v11959_v18 }
 0x5d5   : > { %10616 = vmatprep.mubr.msk.f32.mxu1 %vm11960_vm9, %v13165_v15 }
 0x5d7   : > { %11154 = vmatpush3.bf16.msra.mxu1 %v11153_v60 }
 0x5d8   : > { %10617 = vmatmul.mubr.msk.f32.gmra.mrb[66].mxu1 %vm430_vm7, %v7202_v50  ;;  %11155 = vmatprep.subr.bf16.mxu1 %v11959_v18 }
 0x5d9   : > { %10651 = vmatprep.mubr.msk.f32.mxu1 %vm11960_vm9, %v13165_v15 }
 0x5db   : > { %11157 = vmatpush3.bf16.msra.mxu1 %v11156_v61 }
 0x5dc   : > { %11158 = vmatprep.subr.bf16.mxu1 %v11959_v18 }
 0x5df   : > { %11160 = vmatpush3.bf16.msra.mxu1 %v11159_v62 }
 0x5e0   : > { %11161 = vmatprep.subr.bf16.mxu1 %v11959_v18 }
 0x5e3   : > { %11163 = vmatpush3.bf16.msra.mxu1 %v11162_v6 }
 0x5e4   : > { %11164 = vmatprep.subr.bf16.mxu1 %v11959_v18 }
 0x5e7   : > { %11166 = vmatpush3.bf16.msra.mxu1 %v11165_v17  ;;  %v8820_v17 = vld [vmem:[%s13972_s6] ss:$0 sm:$0xff] }
 0x5e8   : > { %11167 = vmatprep.subr.bf16.mxu1 %v11959_v18 }
 0x5eb   : > { %11169 = vmatpush3.bf16.msra.mxu1 %v11168_v28 }
 0x5ec   : > { %11170 = vmatprep.subr.bf16.mxu1 %v11959_v18 }
 0x5ef   : > { %11172 = vmatpush3.bf16.msra.mxu1 %v11171_v33 }
 0x5f0   : > { %11173 = vmatprep.subr.bf16.mxu1 %v11959_v18 }
 0x623   : > { %v6473_v51 = vpop.f32.mrb[14].mxu1 }
 0x624   : > { %v10412_v53 = vpop.f32.mrb[15].mxu1 }
 0x62a   : > { %v6478_v54 = vpop.f32.mrb[16].mxu1 }
 0x62b   : > { %v10415_v55 = vpop.f32.mrb[17].mxu1 }
 0x62e   : > { %v6483_v20 = vpop.f32.mrb[18].mxu1 }
 0x62f   : > { %v10418_v56 = vpop.f32.mrb[19].mxu1 }
 0x633   : > { %v6562_v0 = vpop.f32.mrb[20].mxu1 }
 0x634   : > { %v6563_v25 = vadd.f32 %v6562_v0, %v6473_v51  ;;  %v10437_v1 = vpop.f32.mrb[21].mxu1 }
 0x637   : > { %v6567_v5 = vpop.f32.mrb[22].mxu1 }
 0x638   : > { %v6568_v21 = vadd.f32 %v6567_v5, %v6478_v54  ;;  %v10440_v22 = vpop.f32.mrb[23].mxu1 }
 0x63b   : > { %v6572_v8 = vpop.f32.mrb[24].mxu1 }
 0x63c   : > { %v6573_v9 = vadd.f32 %v6572_v8, %v6483_v20  ;;  %v10443_v10 = vpop.f32.mrb[25].mxu1 }
 0x643   : > { %v6663_v24 = vpop.f32.mrb[26].mxu1 }
 0x644   : > { %v6677_v29 = vadd.f32 %v6663_v24, %v6563_v25  ;;  %v10462_v30 = vpop.f32.mrb[27].mxu1 }
 0x647   : > { %v6668_v32 = vpop.f32.mrb[28].mxu1 }
 0x648   : > { %v6678_v35 = vadd.f32 %v6668_v32, %v6568_v21  ;;  %v10465_v36 = vpop.f32.mrb[29].mxu1 }
 0x64b   : > { %v6673_v37 = vpop.f32.mrb[30].mxu1 }
 0x64c   : > { %v6679_v34 = vadd.f32 %v6673_v37, %v6573_v9  ;;  %v10468_v38 = vpop.f32.mrb[31].mxu1 }
 0x653   : > { %v6767_v39 = vpop.f32.mrb[32].mxu1 }
 0x654   : > { %v6781_v27 = vadd.f32 %v6767_v39, %v6677_v29  ;;  %v10487_v40 = vpop.f32.mrb[33].mxu1 }
 0x657   : > { %v6772_v41 = vpop.f32.mrb[34].mxu1 }
 0x658   : > { %v6782_v42 = vadd.f32 %v6772_v41, %v6678_v35  ;;  %v10490_v43 = vpop.f32.mrb[35].mxu1 }
 0x65b   : > { %v6777_v45 = vpop.f32.mrb[36].mxu1 }
 0x65c   : > { %v6783_v46 = vadd.f32 %v6777_v45, %v6679_v34  ;;  %v10493_v14 = vpop.f32.mrb[37].mxu1 }
 0x663   : > { %v6871_v47 = vpop.f32.mrb[38].mxu1 }
 0x664   : > { %v6885_v44 = vadd.f32 %v6871_v47, %v6781_v27  ;;  %v10512_v48 = vpop.f32.mrb[39].mxu1 }
 0x667   : > { %v6876_v49 = vpop.f32.mrb[40].mxu1 }
 0x668   : > { %v6886_v50 = vadd.f32 %v6876_v49, %v6782_v42  ;;  %v10515_v51 = vpop.f32.mrb[41].mxu1 }
 0x66b   : > { %v6881_v53 = vpop.f32.mrb[42].mxu1 }
 0x66c   : > { %v6887_v54 = vadd.f32 %v6881_v53, %v6783_v46  ;;  %v10518_v55 = vpop.f32.mrb[43].mxu1 }
 0x66d   : > { %v7353_v55 = vld [vmem:[%s13973_s7 + $0x8] sm:$0xff] }
 0x673   : > { %v6975_v19 = vpop.f32.mrb[44].mxu1 }
 0x674   : > { %v6989_v57 = vadd.f32 %v6975_v19, %v6885_v44  ;;  %v10537_v52 = vpop.f32.mrb[45].mxu1 }
 0x675   : > { %v7355_v52 = vld [vmem:[%s13973_s7 + $0x18] sm:$0xff] }
 0x677   : > { %v6980_v20 = vpop.f32.mrb[46].mxu1 }
 0x678   : > { %v6990_v56 = vadd.f32 %v6980_v20, %v6886_v50  ;;  %v10540_v58 = vpop.f32.mrb[47].mxu1 }
 0x679   : > { %v7356_v58 = vld [vmem:[%s13973_s7 + $0x20] sm:$0xff] }
 0x67b   : > { %v6985_v59 = vpop.f32.mrb[48].mxu1 }
 0x67c   : > { %v6991_v60 = vadd.f32 %v6985_v59, %v6887_v54  ;;  %v10543_v0 = vpop.f32.mrb[49].mxu1  ;;  %v7352_v54 = vld [vmem:[%s13973_s7] sm:$0xff]  ;;  %v7357_v59 = vld [vmem:[%s13973_s7 + $0x28] sm:$0xff] }
 0x67d   : > { %v11174_v19 = vpack.c.bf16 %v7353_v55, %v7352_v54  ;;  %v7358_v0 = vld [vmem:[%s13973_s7 + $0x30] sm:$0xff]  ;;  %v8861_v55 = vld [vmem:[%s13973_s7 + $0x1c0] sm:$0xff] }
 0x683   : > { %v7079_v25 = vpop.f32.mrb[50].mxu1 }
 0x684   : > { %v7093_v1 = vadd.f32 %v7079_v25, %v6989_v57  ;;  %v10562_v2 = vpop.f32.mrb[51].mxu1  ;;  %v7354_v57 = vld [vmem:[%s13973_s7 + $0x10] sm:$0xff]  ;;  %v7359_v25 = vld [vmem:[%s13973_s7 + $0x38] sm:$0xff] }
 0x685   : > { %v7360_v2 = vld [vmem:[%s13973_s7 + $0x40] sm:$0xff] }
 0x687   : > { %v7084_v4 = vpop.f32.mrb[52].mxu1 }
 0x688   : > { %v7094_v61 = vadd.f32 %v7084_v4, %v6990_v56  ;;  %v10565_v5 = vpop.f32.mrb[53].mxu1  ;;  %v11177_v56 = vpack.c.bf16 %v7355_v52, %v7354_v57  ;;  %v7361_v4 = vld [vmem:[%s13973_s7 + $0x48] sm:$0xff]  ;;  %v8863_v52 = vld [vmem:[%s13973_s7 + $0x1d0] sm:$0xff] }
 0x689   : > { %v7362_v5 = vld [vmem:[%s13973_s7 + $0x50] sm:$0xff] }
 0x68b   : > { %v7089_v21 = vpop.f32.mrb[54].mxu1 }
 0x68c   : > { %v7095_v22 = vadd.f32 %v7089_v21, %v6991_v60  ;;  %v10568_v3 = vpop.f32.mrb[55].mxu1  ;;  %v11180_v60 = vpack.c.bf16 %v7357_v59, %v7356_v58  ;;  %v7363_v21 = vld [vmem:[%s13973_s7 + $0x58] sm:$0xff]  ;;  %v8865_v58 = vld [vmem:[%s13973_s7 + $0x1e0] sm:$0xff]  ;;  %v8866_v59 = vld [vmem:[%s13973_s7 + $0x1e8] sm:$0xff] }
 0x68d   : > { %v7364_v3 = vld [vmem:[%s13973_s7 + $0x60] sm:$0xff] }
 0x693   : > { %v7183_v7 = vpop.f32.mrb[56].mxu1 }
 0x694   : > { %v7197_v62 = vadd.f32 %v7183_v7, %v7093_v1  ;;  %v10587_v8 = vpop.f32.mrb[57].mxu1  ;;  %v11183_v1 = vpack.c.bf16 %v7359_v25, %v7358_v0  ;;  %v7365_v7 = vld [vmem:[%s13973_s7 + $0x68] sm:$0xff]  ;;  %v8867_v0 = vld [vmem:[%s13973_s7 + $0x1f0] sm:$0xff]  ;;  %v8868_v25 = vld [vmem:[%s13973_s7 + $0x1f8] sm:$0xff] }
 0x695   : > { %v7366_v8 = vld [vmem:[%s13973_s7 + $0x70] sm:$0xff] }
 0x697   : > { %v7188_v9 = vpop.f32.mrb[58].mxu1 }
 0x698   : > { %v7198_v10 = vadd.f32 %v7188_v9, %v7094_v61  ;;  %v10590_v63 = vpop.f32.mrb[59].mxu1  ;;  %v11186_v61 = vpack.c.bf16 %v7361_v4, %v7360_v2  ;;  %v7367_v9 = vld [vmem:[%s13973_s7 + $0x78] sm:$0xff]  ;;  %v8869_v2 = vld [vmem:[%s13973_s7 + $0x200] sm:$0xff]  ;;  %v8870_v4 = vld [vmem:[%s13973_s7 + $0x208] sm:$0xff] }
 0x699   : > { %v8837_v63 = vld [vmem:[%s13973_s7 + $0x100] sm:$0xff] }
 0x69b   : > { %v7193_v12 = vpop.f32.mrb[60].mxu1 }
 0x69c   : > { %v7199_v13 = vadd.f32 %v7193_v12, %v7095_v22  ;;  %v10593_v6 = vpop.f32.mrb[61].mxu1  ;;  %v11189_v22 = vpack.c.bf16 %v7363_v21, %v7362_v5  ;;  %v8838_v12 = vld [vmem:[%s13973_s7 + $0x108] sm:$0xff]  ;;  %v8871_v5 = vld [vmem:[%s13973_s7 + $0x210] sm:$0xff]  ;;  %v8872_v21 = vld [vmem:[%s13973_s7 + $0x218] sm:$0xff] }
 0x69d   : > { %v8839_v6 = vld [vmem:[%s13973_s7 + $0x110] sm:$0xff] }
 0x6a3   : > { %v7287_v16 = vpop.f32.mrb[62].mxu1 }
 0x6a4   : > { %v7301_v26 = vadd.f32 %v7287_v16, %v7197_v62  ;;  %v10612_v23 = vpop.f32.mrb[63].mxu1  ;;  %v11192_v62 = vpack.c.bf16 %v7365_v7, %v7364_v3  ;;  %v8840_v16 = vld [vmem:[%s13973_s7 + $0x118] sm:$0xff]  ;;  %v11249_v3 = vpack.c.bf16 %v8872_v21, %v8871_v5  ;;  %v8873_v7 = vld [vmem:[%s13973_s7 + $0x220] sm:$0xff]  ;;  %v8911_v21 = vld [vmem:[%s13973_s7 + $0x350] sm:$0xff] }
 0x6a5   : > { %v8841_v23 = vld [vmem:[%s13973_s7 + $0x120] sm:$0xff] }
 0x6a6   : > { %v7311_v24 = vadd.f32 %v8820_v17, %v7301_v26  ;;  %v11201_v26 = vpack.c.bf16 %v8840_v16, %v8839_v6  ;;  %v8879_v16 = vld [vmem:[%s13973_s7 + $0x250] sm:$0xff] }
 0x6a7   : > { %v7292_v28 = vpop.f32.mrb[64].mxu1 }
 0x6a8   : > { %v7302_v29 = vadd.f32 %v7292_v28, %v7198_v10  ;;  %v10615_v30 = vpop.f32.mrb[65].mxu1  ;;  %v7314_v31 = vmax.f32 %v7311_v24, 0.0  ;;  %v11195_v10 = vpack.c.bf16 %v7367_v9, %v7366_v8  ;;  %v8842_v24 = vld [vmem:[%s13973_s7 + $0x128] sm:$0xff]  ;;  %v8875_v9 = vld [vmem:[%s13973_s7 + $0x230] sm:$0xff] }
 0x6a9   : > { %v11204_v28 = vpack.c.bf16 %v8842_v24, %v8841_v23  ;;  %v8844_v30 = vld [vmem:[%s13973_s7 + $0x138] sm:$0xff]  ;;  %v8881_v23 = vld [vmem:[%s13973_s7 + $0x260] sm:$0xff]  ;;  %v8882_v24 = vld [vmem:[%s13973_s7 + $0x268] sm:$0xff] }
 0x6aa   : > { %v7312_v11 = vadd.f32 %v8820_v17, %v7302_v29  ;;  %v7320_v37 = vrot.slane %v7314_v31, 1  ;;  %v8843_v29 = vld [vmem:[%s13973_s7 + $0x130] sm:$0xff] }
 0x6ab   : > { %v7297_v32 = vpop.f32.mrb[66].mxu1 }
 0x6ac   : > { %v7315_v33 = vmax.f32 %v7312_v11, 0.0  ;;  %v7303_v35 = vadd.f32 %v7297_v32, %v7199_v13  ;;  %v10618_v36 = vpop.f32.mrb[67].mxu1  ;;  %v11198_v13 = vpack.c.bf16 %v8838_v12, %v8837_v63  ;;  %v8845_v11 = vld [vmem:[%s13973_s7 + $0x140] sm:$0xff]  ;;  %v8846_v32 = vld [vmem:[%s13973_s7 + $0x148] sm:$0xff] }
 0x6ad   : > { %v8848_v36 = vld [vmem:[%s13973_s7 + $0x158] sm:$0xff]  ;;  %v8877_v12 = vld [vmem:[%s13973_s7 + $0x240] sm:$0xff] }
 0x6ae   : > { %v7321_v34 = vrot.slane %v7315_v33, 1  ;;  %v7313_v38 = vadd.f32 %v8820_v17, %v7303_v35  ;;  %v8847_v35 = vld [vmem:[%s13973_s7 + $0x150] sm:$0xff] }
 0x6b0   : > { %v7322_v39 = vsel %vm4353_vm3, %v7320_v37, %v7321_v34  ;;  %v7316_v27 = vmax.f32 %v7313_v38, 0.0  ;;  %v11213_v37 = vpack.c.bf16 %v8848_v36, %v8847_v35  ;;  %v8850_v38 = vld [vmem:[%s13973_s7 + $0x168] sm:$0xff]  ;;  %v8887_v35 = vld [vmem:[%s13973_s7 + $0x290] sm:$0xff]  ;;  %v8888_v36 = vld [vmem:[%s13973_s7 + $0x298] sm:$0xff] }
 0x6b1   : > { %v7328_v40 = vmax.f32 %v7314_v31, %v7322_v39  ;;  %v11207_v31 = vpack.c.bf16 %v8844_v30, %v8843_v29  ;;  %v8883_v29 = vld [vmem:[%s13973_s7 + $0x270] sm:$0xff]  ;;  %v8884_v30 = vld [vmem:[%s13973_s7 + $0x278] sm:$0xff] }
 0x6b2   : > { %v7323_v41 = vrot.slane %v7316_v27, 1 }
 0x6b3   : > { %v7335_v14 = vrot.slane %v7328_v40, 6 }
 0x6b4   : > { %v7324_v42 = vsel %vm4353_vm3, %v7321_v34, %v7323_v41  ;;  %v7330_v43 = vmax.f32 %v7316_v27, %v7323_v41  ;;  %v8849_v34 = vld [vmem:[%s13973_s7 + $0x160] sm:$0xff]  ;;  %v8851_v27 = vld [vmem:[%s13973_s7 + $0x170] sm:$0xff] }
 0x6b5   : > { %v7329_v45 = vmax.f32 %v7315_v33, %v7324_v42  ;;  %v11210_v33 = vpack.c.bf16 %v8846_v32, %v8845_v11  ;;  %v11216_v39 = vpack.c.bf16 %v8850_v38, %v8849_v34  ;;  %v8853_v42 = vld [vmem:[%s13973_s7 + $0x180] sm:$0xff]  ;;  %v8886_v32 = vld [vmem:[%s13973_s7 + $0x288] sm:$0xff]  ;;  %v11273_v34 = vpack.c.bf16 %v8888_v36, %v8887_v35  ;;  %v8927_v36 = vld [vmem:[%s13973_s7 + $0x3d0] sm:$0xff] }
 0x6b6   : > { %v7338_v46 = vrot.slane %v7330_v43, 6  ;;  %v8854_v43 = vld [vmem:[%s13973_s7 + $0x188] sm:$0xff]  ;;  %v8885_v11 = vld [vmem:[%s13973_s7 + $0x280] sm:$0xff] }
 0x6b7   : > { %v7336_v47 = vrot.slane %v7329_v45, 6  ;;  %v8889_v38 = vld [vmem:[%s13973_s7 + $0x2a0] sm:$0xff] }
 0x6b9   : > { %v7337_v44 = vsel %vm7334_vm11, %v7335_v14, %v7336_v47  ;;  %v7339_v48 = vsel %vm7334_vm11, %v7336_v47, %v7338_v46  ;;  %v8855_v46 = vld [vmem:[%s13973_s7 + $0x190] sm:$0xff]  ;;  %v8856_v14 = vld [vmem:[%s13973_s7 + $0x198] sm:$0xff] }
 0x6ba   : > { %v7342_v49 = vmax.f32 %v7328_v40, %v7337_v44  ;;  %v7343_v50 = vmax.f32 %v7329_v45, %v7339_v48  ;;  %v8852_v40 = vld [vmem:[%s13973_s7 + $0x178] sm:$0xff]  ;;  %v11222_v45 = vpack.c.bf16 %v8854_v43, %v8853_v42  ;;  %v11225_v44 = vpack.c.bf16 %v8856_v14, %v8855_v46  ;;  %v8857_v48 = vld [vmem:[%s13973_s7 + $0x1a0] sm:$0xff]  ;;  %v8895_v14 = vld [vmem:[%s13973_s7 + $0x2d0] sm:$0xff] }
 0x6bb   : > { %v11219_v41 = vpack.c.bf16 %v8852_v40, %v8851_v27  ;;  %v8891_v40 = vld [vmem:[%s13973_s7 + $0x2b0] sm:$0xff]  ;;  %v8893_v43 = vld [vmem:[%s13973_s7 + $0x2c0] sm:$0xff] }
 0x6bc   : > { %7344 = vst [vmem:[#allocation7] sm:$0xff] %v7342_v49  ;;  %7345 = vst [vmem:[#allocation7 + $0x8] sm:$0x7f] %v7343_v50  ;;  %v8858_v49 = vld [vmem:[%s13973_s7 + $0x1a8] sm:$0xff] }
 0x6bd   : > { %v11228_v50 = vpack.c.bf16 %v8858_v49, %v8857_v48  ;;  %v8897_v48 = vld [vmem:[%s13973_s7 + $0x2e0] sm:$0xff]  ;;  %v8898_v49 = vld [vmem:[%s13973_s7 + $0x2e8] sm:$0xff] }
 0x6c3   : > { %v7346_v51 = vld [vmem:[#allocation7] ss:$2 sm:$0x3]  ;;  %v7349_v53 = vld [vmem:[#allocation7 + $0xc] ss:$2 sm:$0x3] }
 0x6c4   : > { %7347 = vst [vmem:[#allocation4 + $0x5] sm:$0x3] %v7346_v51  ;;  %7350 = vst [vmem:[#allocation4 + $0x9] sm:$0x3] %v7349_v53  ;;  %v8859_v51 = vld [vmem:[%s13973_s7 + $0x1b0] sm:$0xff]  ;;  %v8860_v53 = vld [vmem:[%s13973_s7 + $0x1b8] sm:$0xff] }
 0x6c5   : > { %v11231_v54 = vpack.c.bf16 %v8860_v53, %v8859_v51  ;;  %v8899_v51 = vld [vmem:[%s13973_s7 + $0x2f0] sm:$0xff]  ;;  %v8900_v53 = vld [vmem:[%s13973_s7 + $0x2f8] sm:$0xff] }
 0x6cb   : > { %v7368_v20 = vld [vmem:[#allocation4 + $0x1] sm:$0x3f] }
 0x6cc   : > { %10652 = vmatmul.mubr.f32.vlgmr.msra.gmra.mrb[68].mxu1 %v7368_v20  ;;  %v7351_v17 = vld [vmem:[#allocation4] sm:$0x3f]  ;;  %v8864_v20 = vld [vmem:[%s13973_s7 + $0x1d8] sm:$0xff] }
 0x6cd   : > { %11175 = vmatpush3.bf16.msra.mxu1 %v11174_v19  ;;  %10686 = vmatprep.mubr.msk.f32.mxu1 %vm11960_vm9, %v13165_v15  ;;  %v7526_v47 = vld [vmem:[#allocation4 + $0x2] sm:$0x3f]  ;;  %v8862_v19 = vld [vmem:[%s13973_s7 + $0x1c8] sm:$0xff] }
 0x6ce   : > { %11176 = vmatprep.subr.bf16.mxu1 %v11959_v18  ;;  %v11234_v57 = vpack.c.bf16 %v8862_v19, %v8861_v55  ;;  %v8901_v55 = vld [vmem:[%s13973_s7 + $0x300] sm:$0xff]  ;;  %v8902_v19 = vld [vmem:[%s13973_s7 + $0x308] sm:$0xff] }
 0x6d1   : > { %11178 = vmatpush3.bf16.msra.mxu1 %v11177_v56  ;;  %v11237_v56 = vpack.c.bf16 %v8864_v20, %v8863_v52  ;;  %v8903_v52 = vld [vmem:[%s13973_s7 + $0x310] sm:$0xff]  ;;  %v8904_v20 = vld [vmem:[%s13973_s7 + $0x318] sm:$0xff] }
 0x6d2   : > { %11179 = vmatprep.subr.bf16.mxu1 %v11959_v18 }
 0x6d5   : > { %11181 = vmatpush3.bf16.msra.mxu1 %v11180_v60  ;;  %v11240_v60 = vpack.c.bf16 %v8866_v59, %v8865_v58  ;;  %v11297_v58 = vpack.c.bf16 %v8904_v20, %v8903_v52  ;;  %v8905_v59 = vld [vmem:[%s13973_s7 + $0x320] sm:$0xff]  ;;  %v8942_v20 = vld [vmem:[%s13973_s7 + $0x448] sm:$0xff] }
 0x6d6   : > { %11182 = vmatprep.subr.bf16.mxu1 %v11959_v18  ;;  %v8941_v52 = vld [vmem:[%s13973_s7 + $0x440] sm:$0xff] }
 0x6d9   : > { %11184 = vmatpush3.bf16.msra.mxu1 %v11183_v1  ;;  %v11243_v1 = vpack.c.bf16 %v8868_v25, %v8867_v0  ;;  %v8907_v25 = vld [vmem:[%s13973_s7 + $0x330] sm:$0xff] }
 0x6da   : > { %11185 = vmatprep.subr.bf16.mxu1 %v11959_v18 }
 0x6dd   : > { %11187 = vmatpush3.bf16.msra.mxu1 %v11186_v61  ;;  %v11246_v61 = vpack.c.bf16 %v8870_v4, %v8869_v2  ;;  %v8909_v4 = vld [vmem:[%s13973_s7 + $0x340] sm:$0xff] }
 0x6de   : > { %11188 = vmatprep.subr.bf16.mxu1 %v11959_v18 }
 0x6e1   : > { %11190 = vmatpush3.bf16.msra.mxu1 %v11189_v22  ;;  %v7615_v22 = vld [vmem:[#allocation4 + $0x4] sm:$0x3f] }
 0x6e2   : > { %11191 = vmatprep.subr.bf16.mxu1 %v11959_v18 }
 0x6e5   : > { %11193 = vmatpush3.bf16.msra.mxu1 %v11192_v62  ;;  %v8874_v62 = vld [vmem:[%s13973_s7 + $0x228] sm:$0xff] }
 0x6e6   : > { %11194 = vmatprep.subr.bf16.mxu1 %v11959_v18  ;;  %v11252_v8 = vpack.c.bf16 %v8874_v62, %v8873_v7  ;;  %v8913_v7 = vld [vmem:[%s13973_s7 + $0x360] sm:$0xff]  ;;  %v8914_v62 = vld [vmem:[%s13973_s7 + $0x368] sm:$0xff] }
 0x6e9   : > { %11196 = vmatpush3.bf16.msra.mxu1 %v11195_v10  ;;  %v8876_v10 = vld [vmem:[%s13973_s7 + $0x238] sm:$0xff] }
 0x6ea   : > { %11197 = vmatprep.subr.bf16.mxu1 %v11959_v18  ;;  %v11255_v63 = vpack.c.bf16 %v8876_v10, %v8875_v9  ;;  %v8915_v9 = vld [vmem:[%s13973_s7 + $0x370] sm:$0xff]  ;;  %v8916_v10 = vld [vmem:[%s13973_s7 + $0x378] sm:$0xff] }
 0x6ec   : > { %10687 = vmatmul.mubr.f32.vlgmr.msra.gmra.mrb[70].mxu1 %v7351_v17  ;;  %v8880_v17 = vld [vmem:[%s13973_s7 + $0x258] sm:$0xff] }
 0x6ed   : > { %11199 = vmatpush3.bf16.msra.mxu1 %v11198_v13  ;;  %10721 = vmatprep.mubr.msk.f32.mxu1 %vm11960_vm9, %v13165_v15  ;;  %v8878_v13 = vld [vmem:[%s13973_s7 + $0x248] sm:$0xff] }
 0x6ee   : > { %11200 = vmatprep.subr.bf16.mxu1 %v11959_v18  ;;  %v11258_v6 = vpack.c.bf16 %v8878_v13, %v8877_v12  ;;  %v8917_v12 = vld [vmem:[%s13973_s7 + $0x380] sm:$0xff]  ;;  %v8918_v13 = vld [vmem:[%s13973_s7 + $0x388] sm:$0xff] }
 0x6f1   : > { %11202 = vmatpush3.bf16.msra.mxu1 %v11201_v26  ;;  %v11261_v26 = vpack.c.bf16 %v8880_v17, %v8879_v16  ;;  %v8919_v16 = vld [vmem:[%s13973_s7 + $0x390] sm:$0xff]  ;;  %v8920_v17 = vld [vmem:[%s13973_s7 + $0x398] sm:$0xff] }
 0x6f2   : > { %11203 = vmatprep.subr.bf16.mxu1 %v11959_v18 }
 0x6f5   : > { %11205 = vmatpush3.bf16.msra.mxu1 %v11204_v28  ;;  %v11264_v28 = vpack.c.bf16 %v8882_v24, %v8881_v23  ;;  %v11321_v23 = vpack.c.bf16 %v8920_v17, %v8919_v16  ;;  %v8921_v24 = vld [vmem:[%s13973_s7 + $0x3a0] sm:$0xff] }
 0x6f6   : > { %11206 = vmatprep.subr.bf16.mxu1 %v11959_v18 }
 0x6f9   : > { %11208 = vmatpush3.bf16.msra.mxu1 %v11207_v31  ;;  %v11267_v31 = vpack.c.bf16 %v8884_v30, %v8883_v29  ;;  %v8923_v30 = vld [vmem:[%s13973_s7 + $0x3b0] sm:$0xff] }
 0x6fa   : > { %11209 = vmatprep.subr.bf16.mxu1 %v11959_v18 }
 0x6fd   : > { %11211 = vmatpush3.bf16.msra.mxu1 %v11210_v33  ;;  %v11270_v33 = vpack.c.bf16 %v8886_v32, %v8885_v11  ;;  %v8925_v32 = vld [vmem:[%s13973_s7 + $0x3c0] sm:$0xff] }
 0x6fe   : > { %11212 = vmatprep.subr.bf16.mxu1 %v11959_v18 }
 0x701   : > { %11214 = vmatpush3.bf16.msra.mxu1 %v11213_v37  ;;  %v7704_v37 = vld [vmem:[#allocation4 + $0x5] sm:$0x3f] }
 0x702   : > { %11215 = vmatprep.subr.bf16.mxu1 %v11959_v18 }
 0x705   : > { %11217 = vmatpush3.bf16.msra.mxu1 %v11216_v39  ;;  %v8890_v39 = vld [vmem:[%s13973_s7 + $0x2a8] sm:$0xff] }
 0x706   : > { %11218 = vmatprep.subr.bf16.mxu1 %v11959_v18  ;;  %v11276_v27 = vpack.c.bf16 %v8890_v39, %v8889_v38  ;;  %v8929_v38 = vld [vmem:[%s13973_s7 + $0x3e0] sm:$0xff]  ;;  %v8930_v39 = vld [vmem:[%s13973_s7 + $0x3e8] sm:$0xff] }
 0x709   : > { %11220 = vmatpush3.bf16.msra.mxu1 %v11219_v41  ;;  %v8892_v41 = vld [vmem:[%s13973_s7 + $0x2b8] sm:$0xff] }
 0x70a   : > { %11221 = vmatprep.subr.bf16.mxu1 %v11959_v18  ;;  %v11279_v42 = vpack.c.bf16 %v8892_v41, %v8891_v40  ;;  %v11336_v41 = vpack.c.bf16 %v8930_v39, %v8929_v38  ;;  %v8171_v38 = vld [vmem:[%s13975_s9 + $0x68] sm:$0xff] }
 0x70c   : > { %10722 = vmatmul.mubr.f32.vlgmr.msra.gmra.mrb[72].mxu1 %v7526_v47  ;;  %v8896_v47 = vld [vmem:[%s13973_s7 + $0x2d8] sm:$0xff] }
 0x70d   : > { %11223 = vmatpush3.bf16.msra.mxu1 %v11222_v45  ;;  %10756 = vmatprep.mubr.msk.f32.mxu1 %vm11960_vm9, %v13165_v15  ;;  %v8894_v45 = vld [vmem:[%s13973_s7 + $0x2c8] sm:$0xff] }
 0x70e   : > { %11224 = vmatprep.subr.bf16.mxu1 %v11959_v18  ;;  %v11282_v46 = vpack.c.bf16 %v8894_v45, %v8893_v43  ;;  %v8932_v43 = vld [vmem:[%s13973_s7 + $0x3f8] sm:$0xff] }
 0x711   : > { %11226 = vmatpush3.bf16.msra.mxu1 %v11225_v44  ;;  %v11285_v44 = vpack.c.bf16 %v8896_v47, %v8895_v14  ;;  %v8934_v14 = vld [vmem:[%s13973_s7 + $0x408] sm:$0xff] }
 0x712   : > { %11227 = vmatprep.subr.bf16.mxu1 %v11959_v18 }
 0x715   : > { %11229 = vmatpush3.bf16.msra.mxu1 %v11228_v50  ;;  %v11288_v50 = vpack.c.bf16 %v8898_v49, %v8897_v48  ;;  %v8936_v48 = vld [vmem:[%s13973_s7 + $0x418] sm:$0xff] }
 0x716   : > { %11230 = vmatprep.subr.bf16.mxu1 %v11959_v18  ;;  %v7971_v49 = vld [vmem:[#allocation4 + $0x9] sm:$0x3f] }
 0x719   : > { %11232 = vmatpush3.bf16.msra.mxu1 %v11231_v54  ;;  %v11291_v54 = vpack.c.bf16 %v8900_v53, %v8899_v51  ;;  %v8937_v51 = vld [vmem:[%s13973_s7 + $0x420] sm:$0xff]  ;;  %v8938_v53 = vld [vmem:[%s13973_s7 + $0x428] sm:$0xff] }
 0x71a   : > { %11233 = vmatprep.subr.bf16.mxu1 %v11959_v18 }
 0x71d   : > { %11235 = vmatpush3.bf16.msra.mxu1 %v11234_v57  ;;  %v11294_v57 = vpack.c.bf16 %v8902_v19, %v8901_v55  ;;  %v8939_v55 = vld [vmem:[%s13973_s7 + $0x430] sm:$0xff]  ;;  %v8940_v19 = vld [vmem:[%s13973_s7 + $0x438] sm:$0xff] }
 0x71e   : > { %11236 = vmatprep.subr.bf16.mxu1 %v11959_v18 }
 0x721   : > { %11238 = vmatpush3.bf16.msra.mxu1 %v11237_v56  ;;  %v7793_v56 = vld [vmem:[#allocation4 + $0x6] sm:$0x3f] }
 0x722   : > { %11239 = vmatprep.subr.bf16.mxu1 %v11959_v18 }
 0x725   : > { %11241 = vmatpush3.bf16.msra.mxu1 %v11240_v60  ;;  %v8906_v60 = vld [vmem:[%s13973_s7 + $0x328] sm:$0xff] }
 0x726   : > { %11242 = vmatprep.subr.bf16.mxu1 %v11959_v18  ;;  %v11300_v0 = vpack.c.bf16 %v8906_v60, %v8905_v59  ;;  %v8944_v59 = vld [vmem:[%s13973_s7 + $0x458] sm:$0xff] }
 0x729   : > { %11244 = vmatpush3.bf16.msra.mxu1 %v11243_v1  ;;  %v8908_v1 = vld [vmem:[%s13973_s7 + $0x338] sm:$0xff] }
 0x72a   : > { %11245 = vmatprep.subr.bf16.mxu1 %v11959_v18  ;;  %v11303_v2 = vpack.c.bf16 %v8908_v1, %v8907_v25  ;;  %v8946_v25 = vld [vmem:[%s13973_s7 + $0x468] sm:$0xff] }
 0x72c   : > { %10757 = vmatmul.mubr.f32.vlgmr.msra.gmra.mrb[74].mxu1 %v7615_v22  ;;  %v8912_v22 = vld [vmem:[%s13973_s7 + $0x358] sm:$0xff] }
 0x72d   : > { %11247 = vmatpush3.bf16.msra.mxu1 %v11246_v61  ;;  %10791 = vmatprep.mubr.msk.f32.mxu1 %vm11960_vm9, %v13165_v15  ;;  %v8910_v61 = vld [vmem:[%s13973_s7 + $0x348] sm:$0xff] }
 0x72e   : > { %11248 = vmatprep.subr.bf16.mxu1 %v11959_v18  ;;  %v11306_v5 = vpack.c.bf16 %v8910_v61, %v8909_v4 }
 0x731   : > { %11250 = vmatpush3.bf16.msra.mxu1 %v11249_v3  ;;  %v11309_v3 = vpack.c.bf16 %v8912_v22, %v8911_v21  ;;  %v8948_v21 = vld [vmem:[%s13973_s7 + $0x478] sm:$0xff] }
 0x732   : > { %11251 = vmatprep.subr.bf16.mxu1 %v11959_v18 }
 0x735   : > { %11253 = vmatpush3.bf16.msra.mxu1 %v11252_v8  ;;  %v11312_v8 = vpack.c.bf16 %v8914_v62, %v8913_v7 }
 0x736   : > { %11254 = vmatprep.subr.bf16.mxu1 %v11959_v18 }
 0x739   : > { %11256 = vmatpush3.bf16.msra.mxu1 %v11255_v63  ;;  %v11315_v63 = vpack.c.bf16 %v8916_v10, %v8915_v9 }
 0x73a   : > { %11257 = vmatprep.subr.bf16.mxu1 %v11959_v18 }
 0x73d   : > { %11259 = vmatpush3.bf16.msra.mxu1 %v11258_v6  ;;  %v11318_v6 = vpack.c.bf16 %v8918_v13, %v8917_v12  ;;  %v8158_v12 = vld [vmem:[%s13975_s9] sm:$0xff]  ;;  %v8159_v13 = vld [vmem:[%s13975_s9 + $0x8] sm:$0xff] }
 0x73e   : > { %11260 = vmatprep.subr.bf16.mxu1 %v11959_v18  ;;  %v11366_v16 = vpack.c.bf16 %v8159_v13, %v8158_v12 }
 0x741   : > { %11262 = vmatpush3.bf16.msra.mxu1 %v11261_v26  ;;  %v7882_v26 = vld [vmem:[#allocation4 + $0x8] sm:$0x3f] }
 0x742   : > { %11263 = vmatprep.subr.bf16.mxu1 %v11959_v18 }
 0x745   : > { %11265 = vmatpush3.bf16.msra.mxu1 %v11264_v28  ;;  %v8922_v28 = vld [vmem:[%s13973_s7 + $0x3a8] sm:$0xff] }
 0x746   : > { %11266 = vmatprep.subr.bf16.mxu1 %v11959_v18  ;;  %v11324_v29 = vpack.c.bf16 %v8922_v28, %v8921_v24  ;;  %v8164_v28 = vld [vmem:[%s13975_s9 + $0x30] sm:$0xff] }
 0x749   : > { %11268 = vmatpush3.bf16.msra.mxu1 %v11267_v31  ;;  %v8924_v31 = vld [vmem:[%s13973_s7 + $0x3b8] sm:$0xff] }
 0x74a   : > { %11269 = vmatprep.subr.bf16.mxu1 %v11959_v18  ;;  %v11327_v11 = vpack.c.bf16 %v8924_v31, %v8923_v30  ;;  %v8166_v31 = vld [vmem:[%s13975_s9 + $0x40] sm:$0xff] }
 0x74c   : > { %10792 = vmatmul.mubr.f32.vlgmr.msra.gmra.mrb[76].mxu1 %v7704_v37  ;;  %v8928_v37 = vld [vmem:[%s13973_s7 + $0x3d8] sm:$0xff] }
 0x74d   : > { %11271 = vmatpush3.bf16.msra.mxu1 %v11270_v33  ;;  %10826 = vmatprep.mubr.msk.f32.mxu1 %vm11960_vm9, %v13165_v15  ;;  %v8926_v33 = vld [vmem:[%s13973_s7 + $0x3c8] sm:$0xff] }
 0x74e   : > { %11272 = vmatprep.subr.bf16.mxu1 %v11959_v18  ;;  %v11330_v35 = vpack.c.bf16 %v8926_v33, %v8925_v32  ;;  %v8168_v33 = vld [vmem:[%s13975_s9 + $0x50] sm:$0xff] }
 0x751   : > { %11274 = vmatpush3.bf16.msra.mxu1 %v11273_v34  ;;  %v11333_v34 = vpack.c.bf16 %v8928_v37, %v8927_v36 }
 0x752   : > { %11275 = vmatprep.subr.bf16.mxu1 %v11959_v18 }
 0x755   : > { %11277 = vmatpush3.bf16.msra.mxu1 %v11276_v27 }
 0x756   : > { %11278 = vmatprep.subr.bf16.mxu1 %v11959_v18 }
 0x759   : > { %11280 = vmatpush3.bf16.msra.mxu1 %v11279_v42  ;;  %v8931_v42 = vld [vmem:[%s13973_s7 + $0x3f0] sm:$0xff] }
 0x75a   : > { %11281 = vmatprep.subr.bf16.mxu1 %v11959_v18  ;;  %v11339_v45 = vpack.c.bf16 %v8932_v43, %v8931_v42  ;;  %v8173_v42 = vld [vmem:[%s13975_s9 + $0x78] sm:$0xff] }
 0x75d   : > { %11283 = vmatpush3.bf16.msra.mxu1 %v11282_v46  ;;  %v8933_v46 = vld [vmem:[%s13973_s7 + $0x400] sm:$0xff] }
 0x75e   : > { %11284 = vmatprep.subr.bf16.mxu1 %v11959_v18  ;;  %v11342_v47 = vpack.c.bf16 %v8934_v14, %v8933_v46 }
 0x761   : > { %11286 = vmatpush3.bf16.msra.mxu1 %v11285_v44  ;;  %v8935_v44 = vld [vmem:[%s13973_s7 + $0x410] sm:$0xff] }
 0x762   : > { %11287 = vmatprep.subr.bf16.mxu1 %v11959_v18 }
 0x765   : > { %11289 = vmatpush3.bf16.msra.mxu1 %v11288_v50  ;;  %v11345_v50 = vpack.c.bf16 %v8936_v48, %v8935_v44 }
 0x766   : > { %11290 = vmatprep.subr.bf16.mxu1 %v11959_v18 }
 0x769   : > { %11292 = vmatpush3.bf16.msra.mxu1 %v11291_v54  ;;  %v11348_v54 = vpack.c.bf16 %v8938_v53, %v8937_v51  ;;  %v8949_v53 = vld [vmem:[%s13974_s8] ss:$0 sm:$0xff] }
 0x76a   : > { %11293 = vmatprep.subr.bf16.mxu1 %v11959_v18 }
 0x76c   : > { %10827 = vmatmul.mubr.f32.vlgmr.msra.gmra.mrb[78].mxu1 %v7793_v56  ;;  %v11354_v56 = vpack.c.bf16 %v8942_v20, %v8941_v52  ;;  %v8950_v52 = vld [vmem:[%s13976_s10] ss:$0 sm:$0xff] }
 0x76d   : > { %11295 = vmatpush3.bf16.msra.mxu1 %v11294_v57  ;;  %10861 = vmatprep.mubr.msk.f32.mxu1 %vm11960_vm9, %v13165_v15  ;;  %v11351_v57 = vpack.c.bf16 %v8940_v19, %v8939_v55 }
 0x76e   : > { %11296 = vmatprep.subr.bf16.mxu1 %v11959_v18 }
 0x771   : > { %11298 = vmatpush3.bf16.msra.mxu1 %v11297_v58  ;;  %v8943_v58 = vld [vmem:[%s13973_s7 + $0x450] sm:$0xff] }
 0x772   : > { %11299 = vmatprep.subr.bf16.mxu1 %v11959_v18  ;;  %v11357_v60 = vpack.c.bf16 %v8944_v59, %v8943_v58 }
 0x775   : > { %11301 = vmatpush3.bf16.msra.mxu1 %v11300_v0  ;;  %v8945_v0 = vld [vmem:[%s13973_s7 + $0x460] sm:$0xff] }
 0x776   : > { %11302 = vmatprep.subr.bf16.mxu1 %v11959_v18  ;;  %v11360_v61 = vpack.c.bf16 %v8946_v25, %v8945_v0 }
 0x779   : > { %11304 = vmatpush3.bf16.msra.mxu1 %v11303_v2 }
 0x77a   : > { %11305 = vmatprep.subr.bf16.mxu1 %v11959_v18 }
 0x77d   : > { %11307 = vmatpush3.bf16.msra.mxu1 %v11306_v5  ;;  %v8947_v5 = vld [vmem:[%s13973_s7 + $0x470] sm:$0xff] }
 0x77e   : > { %11308 = vmatprep.subr.bf16.mxu1 %v11959_v18  ;;  %v11363_v22 = vpack.c.bf16 %v8948_v21, %v8947_v5 }
 0x781   : > { %11310 = vmatpush3.bf16.msra.mxu1 %v11309_v3  ;;  %v8060_v3 = vld [vmem:[#allocation4 + $0xa] sm:$0x3f] }
 0x782   : > { %11311 = vmatprep.subr.bf16.mxu1 %v11959_v18 }
 0x785   : > { %11313 = vmatpush3.bf16.msra.mxu1 %v11312_v8 }
 0x786   : > { %11314 = vmatprep.subr.bf16.mxu1 %v11959_v18 }
 0x789   : > { %11316 = vmatpush3.bf16.msra.mxu1 %v11315_v63 }
 0x78a   : > { %11317 = vmatprep.subr.bf16.mxu1 %v11959_v18 }
 0x78c   : > { %10862 = vmatmul.mubr.f32.vlgmr.msra.gmra.mrb[80].mxu1 %v7882_v26  ;;  %v8162_v26 = vld [vmem:[%s13975_s9 + $0x20] sm:$0xff] }
 0x78d   : > { %11319 = vmatpush3.bf16.msra.mxu1 %v11318_v6  ;;  %10896 = vmatprep.mubr.msk.f32.mxu1 %vm11960_vm9, %v13165_v15  ;;  %v8160_v6 = vld [vmem:[%s13975_s9 + $0x10] sm:$0xff] }
 0x78e   : > { %11320 = vmatprep.subr.bf16.mxu1 %v11959_v18 }
 0x791   : > { %11322 = vmatpush3.bf16.msra.mxu1 %v11321_v23  ;;  %v8163_v23 = vld [vmem:[%s13975_s9 + $0x28] sm:$0xff] }
 0x792   : > { %11323 = vmatprep.subr.bf16.mxu1 %v11959_v18  ;;  %v11372_v24 = vpack.c.bf16 %v8163_v23, %v8162_v26 }
 0x795   : > { %11325 = vmatpush3.bf16.msra.mxu1 %v11324_v29  ;;  %v8165_v29 = vld [vmem:[%s13975_s9 + $0x38] sm:$0xff] }
 0x796   : > { %11326 = vmatprep.subr.bf16.mxu1 %v11959_v18  ;;  %v11375_v30 = vpack.c.bf16 %v8165_v29, %v8164_v28 }
 0x799   : > { %11328 = vmatpush3.bf16.msra.mxu1 %v11327_v11  ;;  %v8167_v11 = vld [vmem:[%s13975_s9 + $0x48] sm:$0xff] }
 0x79a   : > { %11329 = vmatprep.subr.bf16.mxu1 %v11959_v18  ;;  %v11378_v32 = vpack.c.bf16 %v8167_v11, %v8166_v31 }
 0x79d   : > { %11331 = vmatpush3.bf16.msra.mxu1 %v11330_v35  ;;  %v8169_v35 = vld [vmem:[%s13975_s9 + $0x58] sm:$0xff] }
 0x79e   : > { %11332 = vmatprep.subr.bf16.mxu1 %v11959_v18  ;;  %v11381_v36 = vpack.c.bf16 %v8169_v35, %v8168_v33 }
 0x79f   : > { %v7452_v27 = vpop.f32.mrb[68].mxu1 }
 0x7a0   : > { %v10653_v40 = vpop.f32.mrb[69].mxu1 }
 0x7a1   : > { %11334 = vmatpush3.bf16.msra.mxu1 %v11333_v34  ;;  %v8170_v34 = vld [vmem:[%s13975_s9 + $0x60] sm:$0xff] }
 0x7a2   : > { %11335 = vmatprep.subr.bf16.mxu1 %v11959_v18  ;;  %v11384_v40 = vpack.c.bf16 %v8171_v38, %v8170_v34 }
 0x7a5   : > { %11337 = vmatpush3.bf16.msra.mxu1 %v11336_v41  ;;  %v8172_v41 = vld [vmem:[%s13975_s9 + $0x70] sm:$0xff] }
 0x7a6   : > { %11338 = vmatprep.subr.bf16.mxu1 %v11959_v18  ;;  %v11387_v43 = vpack.c.bf16 %v8173_v42, %v8172_v41 }
 0x7a9   : > { %11340 = vmatpush3.bf16.msra.mxu1 %v11339_v45 }
 0x7aa   : > { %11341 = vmatprep.subr.bf16.mxu1 %v11959_v18 }
 0x7ac   : > { %10897 = vmatmul.mubr.f32.vlgmr.msra.gmra.mrb[82].mxu1 %v7971_v49 }
 0x7ad   : > { %11343 = vmatpush3.bf16.msra.mxu1 %v11342_v47  ;;  %10931 = vmatprep.mubr.msk.f32.mxu1 %vm11960_vm9, %v13165_v15 }
 0x7ae   : > { %11344 = vmatprep.subr.bf16.mxu1 %v11959_v18 }
 0x7b1   : > { %11346 = vmatpush3.bf16.msra.mxu1 %v11345_v50 }
 0x7b2   : > { %11347 = vmatprep.subr.bf16.mxu1 %v11959_v18 }
 0x7b5   : > { %11349 = vmatpush3.bf16.msra.mxu1 %v11348_v54 }
 0x7b6   : > { %11350 = vmatprep.subr.bf16.mxu1 %v11959_v18 }
 0x7b9   : > { %11352 = vmatpush3.bf16.msra.mxu1 %v11351_v57 }
 0x7ba   : > { %11353 = vmatprep.subr.bf16.mxu1 %v11959_v18 }
 0x7bd   : > { %11355 = vmatpush3.bf16.msra.mxu1 %v11354_v56 }
 0x7be   : > { %11356 = vmatprep.subr.bf16.mxu1 %v11959_v18 }
 0x7bf   : > { %v7522_v1 = vpop.f32.mrb[70].mxu1 }
 0x7c0   : > { %v7523_v2 = vadd.f32 %v7522_v1, %v7452_v27  ;;  %v10688_v4 = vpop.f32.mrb[71].mxu1 }
 0x7c1   : > { %11358 = vmatpush3.bf16.msra.mxu1 %v11357_v60 }
 0x7c2   : > { %11359 = vmatprep.subr.bf16.mxu1 %v11959_v18 }
 0x7c5   : > { %11361 = vmatpush3.bf16.msra.mxu1 %v11360_v61 }
 0x7c6   : > { %11362 = vmatprep.subr.bf16.mxu1 %v11959_v18 }
 0x7c9   : > { %11364 = vmatpush3.bf16.msra.mxu1 %v11363_v22 }
 0x7ca   : > { %11365 = vmatprep.subr.bf16.mxu1 %v11959_v18 }
 0x7cc   : > { %10932 = vmatmul.mubr.f32.vlgmr.msra.gmra.mrb[84].mxu1 %v8060_v3 }
 0x7cd   : > { %10966 = vmatprep.mubr.msk.f32.mxu1 %vm11960_vm9, %v13165_v15  ;;  %v8161_v15 = vld [vmem:[%s13975_s9 + $0x18] sm:$0xff]  ;;  %11367 = vmatpush3.bf16.msra.mxu1 %v11366_v16 }
 0x7ce   : > { %v11369_v17 = vpack.c.bf16 %v8161_v15, %v8160_v6  ;;  %11368 = vmatprep.subr.bf16.mxu1 %v11959_v18 }
 0x7d1   : > { %11370 = vmatpush3.bf16.msra.mxu1 %v11369_v17 }
 0x7d2   : > { %11371 = vmatprep.subr.bf16.mxu1 %v11959_v18 }
 0x7d5   : > { %11373 = vmatpush3.bf16.msra.mxu1 %v11372_v24 }
 0x7d6   : > { %11374 = vmatprep.subr.bf16.mxu1 %v11959_v18 }
 0x7d9   : > { %11376 = vmatpush3.bf16.msra.mxu1 %v11375_v30 }
 0x7da   : > { %11377 = vmatprep.subr.bf16.mxu1 %v11959_v18 }
 0x7dd   : > { %11379 = vmatpush3.bf16.msra.mxu1 %v11378_v32 }
 0x7de   : > { %11380 = vmatprep.subr.bf16.mxu1 %v11959_v18 }
 0x7df   : > { %v7610_v7 = vpop.f32.mrb[72].mxu1 }
 0x7e0   : > { %v7614_v62 = vadd.f32 %v7610_v7, %v7523_v2  ;;  %v10723_v8 = vpop.f32.mrb[73].mxu1 }
 0x7e1   : > { %11382 = vmatpush3.bf16.msra.mxu1 %v11381_v36 }
 0x7e2   : > { %11383 = vmatprep.subr.bf16.mxu1 %v11959_v18 }
 0x7e5   : > { %11385 = vmatpush3.bf16.msra.mxu1 %v11384_v40 }
 0x7e6   : > { %11386 = vmatprep.subr.bf16.mxu1 %v11959_v18 }
 0x7e9   : > { %11388 = vmatpush3.bf16.msra.mxu1 %v11387_v43 }
 0x7ff   : > { %v7699_v9 = vpop.f32.mrb[74].mxu1 }
 0x800   : > { %v7703_v10 = vadd.f32 %v7699_v9, %v7614_v62  ;;  %v10758_v63 = vpop.f32.mrb[75].mxu1 }
 0x81f   : > { %v7788_v37 = vpop.f32.mrb[76].mxu1 }
 0x820   : > { %v7792_v39 = vadd.f32 %v7788_v37, %v7703_v10  ;;  %v10793_v27 = vpop.f32.mrb[77].mxu1 }
 0x83f   : > { %v7877_v45 = vpop.f32.mrb[78].mxu1 }
 0x840   : > { %v7881_v46 = vadd.f32 %v7877_v45, %v7792_v39  ;;  %v10828_v14 = vpop.f32.mrb[79].mxu1 }
 0x85f   : > { %v7966_v47 = vpop.f32.mrb[80].mxu1 }
 0x860   : > { %v7970_v44 = vadd.f32 %v7966_v47, %v7881_v46  ;;  %v10863_v48 = vpop.f32.mrb[81].mxu1 }
 0x87f   : > { %v8055_v49 = vpop.f32.mrb[82].mxu1 }
 0x880   : > { %v8059_v18 = vadd.f32 %v8055_v49, %v7970_v44  ;;  %v10898_v50 = vpop.f32.mrb[83].mxu1 }
 0x89f   : > { %v8144_v51 = vpop.f32.mrb[84].mxu1 }
 0x8a0   : > { %v8148_v54 = vadd.f32 %v8144_v51, %v8059_v18  ;;  %v10933_v55 = vpop.f32.mrb[85].mxu1 }
 0x8a2   : > { %v8156_v19 = vadd.f32 %v8949_v53, %v8148_v54 }
 0x8a4   : > { %v8157_v57 = vmax.f32 %v8156_v19, 0.0 }
 0x8a6   : > { %10967 = vmatmul.mubr.f32.vlgmr.msra.gmra.mrb[86].mxu1 %v8157_v57 }
 0x979   : > { %v8247_v20 = vpop.f32.mrb[86].mxu1 }
 0x97a   : > { %v8248_v56 = vadd.f32 %v8950_v52, %v8247_v20  ;;  %v10968_v58 = vpop.f32.mrb[87].mxu1 }
 0x97c   : > { %8252 = vst.msk [vmem:[%s409_s14] sm:$0x3] %vm8251_vm12, %v8248_v56 }
 0x97d   : > { %8254 = vst.msk [vmem:[%s409_s14 - $0x2] sm:$0x30] %vm8253_vm13, %v8248_v56 }
 0x97e   : > { %11895 = shalt.err (!%p11892_p11)
}
 0x97f   : > { %s11896_s19 = scalar_lea.hbm %s13924_s28, 64  ;;  %s11900_s16 = scalar_lea.hbm %s13977_s11, 128 }
 0x980   : > { %p11897_p13 = scmp.ne.s32.totalorder %s13924_s28, %s11896_s19  ;;  %p11901_p6 = scmp.lt.u32.totalorder %s13924_s28, %s13977_s11 }
 0x981   : > { %p11902_p9 = scmp.lt.u32.totalorder %s11900_s16, %s11896_s19  ;;  %p11904_p12 = scmp.lt.u32.totalorder %s11896_s19, %s13924_s28 }
 0x982   : > { %p11898_p5 = pnand %p11897_p13, %p14000_p1 }
 0x983   : > { %p11903_p10 = por %p11902_p9, %p11901_p6 }
 0x984   : > { %p11899_p0 = pneg %p11898_p5 }
 0x985   : > { %p11905_p2 = por %p11904_p12, %p11903_p10 }
 0x987   : > { %p11906_p3 = pnand %p11905_p2, %p11899_p0 }
 0x989   : > { %11909 = shalt.err (!%p11906_p3)
}
 0x98a   : > { %11768 = dma.vmem_to_hbm [thread:$0]  (%p14000_p1), %s13926_s12, 64, %s13924_s28, %s8256_s21  }
 0x98b PF: > { %s14001_s14 = sld [smem:[#allocation17_spill]]  ;;  %s14002_s17 = sld [smem:[#allocation21_spill]] }
 0x98c   : > { %p11785_p4 = scmp.ge.s32.totalorder %s11952_s20, 2 }
 0x991   : > { %s8281_s23 = sand.u32 1, %s14001_s14   ;;  %p14003_p7 = scmp.ne.s32.totalorder %s14002_s17, 0 }
 0x992   : > { %s8282_s13 = scalar_lea.sflag [#allocation10], %s8281_s23 }
 0x993   : > { %p11778_p8 = pnand %p11785_p4, %p14003_p7 }
 0x995   : > { %11935 = dma.done.wait (!%p11778_p8), %s8282_s13, 64  }
 0x996   : > { %11937 = vsyncadd (!%p11778_p8), %s8282_s13, 4294967232  ;;  %s14004_s20 = sld [smem:[#allocation19_spill]]  ;;  %s14005_s29 = sld [smem:[#allocation18_spill]] }
 0x997   : > { %s14006_s19 = sld [smem:[#allocation20_spill]]  ;;  %s14007_s17 = smov %s11944_s18 }
 0x99c   : > { %p23_p11 = scmp.ge.s32.totalorder %s14004_s20, 4   ;;  %s14008_s18 = smov %s14005_s29 }
 0x99e   :  { %25 = sbr.rel (!%p23_p11) target bundleno = 5 (0x5), region = 151 }
 0x9a5   :  { %8287 = vsyncpa [#allocation9], 1 }
 0x9a6   :  { %8289 = vsyncpa [#allocation9 + $0x1], 1 }
 0x9a7   :  { %8290 = vsyncpa [#allocation12], 1 }
 0x9a8   :  { %8291 = vsyncpa [#allocation10], 1 }
 0x9a9   :  { %8293 = vsyncpa [#allocation10 + $0x1], 1 }

</bundles_post_ra>
